<compile_context>
chip_gen: v5e
topology: v5e:2x2
jax: 0.10.0
libtpu: 0.0.40
codegen_flags: <defaults>
</compile_context>

<pallas_src>
import functools

import jax
import jax.numpy as jnp
import numpy as np
from jax.experimental import pallas as pl
from jax.experimental.pallas import tpu as pltpu

_EPS = 1e-5
# Modest explicit cap: >10x the largest per-layer working set while leaving
# headroom even on v7x's 64 MiB physical VMEM (oversized but harmless on v5e/v6e).
_VMEM_LIMIT = 32 * 1024 * 1024


def _pick_tile(dim, pref, align):
    """Largest tile <= pref that divides `dim` and is a multiple of `align`.

    Falls back to the full dimension (always a legal block shape) only when no
    aligned divisor exists; never produces an unaligned partial tile."""
    if dim <= pref:
        return dim
    t = (pref // align) * align
    while t >= align:
        if dim % t == 0:
            return t
        t -= align
    return dim


def _pick_cout_tile(cout):
    """Lane-dense (multiple-of-128) Cout tile; prefer >=2 tiles when Cout >= 256
    so the 'parallel' Cout axis can be sharded across both v7x TensorCores."""
    if cout >= 256 and cout % 128 == 0:
        t = min(256, (cout // 2) // 128 * 128)
        if t >= 128 and cout % t == 0:
            return t
    return _pick_tile(cout, 256, 128)


# ---------------------------------------------------------------------------
# Kernel 1: tiled GEMM + LeakyReLU (layer 1, no BatchNorm).
# grid = (M tiles, Cout tiles, K tiles); f32 accumulator, pl.when init/finalize.
# ---------------------------------------------------------------------------
def _gemm_lrelu_kernel(p_ref, w_ref, o_ref, acc_ref):
    k = pl.program_id(2)

    @pl.when(k == 0)
    def _():
        acc_ref[...] = jnp.zeros_like(acc_ref)

    acc_ref[...] += jnp.dot(p_ref[...], w_ref[...],
                            preferred_element_type=jnp.float32)

    @pl.when(k == pl.num_programs(2) - 1)
    def _():
        x = acc_ref[...]
        o_ref[...] = jnp.where(x >= 0, x, 0.2 * x).astype(o_ref.dtype)


# ---------------------------------------------------------------------------
# Kernel 2: tiled GEMM with fused one-pass BatchNorm + LeakyReLU (layers 2-3).
# The full M = N*Ho*Wo row range is a single resident block, so the batch
# stats AND the normalize+activate epilogue run in the K-finalize branch --
# no separate stats output, no second kernel, no extra HBM round trip.
# grid = (Cout tiles ['parallel'], K tiles ['arbitrary']).
# ---------------------------------------------------------------------------
def _gemm_bn_lrelu_kernel(p_ref, w_ref, g_ref, b_ref, o_ref, acc_ref, *,
                          inv_m, eps):
    k = pl.program_id(1)

    @pl.when(k == 0)
    def _():
        acc_ref[...] = jnp.zeros_like(acc_ref)

    acc_ref[...] += jnp.dot(p_ref[...], w_ref[...],
                            preferred_element_type=jnp.float32)

    @pl.when(k == pl.num_programs(1) - 1)
    def _():
        y = acc_ref[...]                                      # (M, tn) f32
        mu = jnp.sum(y, axis=0, keepdims=True) * inv_m
        d = y - mu
        var = jnp.sum(d * d, axis=0, keepdims=True) * inv_m   # centered variance
        z = d * (g_ref[...] * jax.lax.rsqrt(var + eps)) + b_ref[...]
        o_ref[...] = jnp.where(z >= 0, z, 0.2 * z).astype(o_ref.dtype)


# ---------------------------------------------------------------------------
# Kernel 3: fused final stage = conv4 GEMM + BN + LeakyReLU + conv5 (1x2) +
# sigmoid.  Layer 4's activation (2*n_img, 512) never leaves VMEM; conv5 is a
# second dot against a (512, 256) slab whose two 128-lane halves are the
# wo=0 / wo=1 taps of the 1x2 kernel (Cout=1 padded to 128 lanes).
# grid = (K tiles,) only.
# ---------------------------------------------------------------------------
def _final_stage_kernel(p_ref, w4_ref, g_ref, b_ref, w5_ref, o_ref, acc_ref, *,
                        n_img, inv_m, eps):
    k = pl.program_id(0)

    @pl.when(k == 0)
    def _():
        acc_ref[...] = jnp.zeros_like(acc_ref)

    acc_ref[...] += jnp.dot(p_ref[...], w4_ref[...],
                            preferred_element_type=jnp.float32)

    @pl.when(k == pl.num_programs(0) - 1)
    def _():
        y = acc_ref[...]                                      # (2*n_img, 512) f32
        mu = jnp.sum(y, axis=0, keepdims=True) * inv_m
        d = y - mu
        var = jnp.sum(d * d, axis=0, keepdims=True) * inv_m
        z = d * (g_ref[...] * jax.lax.rsqrt(var + eps)) + b_ref[...]
        a = jnp.where(z >= 0, z, 0.2 * z)                     # layer-4 activation
        # conv5: rows (2n, 2n+1) are image n's (wo=0, wo=1) spatial positions;
        # their contributions land in lane blocks [0:128) / [128:256) of p5.
        p5 = jnp.dot(a.astype(w5_ref.dtype), w5_ref[...],
                     preferred_element_type=jnp.float32)      # (2*n_img, 256)
        rows = [p5[2 * n:2 * n + 1, 0:128] + p5[2 * n + 1:2 * n + 2, 128:256]
                for n in range(n_img)]
        logits = jnp.concatenate(rows, axis=0)                # (n_img, 128); col 0 real
        # Approximate (EUP) reciprocal sigmoid -- tiny deviation vs exact.
        o_ref[...] = pl.reciprocal(1.0 + jnp.exp(-logits),
                                   approx=True).astype(o_ref.dtype)


# ---------------------------------------------------------------------------
# XLA-side glue: NHWC im2col on bf16 (column order (kh, kw, Cin)).
# ---------------------------------------------------------------------------
def _im2col_nhwc(x, kh, kw, stride, pad):
    """x: (N,H,W,C) -> (N*Ho*Wo, kh*kw*C)."""
    N, H, W, C = x.shape
    xp = jnp.pad(x, ((0, 0), (pad, pad), (pad, pad), (0, 0)))
    Ho = (H + 2 * pad - kh) // stride + 1
    Wo = (W + 2 * pad - kw) // stride + 1
    cols = []
    for i in range(kh):
        for j in range(kw):
            cols.append(xp[:, i:i + stride * Ho:stride,
                           j:j + stride * Wo:stride, :])
    cols = jnp.stack(cols, axis=3)               # (N, Ho, Wo, kh*kw, C)
    return cols.reshape(N * Ho * Wo, kh * kw * C), Ho, Wo


# ---------------------------------------------------------------------------
# Per-layer wrappers.
# ---------------------------------------------------------------------------
def _conv_lrelu_layer(x, w_mat):
    N = x.shape[0]
    patches, Ho, Wo = _im2col_nhwc(x, 4, 4, 2, 1)
    M, K = patches.shape
    Cout = w_mat.shape[1]
    tm = _pick_tile(M, 512, 8)
    tn = _pick_tile(Cout, 256, 128)
    tk = _pick_tile(K, 1024, 128)
    out = pl.pallas_call(
        _gemm_lrelu_kernel,
        out_shape=jax.ShapeDtypeStruct((M, Cout), jnp.bfloat16),
        grid=(M // tm, Cout // tn, K // tk),
        in_specs=[pl.BlockSpec((tm, tk), lambda i, j, k: (i, k)),
                  pl.BlockSpec((tk, tn), lambda i, j, k: (k, j))],
        out_specs=pl.BlockSpec((tm, tn), lambda i, j, k: (i, j)),
        scratch_shapes=[pltpu.VMEM((tm, tn), jnp.float32)],
        compiler_params=pltpu.CompilerParams(
            dimension_semantics=("parallel", "parallel", "arbitrary"),
            vmem_limit_bytes=_VMEM_LIMIT),
    )(patches, w_mat)
    return out.reshape(N, Ho, Wo, Cout)


def _conv_bn_lrelu_layer(x, w_mat, gamma, beta):
    N = x.shape[0]
    patches, Ho, Wo = _im2col_nhwc(x, 4, 4, 2, 1)
    M, K = patches.shape
    Cout = w_mat.shape[1]
    tn = _pick_cout_tile(Cout)
    tk = _pick_tile(K, 1024, 128)
    # Full M resident in one block -> one-pass fused BN (stats + apply).
    # TODO(synk): for very large batches (f32 accumulator of (M, tn) no longer
    # comfortable in VMEM) fall back to a two-pass BN.
    kernel = functools.partial(_gemm_bn_lrelu_kernel, inv_m=1.0 / M, eps=_EPS)
    out = pl.pallas_call(
        kernel,
        out_shape=jax.ShapeDtypeStruct((M, Cout), jnp.bfloat16),
        grid=(Cout // tn, K // tk),
        in_specs=[pl.BlockSpec((M, tk), lambda j, k: (0, k)),
                  pl.BlockSpec((tk, tn), lambda j, k: (k, j)),
                  pl.BlockSpec((1, tn), lambda j, k: (0, j)),
                  pl.BlockSpec((1, tn), lambda j, k: (0, j))],
        out_specs=pl.BlockSpec((M, tn), lambda j, k: (0, j)),
        scratch_shapes=[pltpu.VMEM((M, tn), jnp.float32)],
        compiler_params=pltpu.CompilerParams(
            dimension_semantics=("parallel", "arbitrary"),
            vmem_limit_bytes=_VMEM_LIMIT),
    )(patches, w_mat, gamma, beta)
    return out.reshape(N, Ho, Wo, Cout)


def _conv4_bn_conv5_sigmoid_layer(x, w4_mat, gamma, beta, w5_mat):
    N = x.shape[0]
    patches, Ho, Wo = _im2col_nhwc(x, 4, 4, 2, 1)
    # The fused conv5 assumes the DCGAN geometry: layer-4 output is 1 x 2.
    assert Ho == 1 and Wo == 2, (Ho, Wo)
    M, K = patches.shape                       # (2*N, 4096)
    Cout = w4_mat.shape[1]                     # 512
    tk = _pick_tile(K, 1024, 128)
    kernel = functools.partial(_final_stage_kernel, n_img=N, inv_m=1.0 / M,
                               eps=_EPS)
    return pl.pallas_call(
        kernel,
        out_shape=jax.ShapeDtypeStruct((N, 128), jnp.float32),
        grid=(K // tk,),
        in_specs=[pl.BlockSpec((M, tk), lambda k: (0, k)),
                  pl.BlockSpec((tk, Cout), lambda k: (k, 0)),
                  pl.BlockSpec((1, Cout), lambda k: (0, 0)),
                  pl.BlockSpec((1, Cout), lambda k: (0, 0)),
                  pl.BlockSpec((Cout, 256), lambda k: (0, 0))],
        out_specs=pl.BlockSpec((N, 128), lambda k: (0, 0)),
        scratch_shapes=[pltpu.VMEM((M, Cout), jnp.float32)],
        compiler_params=pltpu.CompilerParams(
            dimension_semantics=("arbitrary",),
            vmem_limit_bytes=_VMEM_LIMIT),
    )(patches, w4_mat, gamma, beta, w5_mat)


# ---------------------------------------------------------------------------
# Parameters.
# ---------------------------------------------------------------------------
def init_params(key):
    ks = jax.random.split(key, 5)
    w = lambda k, shape: 0.02 * jax.random.normal(k, shape, jnp.float32)
    return {
        "w1": w(ks[0], (64, 4, 4, 4)),
        "w2": w(ks[1], (128, 64, 4, 4)),
        "w3": w(ks[2], (256, 128, 4, 4)),
        "w4": w(ks[3], (512, 256, 4, 4)),
        "w5": w(ks[4], (1, 512, 1, 2)),
        "g2": jnp.ones((128,), jnp.float32), "b2": jnp.zeros((128,), jnp.float32),
        "g3": jnp.ones((256,), jnp.float32), "b3": jnp.zeros((256,), jnp.float32),
        "g4": jnp.ones((512,), jnp.float32), "b4": jnp.zeros((512,), jnp.float32),
    }


def _to_mat(w, cin_pad=0, cout_pad=0):
    """OIHW conv weight -> bf16 (kh*kw*Cin, Cout) GEMM matrix, rows (kh,kw,Cin)."""
    if cin_pad or cout_pad:
        w = jnp.pad(w, ((0, cout_pad), (0, cin_pad), (0, 0), (0, 0)))
    cout, cin, kh, kw = w.shape
    return (jnp.transpose(w, (2, 3, 1, 0))
            .reshape(kh * kw * cin, cout).astype(jnp.bfloat16))


def prepare_params(params):
    """One-time preprocessing into GEMM-ready bf16 matrices (hoisted)."""
    prep = {
        # Layer 1 lane-dense: Cin 4->8 (K=128) and Cout 64->128.
        "w1": _to_mat(params["w1"], cin_pad=4, cout_pad=64),     # (128, 128)
        # Layer 2 consumes layer 1's 128-channel slab: zero-pad its Cin rows.
        "w2": _to_mat(params["w2"], cin_pad=64),                 # (2048, 128)
        "w3": _to_mat(params["w3"]),                             # (2048, 256)
        "w4": _to_mat(params["w4"]),                             # (4096, 512)
    }
    # conv5 (1x2, Cout=1) as a (512, 256) slab: lanes [0:128) = wo=0 tap,
    # [128:256) = wo=1 tap, real output in lane 0 of each half.
    w5 = params["w5"].astype(jnp.float32)                        # (1, 512, 1, 2)
    cin5 = w5.shape[1]
    pad = jnp.zeros((cin5, 127), jnp.float32)
    prep["w5"] = jnp.concatenate(
        [w5[0, :, 0, 0].reshape(cin5, 1), pad,
         w5[0, :, 0, 1].reshape(cin5, 1), pad], axis=1).astype(jnp.bfloat16)
    for g, b in (("g2", "b2"), ("g3", "b3"), ("g4", "b4")):
        prep[g] = params[g].reshape(1, -1).astype(jnp.float32)
        prep[b] = params[b].reshape(1, -1).astype(jnp.float32)
    return prep


def discriminator(prep, x_nchw):
    x = jnp.transpose(x_nchw, (0, 2, 3, 1)).astype(jnp.bfloat16)  # NCHW->NHWC, bf16 once
    x = jnp.pad(x, ((0, 0), (0, 0), (0, 0), (0, 4)))              # Cin 4->8 lane pad
    x = _conv_lrelu_layer(x, prep["w1"])                          # (N, 8, 16, 128)
    x = _conv_bn_lrelu_layer(x, prep["w2"], prep["g2"], prep["b2"])  # (N, 4, 8, 128)
    x = _conv_bn_lrelu_layer(x, prep["w3"], prep["g3"], prep["b3"])  # (N, 2, 4, 256)
    out = _conv4_bn_conv5_sigmoid_layer(                          # (N, 128) f32
        x, prep["w4"], prep["g4"], prep["b4"], prep["w5"])
    return out[:, :1].reshape(out.shape[0], 1, 1, 1)              # (N,1,1,1) NCHW


# ---------------------------------------------------------------------------
# Pure-JAX reference (mirrors the PyTorch forward in train() mode).
# ---------------------------------------------------------------------------
def reference_forward(params, x):
    def conv(x, w, stride, pad):
        return jax.lax.conv_general_dilated(
            x, w, (stride, stride), [(pad, pad), (pad, pad)],
            dimension_numbers=("NCHW", "OIHW", "NCHW"),
            precision=jax.lax.Precision.HIGHEST)

    def bn(x, g, b):
        mu = x.mean(axis=(0, 2, 3), keepdims=True)
        var = ((x - mu) ** 2).mean(axis=(0, 2, 3), keepdims=True)
        return ((x - mu) / jnp.sqrt(var + _EPS) * g.reshape(1, -1, 1, 1)
                + b.reshape(1, -1, 1, 1))

    lrelu = lambda v: jnp.where(v >= 0, v, 0.2 * v)
    x = lrelu(conv(x, params["w1"], 2, 1))
    x = lrelu(bn(conv(x, params["w2"], 2, 1), params["g2"], params["b2"]))
    x = lrelu(bn(conv(x, params["w3"], 2, 1), params["g3"], params["b3"]))
    x = lrelu(bn(conv(x, params["w4"], 2, 1), params["g4"], params["b4"]))
    x = jax.nn.sigmoid(conv(x, params["w5"], 1, 0))
    return x


if __name__ == "__main__":
    key = jax.random.PRNGKey(0)
    kp, kx = jax.random.split(key)
    params = init_params(kp)
    prep = prepare_params(params)   # one-time weight preprocessing (hoisted)

    # 16x32 input so the spatial dims reach (1, 2) before the final (1, 2)
    # conv, giving a (N, 1, 1, 1) output as in the original discriminator.
    x = jax.random.normal(kx, (2, 4, 16, 32), jnp.float32)

    fwd = jax.jit(discriminator)
    out = jax.block_until_ready(fwd(prep, x))
    assert out.shape == (2, 1, 1, 1), out.shape

    ref = jax.block_until_ready(reference_forward(params, x))
    if not np.allclose(np.asarray(out, np.float32), np.asarray(ref),
                       atol=2e-2, rtol=2e-2):
        raise AssertionError("Pallas output does not match JAX reference")

    print("KERNEL_OK")
</pallas_src>

<mosaic_0001>
module attributes {stable_mosaic.version = 11 : i64} {
  func.func @_gemm_lrelu_kernel(%arg0: i32, %arg1: i32, %arg2: i32, %arg3: memref<256x128xbf16, #tpu.memory_space<vmem>>, %arg4: memref<128x128xbf16, #tpu.memory_space<vmem>>, %arg5: memref<256x128xbf16, #tpu.memory_space<vmem>>, %arg6: memref<256x128xf32, #tpu.memory_space<vmem>>) attributes {dimension_semantics = [#tpu.dimension_semantics<parallel>, #tpu.dimension_semantics<parallel>, #tpu.dimension_semantics<arbitrary>], iteration_bounds = array<i64: 1, 1, 1>, scalar_prefetch = 0 : i64, scratch_operands = 1 : i64, tpu.core_type = #tpu.core_type<tc>, window_params = [{transform_indices = @transform_0, window_bounds = array<i64: 256, 128>}, {transform_indices = @transform_1, window_bounds = array<i64: 128, 128>}, {transform_indices = @transform_2, window_bounds = array<i64: 256, 128>}]} {
    %c0_i32 = arith.constant 0 : i32
    %0 = arith.cmpi eq, %arg2, %c0_i32 : i32
    %1 = arith.extui %0 : i1 to i32
    %c0_i32_0 = arith.constant 0 : i32
    %2 = arith.cmpi ne, %1, %c0_i32_0 : i32
    scf.if %2 {
      %cst_10 = arith.constant 0.000000e+00 : f32
      %12 = vector.broadcast %cst_10 : f32 to vector<256x128xf32>
      %c0_11 = arith.constant 0 : index
      %c0_12 = arith.constant 0 : index
      %13 = vector.load %arg6[%c0_11, %c0_12] : memref<256x128xf32, #tpu.memory_space<vmem>>, vector<256x128xf32>
      tpu.vector_store %arg6[%c0_11, %c0_12], %12 {strides = array<i32>} : memref<256x128xf32, #tpu.memory_space<vmem>>, vector<256x128xf32>,
    } else {
    }
    %c0 = arith.constant 0 : index
    %c0_1 = arith.constant 0 : index
    %3 = vector.load %arg6[%c0, %c0_1] : memref<256x128xf32, #tpu.memory_space<vmem>>, vector<256x128xf32>
    %c0_2 = arith.constant 0 : index
    %c0_3 = arith.constant 0 : index
    %4 = vector.load %arg3[%c0_2, %c0_3] : memref<256x128xbf16, #tpu.memory_space<vmem>>, vector<256x128xbf16>
    %c0_4 = arith.constant 0 : index
    %c0_5 = arith.constant 0 : index
    %5 = vector.load %arg4[%c0_4, %c0_5] : memref<128x128xbf16, #tpu.memory_space<vmem>>, vector<128x128xbf16>
    %cst = arith.constant dense<0.000000e+00> : vector<256x128xf32>
    %6 = tpu.matmul %4, %5, %cst {dimension_numbers = #tpu.dot_dimension_numbers<[1], [0], [0], [1], [0, 0, 1, 1], [], []>} : vector<256x128xbf16>, vector<128x128xbf16>, vector<256x128xf32> -> vector<256x128xf32>
    %7 = arith.addf %3, %6 : vector<256x128xf32>
    %c0_6 = arith.constant 0 : index
    %c0_7 = arith.constant 0 : index
    %8 = vector.load %arg6[%c0_6, %c0_7] : memref<256x128xf32, #tpu.memory_space<vmem>>, vector<256x128xf32>
    tpu.vector_store %arg6[%c0_6, %c0_7], %7 {strides = array<i32>} : memref<256x128xf32, #tpu.memory_space<vmem>>, vector<256x128xf32>,
    %c0_i32_8 = arith.constant 0 : i32
    %9 = arith.cmpi eq, %arg2, %c0_i32_8 : i32
    %10 = arith.extui %9 : i1 to i32
    %c0_i32_9 = arith.constant 0 : i32
    %11 = arith.cmpi ne, %10, %c0_i32_9 : i32
    scf.if %11 {
      %c0_10 = arith.constant 0 : index
      %c0_11 = arith.constant 0 : index
      %12 = vector.load %arg6[%c0_10, %c0_11] : memref<256x128xf32, #tpu.memory_space<vmem>>, vector<256x128xf32>
      %cst_12 = arith.constant 0.000000e+00 : f32
      %13 = vector.broadcast %cst_12 : f32 to vector<256x128xf32>
      %14 = arith.cmpf oge, %12, %13 : vector<256x128xf32>
      %cst_13 = arith.constant 2.000000e-01 : f32
      %15 = vector.broadcast %cst_13 : f32 to vector<256x128xf32>
      %16 = arith.mulf %15, %12 : vector<256x128xf32>
      %17 = arith.select %14, %12, %16 : vector<256x128xi1>, vector<256x128xf32>
      %18 = arith.truncf %17 : vector<256x128xf32> to vector<256x128xbf16>
      %c0_14 = arith.constant 0 : index
      %c0_15 = arith.constant 0 : index
      %19 = vector.load %arg5[%c0_14, %c0_15] : memref<256x128xbf16, #tpu.memory_space<vmem>>, vector<256x128xbf16>
      tpu.vector_store %arg5[%c0_14, %c0_15], %18 {strides = array<i32>} : memref<256x128xbf16, #tpu.memory_space<vmem>>, vector<256x128xbf16>,
    } else {
    }
    return
  }
  func.func @transform_0(%arg0: i32, %arg1: i32, %arg2: i32) -> (i32, i32) {
    %c0_i32 = arith.constant 0 : i32
    return %arg0, %arg2 : i32, i32
  }
  func.func @transform_1(%arg0: i32, %arg1: i32, %arg2: i32) -> (i32, i32) {
    %c0_i32 = arith.constant 0 : i32
    return %arg2, %arg1 : i32, i32
  }
  func.func @transform_2(%arg0: i32, %arg1: i32, %arg2: i32) -> (i32, i32) {
    %c0_i32 = arith.constant 0 : i32
    return %arg0, %arg1 : i32, i32
  }
}

module attributes {stable_mosaic.version = 11 : i64} {
  func.func @_gemm_bn_lrelu_kernel(%arg0: i32, %arg1: i32, %arg2: memref<64x1024xbf16, #tpu.memory_space<vmem>>, %arg3: memref<1024x128xbf16, #tpu.memory_space<vmem>>, %arg4: memref<1x128xf32, #tpu.memory_space<vmem>>, %arg5: memref<1x128xf32, #tpu.memory_space<vmem>>, %arg6: memref<64x128xbf16, #tpu.memory_space<vmem>>, %arg7: memref<64x128xf32, #tpu.memory_space<vmem>>) attributes {dimension_semantics = [#tpu.dimension_semantics<parallel>, #tpu.dimension_semantics<arbitrary>], iteration_bounds = array<i64: 1, 2>, scalar_prefetch = 0 : i64, scratch_operands = 1 : i64, tpu.core_type = #tpu.core_type<tc>, window_params = [{transform_indices = @transform_0, window_bounds = array<i64: 64, 1024>}, {transform_indices = @transform_1, window_bounds = array<i64: 1024, 128>}, {transform_indices = @transform_2, window_bounds = array<i64: 1, 128>}, {transform_indices = @transform_3, window_bounds = array<i64: 1, 128>}, {transform_indices = @transform_4, window_bounds = array<i64: 64, 128>}]} {
    %c0_i32 = arith.constant 0 : i32
    %0 = arith.cmpi eq, %arg1, %c0_i32 : i32
    %1 = arith.extui %0 : i1 to i32
    %c0_i32_0 = arith.constant 0 : i32
    %2 = arith.cmpi ne, %1, %c0_i32_0 : i32
    scf.if %2 {
      %cst_9 = arith.constant 0.000000e+00 : f32
      %12 = vector.broadcast %cst_9 : f32 to vector<64x128xf32>
      %c0_10 = arith.constant 0 : index
      %c0_11 = arith.constant 0 : index
      %13 = vector.load %arg7[%c0_10, %c0_11] : memref<64x128xf32, #tpu.memory_space<vmem>>, vector<64x128xf32>
      tpu.vector_store %arg7[%c0_10, %c0_11], %12 {strides = array<i32>} : memref<64x128xf32, #tpu.memory_space<vmem>>, vector<64x128xf32>,
    } else {
    }
    %c0 = arith.constant 0 : index
    %c0_1 = arith.constant 0 : index
    %3 = vector.load %arg7[%c0, %c0_1] : memref<64x128xf32, #tpu.memory_space<vmem>>, vector<64x128xf32>
    %c0_2 = arith.constant 0 : index
    %c0_3 = arith.constant 0 : index
    %4 = vector.load %arg2[%c0_2, %c0_3] : memref<64x1024xbf16, #tpu.memory_space<vmem>>, vector<64x1024xbf16>
    %c0_4 = arith.constant 0 : index
    %c0_5 = arith.constant 0 : index
    %5 = vector.load %arg3[%c0_4, %c0_5] : memref<1024x128xbf16, #tpu.memory_space<vmem>>, vector<1024x128xbf16>
    %cst = arith.constant dense<0.000000e+00> : vector<64x128xf32>
    %6 = tpu.matmul %4, %5, %cst {dimension_numbers = #tpu.dot_dimension_numbers<[1], [0], [0], [1], [0, 0, 1, 1], [], []>} : vector<64x1024xbf16>, vector<1024x128xbf16>, vector<64x128xf32> -> vector<64x128xf32>
    %7 = arith.addf %3, %6 : vector<64x128xf32>
    %c0_6 = arith.constant 0 : index
    %c0_7 = arith.constant 0 : index
    %8 = vector.load %arg7[%c0_6, %c0_7] : memref<64x128xf32, #tpu.memory_space<vmem>>, vector<64x128xf32>
    tpu.vector_store %arg7[%c0_6, %c0_7], %7 {strides = array<i32>} : memref<64x128xf32, #tpu.memory_space<vmem>>, vector<64x128xf32>,
    %c1_i32 = arith.constant 1 : i32
    %9 = arith.cmpi eq, %arg1, %c1_i32 : i32
    %10 = arith.extui %9 : i1 to i32
    %c0_i32_8 = arith.constant 0 : i32
    %11 = arith.cmpi ne, %10, %c0_i32_8 : i32
    scf.if %11 {
      %c0_9 = arith.constant 0 : index
      %c0_10 = arith.constant 0 : index
      %12 = vector.load %arg7[%c0_9, %c0_10] : memref<64x128xf32, #tpu.memory_space<vmem>>, vector<64x128xf32>
      %cst_11 = arith.constant dense<0.000000e+00> : vector<128xf32>
      %13 = vector.multi_reduction <add>, %12, %cst_11 [0] : vector<64x128xf32> to vector<128xf32>
      %14 = vector.shape_cast %13 : vector<128xf32> to vector<1x128xf32>
      %cst_12 = arith.constant 1.562500e-02 : f32
      %15 = vector.broadcast %cst_12 : f32 to vector<1x128xf32>
      %16 = arith.mulf %14, %15 : vector<1x128xf32>
      %17 = vector.broadcast %16 : vector<1x128xf32> to vector<64x128xf32>
      %18 = arith.subf %12, %17 : vector<64x128xf32>
      %19 = arith.mulf %18, %18 : vector<64x128xf32>
      %cst_13 = arith.constant dense<0.000000e+00> : vector<128xf32>
      %20 = vector.multi_reduction <add>, %19, %cst_13 [0] : vector<64x128xf32> to vector<128xf32>
      %21 = vector.shape_cast %20 : vector<128xf32> to vector<1x128xf32>
      %cst_14 = arith.constant 1.562500e-02 : f32
      %22 = vector.broadcast %cst_14 : f32 to vector<1x128xf32>
      %23 = arith.mulf %21, %22 : vector<1x128xf32>
      %c0_15 = arith.constant 0 : index
      %c0_16 = arith.constant 0 : index
      %24 = vector.load %arg4[%c0_15, %c0_16] : memref<1x128xf32, #tpu.memory_space<vmem>>, vector<1x128xf32>
      %cst_17 = arith.constant 9.99999974E-6 : f32
      %25 = vector.broadcast %cst_17 : f32 to vector<1x128xf32>
      %26 = arith.addf %23, %25 : vector<1x128xf32>
      %27 = math.rsqrt %26 : vector<1x128xf32>
      %28 = arith.mulf %24, %27 : vector<1x128xf32>
      %29 = vector.broadcast %28 : vector<1x128xf32> to vector<64x128xf32>
      %30 = arith.mulf %18, %29 : vector<64x128xf32>
      %c0_18 = arith.constant 0 : index
      %c0_19 = arith.constant 0 : index
      %31 = vector.load %arg5[%c0_18, %c0_19] : memref<1x128xf32, #tpu.memory_space<vmem>>, vector<1x128xf32>
      %32 = vector.broadcast %31 : vector<1x128xf32> to vector<64x128xf32>
      %33 = arith.addf %30, %32 : vector<64x128xf32>
      %cst_20 = arith.constant 0.000000e+00 : f32
      %34 = vector.broadcast %cst_20 : f32 to vector<64x128xf32>
      %35 = arith.cmpf oge, %33, %34 : vector<64x128xf32>
      %cst_21 = arith.constant 2.000000e-01 : f32
      %36 = vector.broadcast %cst_21 : f32 to vector<64x128xf32>
      %37 = arith.mulf %36, %33 : vector<64x128xf32>
      %38 = arith.select %35, %33, %37 : vector<64x128xi1>, vector<64x128xf32>
      %39 = arith.truncf %38 : vector<64x128xf32> to vector<64x128xbf16>
      %c0_22 = arith.constant 0 : index
      %c0_23 = arith.constant 0 : index
      %40 = vector.load %arg6[%c0_22, %c0_23] : memref<64x128xbf16, #tpu.memory_space<vmem>>, vector<64x128xbf16>
      tpu.vector_store %arg6[%c0_22, %c0_23], %39 {strides = array<i32>} : memref<64x128xbf16, #tpu.memory_space<vmem>>, vector<64x128xbf16>,
    } else {
    }
    return
  }
  func.func @transform_0(%arg0: i32, %arg1: i32) -> (i32, i32) {
    %c0_i32 = arith.constant 0 : i32
    %c0_i32_0 = arith.constant 0 : i32
    return %c0_i32, %arg1 : i32, i32
  }
  func.func @transform_1(%arg0: i32, %arg1: i32) -> (i32, i32) {
    %c0_i32 = arith.constant 0 : i32
    return %arg1, %arg0 : i32, i32
  }
  func.func @transform_2(%arg0: i32, %arg1: i32) -> (i32, i32) {
    %c0_i32 = arith.constant 0 : i32
    %c0_i32_0 = arith.constant 0 : i32
    return %c0_i32, %arg0 : i32, i32
  }
  func.func @transform_3(%arg0: i32, %arg1: i32) -> (i32, i32) {
    %c0_i32 = arith.constant 0 : i32
    %c0_i32_0 = arith.constant 0 : i32
    return %c0_i32, %arg0 : i32, i32
  }
  func.func @transform_4(%arg0: i32, %arg1: i32) -> (i32, i32) {
    %c0_i32 = arith.constant 0 : i32
    %c0_i32_0 = arith.constant 0 : i32
    return %c0_i32, %arg0 : i32, i32
  }
}

module attributes {stable_mosaic.version = 11 : i64} {
  func.func @_gemm_bn_lrelu_kernel(%arg0: i32, %arg1: i32, %arg2: memref<16x1024xbf16, #tpu.memory_space<vmem>>, %arg3: memref<1024x128xbf16, #tpu.memory_space<vmem>>, %arg4: memref<1x128xf32, #tpu.memory_space<vmem>>, %arg5: memref<1x128xf32, #tpu.memory_space<vmem>>, %arg6: memref<16x128xbf16, #tpu.memory_space<vmem>>, %arg7: memref<16x128xf32, #tpu.memory_space<vmem>>) attributes {dimension_semantics = [#tpu.dimension_semantics<parallel>, #tpu.dimension_semantics<arbitrary>], iteration_bounds = array<i64: 2, 2>, scalar_prefetch = 0 : i64, scratch_operands = 1 : i64, tpu.core_type = #tpu.core_type<tc>, window_params = [{transform_indices = @transform_0, window_bounds = array<i64: 16, 1024>}, {transform_indices = @transform_1, window_bounds = array<i64: 1024, 128>}, {transform_indices = @transform_2, window_bounds = array<i64: 1, 128>}, {transform_indices = @transform_3, window_bounds = array<i64: 1, 128>}, {transform_indices = @transform_4, window_bounds = array<i64: 16, 128>}]} {
    %c0_i32 = arith.constant 0 : i32
    %0 = arith.cmpi eq, %arg1, %c0_i32 : i32
    %1 = arith.extui %0 : i1 to i32
    %c0_i32_0 = arith.constant 0 : i32
    %2 = arith.cmpi ne, %1, %c0_i32_0 : i32
    scf.if %2 {
      %cst_9 = arith.constant 0.000000e+00 : f32
      %12 = vector.broadcast %cst_9 : f32 to vector<16x128xf32>
      %c0_10 = arith.constant 0 : index
      %c0_11 = arith.constant 0 : index
      %13 = vector.load %arg7[%c0_10, %c0_11] : memref<16x128xf32, #tpu.memory_space<vmem>>, vector<16x128xf32>
      tpu.vector_store %arg7[%c0_10, %c0_11], %12 {strides = array<i32>} : memref<16x128xf32, #tpu.memory_space<vmem>>, vector<16x128xf32>,
    } else {
    }
    %c0 = arith.constant 0 : index
    %c0_1 = arith.constant 0 : index
    %3 = vector.load %arg7[%c0, %c0_1] : memref<16x128xf32, #tpu.memory_space<vmem>>, vector<16x128xf32>
    %c0_2 = arith.constant 0 : index
    %c0_3 = arith.constant 0 : index
    %4 = vector.load %arg2[%c0_2, %c0_3] : memref<16x1024xbf16, #tpu.memory_space<vmem>>, vector<16x1024xbf16>
    %c0_4 = arith.constant 0 : index
    %c0_5 = arith.constant 0 : index
    %5 = vector.load %arg3[%c0_4, %c0_5] : memref<1024x128xbf16, #tpu.memory_space<vmem>>, vector<1024x128xbf16>
    %cst = arith.constant dense<0.000000e+00> : vector<16x128xf32>
    %6 = tpu.matmul %4, %5, %cst {dimension_numbers = #tpu.dot_dimension_numbers<[1], [0], [0], [1], [0, 0, 1, 1], [], []>} : vector<16x1024xbf16>, vector<1024x128xbf16>, vector<16x128xf32> -> vector<16x128xf32>
    %7 = arith.addf %3, %6 : vector<16x128xf32>
    %c0_6 = arith.constant 0 : index
    %c0_7 = arith.constant 0 : index
    %8 = vector.load %arg7[%c0_6, %c0_7] : memref<16x128xf32, #tpu.memory_space<vmem>>, vector<16x128xf32>
    tpu.vector_store %arg7[%c0_6, %c0_7], %7 {strides = array<i32>} : memref<16x128xf32, #tpu.memory_space<vmem>>, vector<16x128xf32>,
    %c1_i32 = arith.constant 1 : i32
    %9 = arith.cmpi eq, %arg1, %c1_i32 : i32
    %10 = arith.extui %9 : i1 to i32
    %c0_i32_8 = arith.constant 0 : i32
    %11 = arith.cmpi ne, %10, %c0_i32_8 : i32
    scf.if %11 {
      %c0_9 = arith.constant 0 : index
      %c0_10 = arith.constant 0 : index
      %12 = vector.load %arg7[%c0_9, %c0_10] : memref<16x128xf32, #tpu.memory_space<vmem>>, vector<16x128xf32>
      %cst_11 = arith.constant dense<0.000000e+00> : vector<128xf32>
      %13 = vector.multi_reduction <add>, %12, %cst_11 [0] : vector<16x128xf32> to vector<128xf32>
      %14 = vector.shape_cast %13 : vector<128xf32> to vector<1x128xf32>
      %cst_12 = arith.constant 6.250000e-02 : f32
      %15 = vector.broadcast %cst_12 : f32 to vector<1x128xf32>
      %16 = arith.mulf %14, %15 : vector<1x128xf32>
      %17 = vector.broadcast %16 : vector<1x128xf32> to vector<16x128xf32>
      %18 = arith.subf %12, %17 : vector<16x128xf32>
      %19 = arith.mulf %18, %18 : vector<16x128xf32>
      %cst_13 = arith.constant dense<0.000000e+00> : vector<128xf32>
      %20 = vector.multi_reduction <add>, %19, %cst_13 [0] : vector<16x128xf32> to vector<128xf32>
      %21 = vector.shape_cast %20 : vector<128xf32> to vector<1x128xf32>
      %cst_14 = arith.constant 6.250000e-02 : f32
      %22 = vector.broadcast %cst_14 : f32 to vector<1x128xf32>
      %23 = arith.mulf %21, %22 : vector<1x128xf32>
      %c0_15 = arith.constant 0 : index
      %c0_16 = arith.constant 0 : index
      %24 = vector.load %arg4[%c0_15, %c0_16] : memref<1x128xf32, #tpu.memory_space<vmem>>, vector<1x128xf32>
      %cst_17 = arith.constant 9.99999974E-6 : f32
      %25 = vector.broadcast %cst_17 : f32 to vector<1x128xf32>
      %26 = arith.addf %23, %25 : vector<1x128xf32>
      %27 = math.rsqrt %26 : vector<1x128xf32>
      %28 = arith.mulf %24, %27 : vector<1x128xf32>
      %29 = vector.broadcast %28 : vector<1x128xf32> to vector<16x128xf32>
      %30 = arith.mulf %18, %29 : vector<16x128xf32>
      %c0_18 = arith.constant 0 : index
      %c0_19 = arith.constant 0 : index
      %31 = vector.load %arg5[%c0_18, %c0_19] : memref<1x128xf32, #tpu.memory_space<vmem>>, vector<1x128xf32>
      %32 = vector.broadcast %31 : vector<1x128xf32> to vector<16x128xf32>
      %33 = arith.addf %30, %32 : vector<16x128xf32>
      %cst_20 = arith.constant 0.000000e+00 : f32
      %34 = vector.broadcast %cst_20 : f32 to vector<16x128xf32>
      %35 = arith.cmpf oge, %33, %34 : vector<16x128xf32>
      %cst_21 = arith.constant 2.000000e-01 : f32
      %36 = vector.broadcast %cst_21 : f32 to vector<16x128xf32>
      %37 = arith.mulf %36, %33 : vector<16x128xf32>
      %38 = arith.select %35, %33, %37 : vector<16x128xi1>, vector<16x128xf32>
      %39 = arith.truncf %38 : vector<16x128xf32> to vector<16x128xbf16>
      %c0_22 = arith.constant 0 : index
      %c0_23 = arith.constant 0 : index
      %40 = vector.load %arg6[%c0_22, %c0_23] : memref<16x128xbf16, #tpu.memory_space<vmem>>, vector<16x128xbf16>
      tpu.vector_store %arg6[%c0_22, %c0_23], %39 {strides = array<i32>} : memref<16x128xbf16, #tpu.memory_space<vmem>>, vector<16x128xbf16>,
    } else {
    }
    return
  }
  func.func @transform_0(%arg0: i32, %arg1: i32) -> (i32, i32) {
    %c0_i32 = arith.constant 0 : i32
    %c0_i32_0 = arith.constant 0 : i32
    return %c0_i32, %arg1 : i32, i32
  }
  func.func @transform_1(%arg0: i32, %arg1: i32) -> (i32, i32) {
    %c0_i32 = arith.constant 0 : i32
    return %arg1, %arg0 : i32, i32
  }
  func.func @transform_2(%arg0: i32, %arg1: i32) -> (i32, i32) {
    %c0_i32 = arith.constant 0 : i32
    %c0_i32_0 = arith.constant 0 : i32
    return %c0_i32, %arg0 : i32, i32
  }
  func.func @transform_3(%arg0: i32, %arg1: i32) -> (i32, i32) {
    %c0_i32 = arith.constant 0 : i32
    %c0_i32_0 = arith.constant 0 : i32
    return %c0_i32, %arg0 : i32, i32
  }
  func.func @transform_4(%arg0: i32, %arg1: i32) -> (i32, i32) {
    %c0_i32 = arith.constant 0 : i32
    %c0_i32_0 = arith.constant 0 : i32
    return %c0_i32, %arg0 : i32, i32
  }
}

module attributes {stable_mosaic.version = 11 : i64} {
  func.func @_final_stage_kernel(%arg0: i32, %arg1: memref<4x1024xbf16, #tpu.memory_space<vmem>>, %arg2: memref<1024x512xbf16, #tpu.memory_space<vmem>>, %arg3: memref<1x512xf32, #tpu.memory_space<vmem>>, %arg4: memref<1x512xf32, #tpu.memory_space<vmem>>, %arg5: memref<512x256xbf16, #tpu.memory_space<vmem>>, %arg6: memref<2x128xf32, #tpu.memory_space<vmem>>, %arg7: memref<4x512xf32, #tpu.memory_space<vmem>>) attributes {dimension_semantics = [#tpu.dimension_semantics<arbitrary>], iteration_bounds = array<i64: 4>, scalar_prefetch = 0 : i64, scratch_operands = 1 : i64, tpu.core_type = #tpu.core_type<tc>, window_params = [{transform_indices = @transform_0, window_bounds = array<i64: 4, 1024>}, {transform_indices = @transform_1, window_bounds = array<i64: 1024, 512>}, {pipeline_mode = #tpu.pipeline_mode<synchronous>, transform_indices = @transform_2, window_bounds = array<i64: 1, 512>}, {pipeline_mode = #tpu.pipeline_mode<synchronous>, transform_indices = @transform_3, window_bounds = array<i64: 1, 512>}, {pipeline_mode = #tpu.pipeline_mode<synchronous>, transform_indices = @transform_4, window_bounds = array<i64: 512, 256>}, {pipeline_mode = #tpu.pipeline_mode<synchronous>, transform_indices = @transform_5, window_bounds = array<i64: 2, 128>}]} {
    %c0_i32 = arith.constant 0 : i32
    %0 = arith.cmpi eq, %arg0, %c0_i32 : i32
    %1 = arith.extui %0 : i1 to i32
    %c0_i32_0 = arith.constant 0 : i32
    %2 = arith.cmpi ne, %1, %c0_i32_0 : i32
    scf.if %2 {
      %cst_9 = arith.constant 0.000000e+00 : f32
      %12 = vector.broadcast %cst_9 : f32 to vector<4x512xf32>
      %c0_10 = arith.constant 0 : index
      %c0_11 = arith.constant 0 : index
      %13 = vector.load %arg7[%c0_10, %c0_11] : memref<4x512xf32, #tpu.memory_space<vmem>>, vector<4x512xf32>
      tpu.vector_store %arg7[%c0_10, %c0_11], %12 {strides = array<i32>} : memref<4x512xf32, #tpu.memory_space<vmem>>, vector<4x512xf32>,
    } else {
    }
    %c0 = arith.constant 0 : index
    %c0_1 = arith.constant 0 : index
    %3 = vector.load %arg7[%c0, %c0_1] : memref<4x512xf32, #tpu.memory_space<vmem>>, vector<4x512xf32>
    %c0_2 = arith.constant 0 : index
    %c0_3 = arith.constant 0 : index
    %4 = vector.load %arg1[%c0_2, %c0_3] : memref<4x1024xbf16, #tpu.memory_space<vmem>>, vector<4x1024xbf16>
    %c0_4 = arith.constant 0 : index
    %c0_5 = arith.constant 0 : index
    %5 = vector.load %arg2[%c0_4, %c0_5] : memref<1024x512xbf16, #tpu.memory_space<vmem>>, vector<1024x512xbf16>
    %cst = arith.constant dense<0.000000e+00> : vector<4x512xf32>
    %6 = tpu.matmul %4, %5, %cst {dimension_numbers = #tpu.dot_dimension_numbers<[1], [0], [0], [1], [0, 0, 1, 1], [], []>} : vector<4x1024xbf16>, vector<1024x512xbf16>, vector<4x512xf32> -> vector<4x512xf32>
    %7 = arith.addf %3, %6 : vector<4x512xf32>
    %c0_6 = arith.constant 0 : index
    %c0_7 = arith.constant 0 : index
    %8 = vector.load %arg7[%c0_6, %c0_7] : memref<4x512xf32, #tpu.memory_space<vmem>>, vector<4x512xf32>
    tpu.vector_store %arg7[%c0_6, %c0_7], %7 {strides = array<i32>} : memref<4x512xf32, #tpu.memory_space<vmem>>, vector<4x512xf32>,
    %c3_i32 = arith.constant 3 : i32
    %9 = arith.cmpi eq, %arg0, %c3_i32 : i32
    %10 = arith.extui %9 : i1 to i32
    %c0_i32_8 = arith.constant 0 : i32
    %11 = arith.cmpi ne, %10, %c0_i32_8 : i32
    scf.if %11 {
      %c0_9 = arith.constant 0 : index
      %c0_10 = arith.constant 0 : index
      %12 = vector.load %arg7[%c0_9, %c0_10] : memref<4x512xf32, #tpu.memory_space<vmem>>, vector<4x512xf32>
      %cst_11 = arith.constant dense<0.000000e+00> : vector<512xf32>
      %13 = vector.multi_reduction <add>, %12, %cst_11 [0] : vector<4x512xf32> to vector<512xf32>
      %14 = vector.shape_cast %13 : vector<512xf32> to vector<1x512xf32>
      %cst_12 = arith.constant 2.500000e-01 : f32
      %15 = vector.broadcast %cst_12 : f32 to vector<1x512xf32>
      %16 = arith.mulf %14, %15 : vector<1x512xf32>
      %17 = vector.broadcast %16 : vector<1x512xf32> to vector<4x512xf32>
      %18 = arith.subf %12, %17 : vector<4x512xf32>
      %19 = arith.mulf %18, %18 : vector<4x512xf32>
      %cst_13 = arith.constant dense<0.000000e+00> : vector<512xf32>
      %20 = vector.multi_reduction <add>, %19, %cst_13 [0] : vector<4x512xf32> to vector<512xf32>
      %21 = vector.shape_cast %20 : vector<512xf32> to vector<1x512xf32>
      %cst_14 = arith.constant 2.500000e-01 : f32
      %22 = vector.broadcast %cst_14 : f32 to vector<1x512xf32>
      %23 = arith.mulf %21, %22 : vector<1x512xf32>
      %c0_15 = arith.constant 0 : index
      %c0_16 = arith.constant 0 : index
      %24 = vector.load %arg3[%c0_15, %c0_16] : memref<1x512xf32, #tpu.memory_space<vmem>>, vector<1x512xf32>
      %cst_17 = arith.constant 9.99999974E-6 : f32
      %25 = vector.broadcast %cst_17 : f32 to vector<1x512xf32>
      %26 = arith.addf %23, %25 : vector<1x512xf32>
      %27 = math.rsqrt %26 : vector<1x512xf32>
      %28 = arith.mulf %24, %27 : vector<1x512xf32>
      %29 = vector.broadcast %28 : vector<1x512xf32> to vector<4x512xf32>
      %30 = arith.mulf %18, %29 : vector<4x512xf32>
      %c0_18 = arith.constant 0 : index
      %c0_19 = arith.constant 0 : index
      %31 = vector.load %arg4[%c0_18, %c0_19] : memref<1x512xf32, #tpu.memory_space<vmem>>, vector<1x512xf32>
      %32 = vector.broadcast %31 : vector<1x512xf32> to vector<4x512xf32>
      %33 = arith.addf %30, %32 : vector<4x512xf32>
      %cst_20 = arith.constant 0.000000e+00 : f32
      %34 = vector.broadcast %cst_20 : f32 to vector<4x512xf32>
      %35 = arith.cmpf oge, %33, %34 : vector<4x512xf32>
      %cst_21 = arith.constant 2.000000e-01 : f32
      %36 = vector.broadcast %cst_21 : f32 to vector<4x512xf32>
      %37 = arith.mulf %36, %33 : vector<4x512xf32>
      %38 = arith.select %35, %33, %37 : vector<4x512xi1>, vector<4x512xf32>
      %39 = arith.truncf %38 : vector<4x512xf32> to vector<4x512xbf16>
      %c0_22 = arith.constant 0 : index
      %c0_23 = arith.constant 0 : index
      %40 = vector.load %arg5[%c0_22, %c0_23] : memref<512x256xbf16, #tpu.memory_space<vmem>>, vector<512x256xbf16>
      %cst_24 = arith.constant dense<0.000000e+00> : vector<4x256xf32>
      %41 = tpu.matmul %39, %40, %cst_24 {dimension_numbers = #tpu.dot_dimension_numbers<[1], [0], [0], [1], [0, 0, 1, 1], [], []>} : vector<4x512xbf16>, vector<512x256xbf16>, vector<4x256xf32> -> vector<4x256xf32>
      %42 = vector.extract_strided_slice %41 {offsets = [0, 0], sizes = [1, 128], strides = [1, 1]} : vector<4x256xf32> to vector<1x128xf32>
      %43 = vector.extract_strided_slice %41 {offsets = [1, 128], sizes = [1, 128], strides = [1, 1]} : vector<4x256xf32> to vector<1x128xf32>
      %44 = arith.addf %42, %43 : vector<1x128xf32>
      %45 = vector.extract_strided_slice %41 {offsets = [2, 0], sizes = [1, 128], strides = [1, 1]} : vector<4x256xf32> to vector<1x128xf32>
      %46 = vector.extract_strided_slice %41 {offsets = [3, 128], sizes = [1, 128], strides = [1, 1]} : vector<4x256xf32> to vector<1x128xf32>
      %47 = arith.addf %45, %46 : vector<1x128xf32>
      %48 = tpu.concatenate %44, %47 in 0 : vector<1x128xf32>, vector<1x128xf32> -> vector<2x128xf32>
      %cst_25 = arith.constant 0.000000e+00 : f32
      %49 = vector.broadcast %cst_25 : f32 to vector<2x128xf32>
      %50 = arith.subf %49, %48 : vector<2x128xf32>
      %51 = math.exp %50 : vector<2x128xf32>
      %cst_26 = arith.constant 1.000000e+00 : f32
      %52 = vector.broadcast %cst_26 : f32 to vector<2x128xf32>
      %53 = arith.addf %52, %51 : vector<2x128xf32>
      %54 = tpu.reciprocal %53 {approx = true} : vector<2x128xf32> -> vector<2x128xf32>
      %c0_27 = arith.constant 0 : index
      %c0_28 = arith.constant 0 : index
      %55 = vector.load %arg6[%c0_27, %c0_28] : memref<2x128xf32, #tpu.memory_space<vmem>>, vector<2x128xf32>
      tpu.vector_store %arg6[%c0_27, %c0_28], %54 {strides = array<i32>} : memref<2x128xf32, #tpu.memory_space<vmem>>, vector<2x128xf32>,
    } else {
    }
    return
  }
  func.func @transform_0(%arg0: i32) -> (i32, i32) {
    %c0_i32 = arith.constant 0 : i32
    %c0_i32_0 = arith.constant 0 : i32
    return %c0_i32, %arg0 : i32, i32
  }
  func.func @transform_1(%arg0: i32) -> (i32, i32) {
    %c0_i32 = arith.constant 0 : i32
    %c0_i32_0 = arith.constant 0 : i32
    return %arg0, %c0_i32 : i32, i32
  }
  func.func @transform_2(%arg0: i32) -> (i32, i32) {
    %c0_i32 = arith.constant 0 : i32
    %c0_i32_0 = arith.constant 0 : i32
    %c0_i32_1 = arith.constant 0 : i32
    return %c0_i32, %c0_i32_0 : i32, i32
  }
  func.func @transform_3(%arg0: i32) -> (i32, i32) {
    %c0_i32 = arith.constant 0 : i32
    %c0_i32_0 = arith.constant 0 : i32
    %c0_i32_1 = arith.constant 0 : i32
    return %c0_i32, %c0_i32_0 : i32, i32
  }
  func.func @transform_4(%arg0: i32) -> (i32, i32) {
    %c0_i32 = arith.constant 0 : i32
    %c0_i32_0 = arith.constant 0 : i32
    %c0_i32_1 = arith.constant 0 : i32
    return %c0_i32, %c0_i32_0 : i32, i32
  }
  func.func @transform_5(%arg0: i32) -> (i32, i32) {
    %c0_i32 = arith.constant 0 : i32
    %c0_i32_0 = arith.constant 0 : i32
    %c0_i32_1 = arith.constant 0 : i32
    return %c0_i32, %c0_i32_0 : i32, i32
  }
}

</mosaic_0001>

<bundles_post_ra>
// kernel: discriminator.4
= control target key start
LH: loop header
LB: loop body
LE: loop exit
PB: predicated region body
PF: predicated region fallthrough
CT: control target
= control target key end

     0   :  { %7 = vsyncpa [#allocation4], 0  ;;  %s908_s12 = smov [#allocation3]   ;;  %s909_s14 = smov 64   ;;  %s1025_s0 = inlined_call_operand.vmem [shape: bf16[256,128], index: 0, kind: input, shape index: {}]   ;;  %s1026_s1 = inlined_call_operand.hbm [shape: bf16[128,128], index: 1, kind: input, shape index: {}]   ;;  %s1027_s2 = inlined_call_operand.vmem [shape: bf16[256,128], index: 2, kind: output, shape index: {}]  }
   0x1   :  { %s14_s11 = sshll.u32 %s1026_s1, 4  ;;  %s16_s13 = sshll.u32 %s908_s12, 4  ;;  %s15_s11 = int_to_ptr.hbm [resolvable:$true] %s14_s11  ;;  %s17_s13 = int_to_ptr.vmem [resolvable:$true] %s16_s13 }
   0x2   :  { %s910_s15 = smov 4  }
   0x3   :  { %22 = dma.hbm_to_vmem [thread:$0]  %s15_s11, 1024, %s17_s13, [#allocation4], %s909_s14, %s909_s14, %s910_s15  }
   0x4   :  { %906 = dma.done.wait [#allocation4], 1024  }
   0x5   :  { %907 = vsyncadd [#allocation4], 4294966272  ;;  %v759_v0 = vld [vmem:[#allocation3 + $0x38] sm:$0xff]  ;;  %v758_v1 = vld [vmem:[#allocation3 + $0x30] sm:$0xff] }
   0x6   :  { %287 = vmatpush.bf16.msra.mxu0 %v759_v0  ;;  %855 = vmatpush.bf16.msra.mxu1 %v759_v0  ;;  %v757_v2 = vld [vmem:[#allocation3 + $0x28] sm:$0xff]  ;;  %v756_v3 = vld [vmem:[#allocation3 + $0x20] sm:$0xff]  ;;  %v755_v4 = vld [vmem:[#allocation3 + $0x18] sm:$0xff] }
   0x7   :  { %856 = vmatpush.bf16.msra.mxu2 %v759_v0  ;;  %857 = vmatpush.bf16.msra.mxu3 %v759_v0  ;;  %v754_v5 = vld [vmem:[#allocation3 + $0x10] sm:$0xff]  ;;  %v753_v6 = vld [vmem:[#allocation3 + $0x8] sm:$0xff]  ;;  %v752_v7 = vld [vmem:[#allocation3] sm:$0xff] }
   0x8   :  { %v736_v8 = vld [vmem:[%s1025_s0] sm:$0xff]  ;;  %v737_v12 = vld [vmem:[%s1025_s0 + $0x8] sm:$0xff]  ;;  %v738_v16 = vld [vmem:[%s1025_s0 + $0x10] sm:$0xff] }
   0x9   :  { %v740_v9 = vld [vmem:[%s1025_s0 + $0x20] sm:$0xff]  ;;  %v741_v13 = vld [vmem:[%s1025_s0 + $0x28] sm:$0xff]  ;;  %v742_v17 = vld [vmem:[%s1025_s0 + $0x30] sm:$0xff] }
   0xa   :  { %288 = vmatpush.bf16.msra.mxu0 %v758_v1  ;;  %858 = vmatpush.bf16.msra.mxu1 %v758_v1  ;;  %v744_v10 = vld [vmem:[%s1025_s0 + $0x40] sm:$0xff]  ;;  %v745_v14 = vld [vmem:[%s1025_s0 + $0x48] sm:$0xff]  ;;  %v746_v18 = vld [vmem:[%s1025_s0 + $0x50] sm:$0xff] }
   0xb   :  { %859 = vmatpush.bf16.msra.mxu2 %v758_v1  ;;  %860 = vmatpush.bf16.msra.mxu3 %v758_v1  ;;  %v748_v11 = vld [vmem:[%s1025_s0 + $0x60] sm:$0xff]  ;;  %v749_v15 = vld [vmem:[%s1025_s0 + $0x68] sm:$0xff]  ;;  %v750_v19 = vld [vmem:[%s1025_s0 + $0x70] sm:$0xff] }
   0xc   :  { %v739_v20 = vld [vmem:[%s1025_s0 + $0x18] sm:$0xff] }
   0xd   :  { %v743_v21 = vld [vmem:[%s1025_s0 + $0x38] sm:$0xff] }
   0xe   :  { %289 = vmatpush.bf16.msra.mxu0 %v757_v2  ;;  %861 = vmatpush.bf16.msra.mxu1 %v757_v2  ;;  %v747_v22 = vld [vmem:[%s1025_s0 + $0x58] sm:$0xff] }
   0xf   :  { %862 = vmatpush.bf16.msra.mxu2 %v757_v2  ;;  %863 = vmatpush.bf16.msra.mxu3 %v757_v2  ;;  %v751_v23 = vld [vmem:[%s1025_s0 + $0x78] sm:$0xff] }
  0x12   :  { %290 = vmatpush.bf16.msra.mxu0 %v756_v3  ;;  %864 = vmatpush.bf16.msra.mxu1 %v756_v3 }
  0x13   :  { %865 = vmatpush.bf16.msra.mxu2 %v756_v3  ;;  %866 = vmatpush.bf16.msra.mxu3 %v756_v3 }
  0x16   :  { %291 = vmatpush.bf16.msra.mxu0 %v755_v4  ;;  %867 = vmatpush.bf16.msra.mxu1 %v755_v4 }
  0x17   :  { %868 = vmatpush.bf16.msra.mxu2 %v755_v4  ;;  %869 = vmatpush.bf16.msra.mxu3 %v755_v4 }
  0x1a   :  { %292 = vmatpush.bf16.msra.mxu0 %v754_v5  ;;  %870 = vmatpush.bf16.msra.mxu1 %v754_v5 }
  0x1b   :  { %871 = vmatpush.bf16.msra.mxu2 %v754_v5  ;;  %872 = vmatpush.bf16.msra.mxu3 %v754_v5 }
  0x1e   :  { %293 = vmatpush.bf16.msra.mxu0 %v753_v6  ;;  %873 = vmatpush.bf16.msra.mxu1 %v753_v6 }
  0x1f   :  { %874 = vmatpush.bf16.msra.mxu2 %v753_v6  ;;  %875 = vmatpush.bf16.msra.mxu3 %v753_v6 }
  0x22   :  { %294 = vmatpush.bf16.msra.mxu0 %v752_v7  ;;  %876 = vmatpush.bf16.msra.mxu1 %v752_v7 }
  0x23   :  { %877 = vmatpush.bf16.msra.mxu2 %v752_v7  ;;  %878 = vmatpush.bf16.msra.mxu3 %v752_v7 }
  0x25   :  { %295 = vmatmul.bf16.vlgmr.msra.gmra.mxu0 %v736_v8  ;;  %315 = vmatmul.bf16.vlgmr.msra.gmra.mxu1 %v740_v9 }
  0x26   :  { %335 = vmatmul.bf16.vlgmr.msra.gmra.mxu2 %v744_v10  ;;  %355 = vmatmul.bf16.vlgmr.msra.gmra.mxu3 %v748_v11 }
  0x35   :  { %300 = vmatmul.bf16.gmra.mxu0 %v737_v12  ;;  %320 = vmatmul.bf16.gmra.mxu1 %v741_v13 }
  0x36   :  { %340 = vmatmul.bf16.gmra.mxu2 %v745_v14  ;;  %360 = vmatmul.bf16.gmra.mxu3 %v749_v15 }
  0x45   :  { %305 = vmatmul.bf16.gmra.mxu0 %v738_v16  ;;  %325 = vmatmul.bf16.gmra.mxu1 %v742_v17 }
  0x46   :  { %345 = vmatmul.bf16.gmra.mxu2 %v746_v18  ;;  %365 = vmatmul.bf16.gmra.mxu3 %v750_v19 }
  0x55   :  { %310 = vmatmul.bf16.gmra.mxu0 %v739_v20  ;;  %330 = vmatmul.bf16.gmra.mxu1 %v743_v21 }
  0x56   :  { %350 = vmatmul.bf16.gmra.mxu2 %v747_v22  ;;  %370 = vmatmul.bf16.gmra.mxu3 %v751_v23 }
  0xa2   :  { %v296_v24 = vpop.f32.mrf.mxu0  ;;  %v316_v25 = vpop.f32.mrf.mxu1 }
  0xa3   :  { %v507_v26 = vmul.f32 0.2, %v296_v24  ;;  %v515_v27 = vmul.f32 0.2, %v316_v25  ;;  %vm475_vm0 = vcmp.ge.f32.partialorder %v296_v24, 0.0  ;;  %vm483_vm1 = vcmp.ge.f32.partialorder %v316_v25, 0.0 }
  0xa5   :  { %v539_v34 = vsel %vm475_vm0, %v296_v24, %v507_v26  ;;  %v547_v35 = vsel %vm483_vm1, %v316_v25, %v515_v27 }
  0xa9   :  { %v336_v28 = vpop.f32.mrf.mxu2  ;;  %v356_v29 = vpop.f32.mrf.mxu3 }
  0xaa   :  { %v298_v30 = vpop.f32.mrf.mxu0  ;;  %v318_v31 = vpop.f32.mrf.mxu1  ;;  %v523_v40 = vmul.f32 0.2, %v336_v28  ;;  %v531_v41 = vmul.f32 0.2, %v356_v29  ;;  %vm491_vm4 = vcmp.ge.f32.partialorder %v336_v28, 0.0  ;;  %vm499_vm5 = vcmp.ge.f32.partialorder %v356_v29, 0.0 }
  0xab   :  { %vm476_vm2 = vcmp.ge.f32.partialorder %v298_v30, 0.0  ;;  %v508_v32 = vmul.f32 0.2, %v298_v30  ;;  %vm484_vm3 = vcmp.ge.f32.partialorder %v318_v31, 0.0  ;;  %v516_v33 = vmul.f32 0.2, %v318_v31 }
  0xac   :  { %v555_v48 = vsel %vm491_vm4, %v336_v28, %v523_v40  ;;  %v563_v49 = vsel %vm499_vm5, %v356_v29, %v531_v41 }
  0xad   :  { %v540_v36 = vsel %vm476_vm2, %v298_v30, %v508_v32  ;;  %v548_v37 = vsel %vm484_vm3, %v318_v31, %v516_v33 }
  0xae   :  { %v763_v38 = vpack.c.bf16 %v540_v36, %v539_v34  ;;  %v783_v39 = vpack.c.bf16 %v548_v37, %v547_v35 }
  0xb0   :  { %764 = vst [vmem:[%s1027_s2] sm:$0xff] %v763_v38  }
  0xb1   :  { %843 = vst [vmem:[%s1027_s2 + $0x20] sm:$0xff] %v783_v39   ;;  %v338_v42 = vpop.f32.mrf.mxu2  ;;  %v358_v43 = vpop.f32.mrf.mxu3 }
  0xb2   :  { %vm492_vm6 = vcmp.ge.f32.partialorder %v338_v42, 0.0  ;;  %v524_v44 = vmul.f32 0.2, %v338_v42  ;;  %vm500_vm7 = vcmp.ge.f32.partialorder %v358_v43, 0.0  ;;  %v532_v45 = vmul.f32 0.2, %v358_v43  ;;  %v301_v46 = vpop.f32.mrf.mxu0  ;;  %v321_v47 = vpop.f32.mrf.mxu1 }
  0xb3   :  { %v509_v54 = vmul.f32 0.2, %v301_v46  ;;  %v517_v55 = vmul.f32 0.2, %v321_v47  ;;  %vm477_vm8 = vcmp.ge.f32.partialorder %v301_v46, 0.0  ;;  %vm485_vm9 = vcmp.ge.f32.partialorder %v321_v47, 0.0 }
  0xb4   :  { %v556_v50 = vsel %vm492_vm6, %v338_v42, %v524_v44  ;;  %v564_v51 = vsel %vm500_vm7, %v358_v43, %v532_v45 }
  0xb5   :  { %v803_v52 = vpack.c.bf16 %v556_v50, %v555_v48  ;;  %v823_v53 = vpack.c.bf16 %v564_v51, %v563_v49  ;;  %v541_v62 = vsel %vm477_vm8, %v301_v46, %v509_v54  ;;  %v549_v63 = vsel %vm485_vm9, %v321_v47, %v517_v55 }
  0xb7   :  { %847 = vst [vmem:[%s1027_s2 + $0x40] sm:$0xff] %v803_v52  }
  0xb8   :  { %851 = vst [vmem:[%s1027_s2 + $0x60] sm:$0xff] %v823_v53  }
  0xb9   :  { %v341_v56 = vpop.f32.mrf.mxu2  ;;  %v361_v57 = vpop.f32.mrf.mxu3 }
  0xba   :  { %v303_v58 = vpop.f32.mrf.mxu0  ;;  %v323_v59 = vpop.f32.mrf.mxu1  ;;  %v525_v4 = vmul.f32 0.2, %v341_v56  ;;  %v533_v5 = vmul.f32 0.2, %v361_v57  ;;  %vm493_vm12 = vcmp.ge.f32.partialorder %v341_v56, 0.0  ;;  %vm501_vm13 = vcmp.ge.f32.partialorder %v361_v57, 0.0 }
  0xbb   :  { %vm478_vm10 = vcmp.ge.f32.partialorder %v303_v58, 0.0  ;;  %v510_v60 = vmul.f32 0.2, %v303_v58  ;;  %vm486_vm11 = vcmp.ge.f32.partialorder %v323_v59, 0.0  ;;  %v518_v61 = vmul.f32 0.2, %v323_v59 }
  0xbc   :  { %v557_v12 = vsel %vm493_vm12, %v341_v56, %v525_v4  ;;  %v565_v13 = vsel %vm501_vm13, %v361_v57, %v533_v5 }
  0xbd   :  { %v542_v0 = vsel %vm478_vm10, %v303_v58, %v510_v60  ;;  %v550_v1 = vsel %vm486_vm11, %v323_v59, %v518_v61 }
  0xbe   :  { %v768_v2 = vpack.c.bf16 %v542_v0, %v541_v62  ;;  %v788_v3 = vpack.c.bf16 %v550_v1, %v549_v63 }
  0xc0   :  { %840 = vst [vmem:[%s1027_s2 + $0x8] sm:$0xff] %v768_v2  }
  0xc1   :  { %844 = vst [vmem:[%s1027_s2 + $0x28] sm:$0xff] %v788_v3   ;;  %v343_v6 = vpop.f32.mrf.mxu2  ;;  %v363_v7 = vpop.f32.mrf.mxu3 }
  0xc2   :  { %vm494_vm14 = vcmp.ge.f32.partialorder %v343_v6, 0.0  ;;  %v526_v8 = vmul.f32 0.2, %v343_v6  ;;  %vm502_vm15 = vcmp.ge.f32.partialorder %v363_v7, 0.0  ;;  %v534_v9 = vmul.f32 0.2, %v363_v7  ;;  %v306_v10 = vpop.f32.mrf.mxu0  ;;  %v326_v11 = vpop.f32.mrf.mxu1 }
  0xc3   :  { %v511_v18 = vmul.f32 0.2, %v306_v10  ;;  %v519_v19 = vmul.f32 0.2, %v326_v11  ;;  %vm479_vm0 = vcmp.ge.f32.partialorder %v306_v10, 0.0  ;;  %vm487_vm1 = vcmp.ge.f32.partialorder %v326_v11, 0.0 }
  0xc4   :  { %v558_v14 = vsel %vm494_vm14, %v343_v6, %v526_v8  ;;  %v566_v15 = vsel %vm502_vm15, %v363_v7, %v534_v9 }
  0xc5   :  { %v808_v16 = vpack.c.bf16 %v558_v14, %v557_v12  ;;  %v828_v17 = vpack.c.bf16 %v566_v15, %v565_v13  ;;  %v543_v26 = vsel %vm479_vm0, %v306_v10, %v511_v18  ;;  %v551_v27 = vsel %vm487_vm1, %v326_v11, %v519_v19 }
  0xc7   :  { %848 = vst [vmem:[%s1027_s2 + $0x48] sm:$0xff] %v808_v16  }
  0xc8   :  { %852 = vst [vmem:[%s1027_s2 + $0x68] sm:$0xff] %v828_v17  }
  0xc9   :  { %v346_v20 = vpop.f32.mrf.mxu2  ;;  %v366_v21 = vpop.f32.mrf.mxu3 }
  0xca   :  { %v308_v22 = vpop.f32.mrf.mxu0  ;;  %v328_v23 = vpop.f32.mrf.mxu1  ;;  %v527_v32 = vmul.f32 0.2, %v346_v20  ;;  %v535_v33 = vmul.f32 0.2, %v366_v21  ;;  %vm495_vm4 = vcmp.ge.f32.partialorder %v346_v20, 0.0  ;;  %vm503_vm5 = vcmp.ge.f32.partialorder %v366_v21, 0.0 }
  0xcb   :  { %vm480_vm2 = vcmp.ge.f32.partialorder %v308_v22, 0.0  ;;  %v512_v24 = vmul.f32 0.2, %v308_v22  ;;  %vm488_vm3 = vcmp.ge.f32.partialorder %v328_v23, 0.0  ;;  %v520_v25 = vmul.f32 0.2, %v328_v23 }
  0xcc   :  { %v559_v40 = vsel %vm495_vm4, %v346_v20, %v527_v32  ;;  %v567_v41 = vsel %vm503_vm5, %v366_v21, %v535_v33 }
  0xcd   :  { %v544_v28 = vsel %vm480_vm2, %v308_v22, %v512_v24  ;;  %v552_v29 = vsel %vm488_vm3, %v328_v23, %v520_v25 }
  0xce   :  { %v773_v30 = vpack.c.bf16 %v544_v28, %v543_v26  ;;  %v793_v31 = vpack.c.bf16 %v552_v29, %v551_v27 }
  0xd0   :  { %841 = vst [vmem:[%s1027_s2 + $0x10] sm:$0xff] %v773_v30  }
  0xd1   :  { %845 = vst [vmem:[%s1027_s2 + $0x30] sm:$0xff] %v793_v31   ;;  %v348_v34 = vpop.f32.mrf.mxu2  ;;  %v368_v35 = vpop.f32.mrf.mxu3 }
  0xd2   :  { %vm496_vm6 = vcmp.ge.f32.partialorder %v348_v34, 0.0  ;;  %v528_v36 = vmul.f32 0.2, %v348_v34  ;;  %vm504_vm7 = vcmp.ge.f32.partialorder %v368_v35, 0.0  ;;  %v536_v37 = vmul.f32 0.2, %v368_v35  ;;  %v311_v38 = vpop.f32.mrf.mxu0  ;;  %v331_v39 = vpop.f32.mrf.mxu1 }
  0xd3   :  { %v513_v46 = vmul.f32 0.2, %v311_v38  ;;  %v521_v47 = vmul.f32 0.2, %v331_v39  ;;  %vm481_vm8 = vcmp.ge.f32.partialorder %v311_v38, 0.0  ;;  %vm489_vm9 = vcmp.ge.f32.partialorder %v331_v39, 0.0 }
  0xd4   :  { %v560_v42 = vsel %vm496_vm6, %v348_v34, %v528_v36  ;;  %v568_v43 = vsel %vm504_vm7, %v368_v35, %v536_v37 }
  0xd5   :  { %v813_v44 = vpack.c.bf16 %v560_v42, %v559_v40  ;;  %v833_v45 = vpack.c.bf16 %v568_v43, %v567_v41  ;;  %v545_v54 = vsel %vm481_vm8, %v311_v38, %v513_v46  ;;  %v553_v55 = vsel %vm489_vm9, %v331_v39, %v521_v47 }
  0xd7   :  { %849 = vst [vmem:[%s1027_s2 + $0x50] sm:$0xff] %v813_v44  }
  0xd8   :  { %853 = vst [vmem:[%s1027_s2 + $0x70] sm:$0xff] %v833_v45  }
  0xd9   :  { %v351_v48 = vpop.f32.mrf.mxu2  ;;  %v371_v49 = vpop.f32.mrf.mxu3 }
  0xda   :  { %v313_v50 = vpop.f32.mrf.mxu0  ;;  %v333_v51 = vpop.f32.mrf.mxu1  ;;  %v529_v60 = vmul.f32 0.2, %v351_v48  ;;  %v537_v61 = vmul.f32 0.2, %v371_v49  ;;  %vm497_vm12 = vcmp.ge.f32.partialorder %v351_v48, 0.0  ;;  %vm505_vm13 = vcmp.ge.f32.partialorder %v371_v49, 0.0 }
  0xdb   :  { %vm482_vm10 = vcmp.ge.f32.partialorder %v313_v50, 0.0  ;;  %v514_v52 = vmul.f32 0.2, %v313_v50  ;;  %vm490_vm11 = vcmp.ge.f32.partialorder %v333_v51, 0.0  ;;  %v522_v53 = vmul.f32 0.2, %v333_v51 }
  0xdc   :  { %v561_v2 = vsel %vm497_vm12, %v351_v48, %v529_v60  ;;  %v569_v3 = vsel %vm505_vm13, %v371_v49, %v537_v61 }
  0xdd   :  { %v546_v56 = vsel %vm482_vm10, %v313_v50, %v514_v52  ;;  %v554_v57 = vsel %vm490_vm11, %v333_v51, %v522_v53 }
  0xde   :  { %v778_v58 = vpack.c.bf16 %v546_v56, %v545_v54  ;;  %v798_v59 = vpack.c.bf16 %v554_v57, %v553_v55 }
  0xe0   :  { %842 = vst [vmem:[%s1027_s2 + $0x18] sm:$0xff] %v778_v58  }
  0xe1   :  { %846 = vst [vmem:[%s1027_s2 + $0x38] sm:$0xff] %v798_v59   ;;  %v353_v62 = vpop.f32.mrf.mxu2  ;;  %v373_v63 = vpop.f32.mrf.mxu3 }
  0xe2   :  { %vm498_vm14 = vcmp.ge.f32.partialorder %v353_v62, 0.0  ;;  %v530_v0 = vmul.f32 0.2, %v353_v62  ;;  %vm506_vm15 = vcmp.ge.f32.partialorder %v373_v63, 0.0  ;;  %v538_v1 = vmul.f32 0.2, %v373_v63 }
  0xe4   :  { %v562_v4 = vsel %vm498_vm14, %v353_v62, %v530_v0  ;;  %v570_v5 = vsel %vm506_vm15, %v373_v63, %v538_v1 }
  0xe5   :  { %v818_v6 = vpack.c.bf16 %v562_v4, %v561_v2  ;;  %v838_v7 = vpack.c.bf16 %v570_v5, %v569_v3 }
  0xe7   :  { %850 = vst [vmem:[%s1027_s2 + $0x58] sm:$0xff] %v818_v6  }
  0xe8   :  { %854 = vst [vmem:[%s1027_s2 + $0x78] sm:$0xff] %v838_v7  }
  0xe9   :  { %639 = vsyncpa [#allocation4], 1 }

// kernel: discriminator.5
= control target key start
LH: loop header
LB: loop body
LE: loop exit
PB: predicated region body
PF: predicated region fallthrough
CT: control target
= control target key end

     0   :  { %s2191_s15 = smov 0   ;;  %s2193_s16 = smov 0   ;;  %s2515_s0 = inlined_call_operand.vmem [shape: bf16[64,2048], index: 0, kind: input, shape index: {}]   ;;  %s2516_s1 = inlined_call_operand.vmem [shape: bf16[2048,128], index: 1, kind: input, shape index: {}]   ;;  %s2517_s2 = inlined_call_operand.vmem [shape: f32[1,128], index: 2, kind: input, shape index: {}]   ;;  %s2518_s3 = inlined_call_operand.vmem [shape: f32[1,128], index: 3, kind: input, shape index: {}]   ;;  %s2519_s4 = inlined_call_operand.vmem [shape: bf16[64,128], index: 4, kind: output, shape index: {}]  }
   0x1   :  { %s2195_s17 = smov 0   ;;  %s2197_s18 = smov 0  }
   0x2   :  { %s2199_s19 = smov 0  }
   0x3 LB: > { %s23_s20 = sadd.s32 1, %s2159_s18  ;;  %p40_p1 = scmp.ne.s32.totalorder %s2151_s16, %s2147_s15  ;;  %s2163_s19 = sphi %s2199_s19, %s14_s19   ;;  %s2159_s18 = sphi %s2197_s18, %s2523_s18   ;;  %s2155_s17 = sphi %s2195_s17, %s2522_s17   ;;  %s2151_s16 = sphi %s2193_s16, %s2521_s16   ;;  %s2147_s15 = sphi %s2191_s15, %s2520_s15  }
   0x4   : > { %p24_p0 = scmp.ge.s32.totalorder %s23_s20, 2  ;;  %p41_p2 = scmp.eq.s32.totalorder %s2163_s19, 0 }
   0x5   : > { %s33_s22 = sadd.s32 1, %s2151_s16  ;;  %p1564_p5 = scmp.ge.s32.totalorder %s2163_s19, 2 }
   0x6   : > { %s2525_s20 = smov (%p24_p0, %s23_s20), 0  ;;  %p42_p3 = por %p41_p2, %p40_p1 }
   0x7   : > { %s30_s21 = ssub.s32 %s2159_s18, %s2525_s20  ;;  %184 = sbr.rel (%p1564_p5) target bundleno = 48 (0x30), region = 24 }
   0x8   : > { %p31_p4 = scmp.eq.s32.totalorder %s30_s21, 0 }
   0xa   : > { %s2226_s23 = scalar_select %p31_p4, %s2151_s16, %s33_s22  }
   0xc   : > { %187 = sbr.rel (!%p42_p3) target bundleno = 48 (0x30), region = 28  ;;  %s189_s24 = sand.u32 (%p42_p3), 1, %s2151_s16  }
   0xd   : > { %s1961_s25 = sshll.u32 (%p42_p3), %s2159_s18, 5  ;;  %s1565_s26 = sshll.u32 (%p42_p3), %s189_s24, 8 }
   0xe   : > { %s2234_s29 = scalar_lea.vmem (%p42_p3), %s2515_s0, %s1961_s25  ;;  %s2239_s30 = scalar_lea.vmem (%p42_p3), [#allocation3], %s1565_s26 }
   0xf   : > { %v207_v0 = vld [vmem:[%s2234_s29] sm:$0xff] (%p42_p3)  ;;  %v209_v1 = vld [vmem:[%s2234_s29 + $0x8] sm:$0xff] (%p42_p3)  ;;  %v211_v2 = vld [vmem:[%s2234_s29 + $0x10] sm:$0xff] (%p42_p3) }
  0x10   : > { %208 = vst [vmem:[%s2239_s30] sm:$0xff] (%p42_p3), %v207_v0  ;;  %v213_v3 = vld [vmem:[%s2234_s29 + $0x18] sm:$0xff] (%p42_p3)  ;;  %v215_v4 = vld [vmem:[%s2234_s29 + $0x40] sm:$0xff] (%p42_p3)  ;;  %v217_v5 = vld [vmem:[%s2234_s29 + $0x48] sm:$0xff] (%p42_p3) }
  0x11   : > { %210 = vst [vmem:[%s2239_s30 + $0x8] sm:$0xff] %v209_v1  ;;  %v219_v6 = vld [vmem:[%s2234_s29 + $0x50] sm:$0xff]  ;;  %v221_v7 = vld [vmem:[%s2234_s29 + $0x58] sm:$0xff]  ;;  %v223_v8 = vld [vmem:[%s2234_s29 + $0x80] sm:$0xff] }
  0x12   : > { %212 = vst [vmem:[%s2239_s30 + $0x10] sm:$0xff] %v211_v2  ;;  %v225_v9 = vld [vmem:[%s2234_s29 + $0x88] sm:$0xff]  ;;  %v227_v10 = vld [vmem:[%s2234_s29 + $0x90] sm:$0xff]  ;;  %v229_v11 = vld [vmem:[%s2234_s29 + $0x98] sm:$0xff] }
  0x13   : > { %214 = vst [vmem:[%s2239_s30 + $0x18] sm:$0xff] %v213_v3  ;;  %v231_v12 = vld [vmem:[%s2234_s29 + $0xc0] sm:$0xff]  ;;  %v233_v13 = vld [vmem:[%s2234_s29 + $0xc8] sm:$0xff]  ;;  %v235_v14 = vld [vmem:[%s2234_s29 + $0xd0] sm:$0xff] }
  0x14   : > { %216 = vst [vmem:[%s2239_s30 + $0x20] sm:$0xff] %v215_v4  ;;  %v237_v15 = vld [vmem:[%s2234_s29 + $0xd8] sm:$0xff]  ;;  %v239_v16 = vld [vmem:[%s2234_s29 + $0x100] sm:$0xff]  ;;  %v241_v17 = vld [vmem:[%s2234_s29 + $0x108] sm:$0xff] }
  0x15   : > { %218 = vst [vmem:[%s2239_s30 + $0x28] sm:$0xff] %v217_v5  ;;  %v243_v18 = vld [vmem:[%s2234_s29 + $0x110] sm:$0xff]  ;;  %v245_v19 = vld [vmem:[%s2234_s29 + $0x118] sm:$0xff]  ;;  %v247_v20 = vld [vmem:[%s2234_s29 + $0x140] sm:$0xff] }
  0x16   : > { %220 = vst [vmem:[%s2239_s30 + $0x30] sm:$0xff] %v219_v6  ;;  %v249_v21 = vld [vmem:[%s2234_s29 + $0x148] sm:$0xff]  ;;  %v251_v22 = vld [vmem:[%s2234_s29 + $0x150] sm:$0xff]  ;;  %v253_v23 = vld [vmem:[%s2234_s29 + $0x158] sm:$0xff] }
  0x17   : > { %222 = vst [vmem:[%s2239_s30 + $0x38] sm:$0xff] %v221_v7  ;;  %v255_v24 = vld [vmem:[%s2234_s29 + $0x180] sm:$0xff]  ;;  %v257_v25 = vld [vmem:[%s2234_s29 + $0x188] sm:$0xff]  ;;  %v259_v26 = vld [vmem:[%s2234_s29 + $0x190] sm:$0xff] }
  0x18   : > { %224 = vst [vmem:[%s2239_s30 + $0x40] sm:$0xff] %v223_v8  ;;  %v261_v27 = vld [vmem:[%s2234_s29 + $0x198] sm:$0xff]  ;;  %v263_v28 = vld [vmem:[%s2234_s29 + $0x1c0] sm:$0xff]  ;;  %v265_v29 = vld [vmem:[%s2234_s29 + $0x1c8] sm:$0xff] }
  0x19   : > { %226 = vst [vmem:[%s2239_s30 + $0x48] sm:$0xff] %v225_v9  ;;  %v267_v30 = vld [vmem:[%s2234_s29 + $0x1d0] sm:$0xff]  ;;  %v269_v31 = vld [vmem:[%s2234_s29 + $0x1d8] sm:$0xff] }
  0x1a   : > { %228 = vst [vmem:[%s2239_s30 + $0x50] sm:$0xff] %v227_v10 }
  0x1b   : > { %230 = vst [vmem:[%s2239_s30 + $0x58] sm:$0xff] %v229_v11 }
  0x1c   : > { %232 = vst [vmem:[%s2239_s30 + $0x60] sm:$0xff] %v231_v12 }
  0x1d   : > { %234 = vst [vmem:[%s2239_s30 + $0x68] sm:$0xff] %v233_v13 }
  0x1e   : > { %236 = vst [vmem:[%s2239_s30 + $0x70] sm:$0xff] %v235_v14 }
  0x1f   : > { %238 = vst [vmem:[%s2239_s30 + $0x78] sm:$0xff] %v237_v15 }
  0x20   : > { %240 = vst [vmem:[%s2239_s30 + $0x80] sm:$0xff] %v239_v16 }
  0x21   : > { %242 = vst [vmem:[%s2239_s30 + $0x88] sm:$0xff] %v241_v17 }
  0x22   : > { %244 = vst [vmem:[%s2239_s30 + $0x90] sm:$0xff] %v243_v18 }
  0x23   : > { %246 = vst [vmem:[%s2239_s30 + $0x98] sm:$0xff] %v245_v19 }
  0x24   : > { %248 = vst [vmem:[%s2239_s30 + $0xa0] sm:$0xff] %v247_v20 }
  0x25   : > { %250 = vst [vmem:[%s2239_s30 + $0xa8] sm:$0xff] %v249_v21 }
  0x26   : > { %252 = vst [vmem:[%s2239_s30 + $0xb0] sm:$0xff] %v251_v22 }
  0x27   : > { %254 = vst [vmem:[%s2239_s30 + $0xb8] sm:$0xff] %v253_v23 }
  0x28   : > { %256 = vst [vmem:[%s2239_s30 + $0xc0] sm:$0xff] %v255_v24 }
  0x29   : > { %258 = vst [vmem:[%s2239_s30 + $0xc8] sm:$0xff] %v257_v25 }
  0x2a   : > { %260 = vst [vmem:[%s2239_s30 + $0xd0] sm:$0xff] %v259_v26 }
  0x2b   : > { %262 = vst [vmem:[%s2239_s30 + $0xd8] sm:$0xff] %v261_v27 }
  0x2c   : > { %264 = vst [vmem:[%s2239_s30 + $0xe0] sm:$0xff] %v263_v28 }
  0x2d   : > { %266 = vst [vmem:[%s2239_s30 + $0xe8] sm:$0xff] %v265_v29 }
  0x2e   : > { %268 = vst [vmem:[%s2239_s30 + $0xf0] sm:$0xff] %v267_v30 }
  0x2f   : > { %270 = vst [vmem:[%s2239_s30 + $0xf8] sm:$0xff] %v269_v31 }
  0x30 PF: > { %p1568_p6 = scmp.ge.s32.totalorder %s2163_s19, 1  ;;  %p287_p7 = scmp.lt.s32.totalorder %s2163_s19, 3 }
  0x32   : > { %p288_p8 = pnand %p1568_p6, %p287_p7 }
  0x33   : > { %s294_s5 = sand.u32 (!%p288_p8), 1, %s2147_s15   ;;  %s1570_s6 = sshll.u32 (!%p288_p8), %s2155_s17, 7 }
  0x34   : > { %291 = sbr.rel (%p288_p8) target bundleno = 464 (0x1d0), region = 55  ;;  %s1569_s7 = sshll.u32 (!%p288_p8), %s294_s5, 8 }
  0x35   : > { %p334_p9 = scmp.lt.s32.totalorder (!%p288_p8), %s1570_s6, 255  ;;  %s2311_s12 = scalar_lea.vmem (!%p288_p8), [#allocation3], %s1569_s7 }
  0x36   : > { %p1572_p10 = scmp.ne.s32.totalorder (!%p288_p8), %s2155_s17, 0 }
  0x39   : > { %s2527_s6 = smov (!%p334_p9, %s1570_s6), 255  ;;  %355 = sbr.rel (%p1572_p10) target bundleno = 71 (0x47), region = 63 }
  0x3a   : > { %s1571_s8 = sshll.u32 %s2527_s6, 2 }
  0x3b   : > { %s2309_s11 = scalar_lea.vmem %s2516_s1, %s1571_s8 }
  0x3e   : > { %v2165_v32 = vmov 0.0  }
  0x3f   : > { %356 = vst [vmem:[#allocation2 + $0x30] sm:$0xff] %v2165_v32 }
  0x40   : > { %357 = vst [vmem:[#allocation2] sm:$0xff] %v2165_v32 }
  0x41   : > { %358 = vst [vmem:[#allocation2 + $0x18] sm:$0xff] %v2165_v32 }
  0x42   : > { %359 = vst [vmem:[#allocation2 + $0x10] sm:$0xff] %v2165_v32 }
  0x43   : > { %360 = vst [vmem:[#allocation2 + $0x8] sm:$0xff] %v2165_v32 }
  0x44   : > { %361 = vst [vmem:[#allocation2 + $0x20] sm:$0xff] %v2165_v32 }
  0x45   : > { %362 = vst [vmem:[#allocation2 + $0x28] sm:$0xff] %v2165_v32 }
  0x46   : > { %363 = vst [vmem:[#allocation2 + $0x38] sm:$0xff] %v2165_v32 }
  0x47 PF: > { %v2001_v33 = vld [vmem:[%s2309_s11 + $0x38] sm:$0xff]  ;;  %v2000_v37 = vld [vmem:[%s2309_s11 + $0x30] sm:$0xff]  ;;  %v1999_v41 = vld [vmem:[%s2309_s11 + $0x28] sm:$0xff]  ;;  %p1957_p11 = scmp.ne.s32.totalorder %s2155_s17, 1 }
  0x48   : > { %v2009_v34 = vld [vmem:[%s2309_s11 + $0x78] sm:$0xff]  ;;  %1076 = vmatpush.bf16.msra.mxu0 %v2001_v33  ;;  %v2008_v38 = vld [vmem:[%s2309_s11 + $0x70] sm:$0xff]  ;;  %v2007_v42 = vld [vmem:[%s2309_s11 + $0x68] sm:$0xff] }
  0x49   : > { %v2017_v35 = vld [vmem:[%s2309_s11 + $0xb8] sm:$0xff]  ;;  %1105 = vmatpush.bf16.msra.mxu1 %v2009_v34  ;;  %v2016_v39 = vld [vmem:[%s2309_s11 + $0xb0] sm:$0xff]  ;;  %v2015_v43 = vld [vmem:[%s2309_s11 + $0xa8] sm:$0xff] }
  0x4a   : > { %v2025_v36 = vld [vmem:[%s2309_s11 + $0xf8] sm:$0xff]  ;;  %1134 = vmatpush.bf16.msra.mxu2 %v2017_v35  ;;  %v2024_v40 = vld [vmem:[%s2309_s11 + $0xf0] sm:$0xff]  ;;  %v2023_v44 = vld [vmem:[%s2309_s11 + $0xe8] sm:$0xff] }
  0x4b   : > { %1163 = vmatpush.bf16.msra.mxu3 %v2025_v36  ;;  %v1998_v45 = vld [vmem:[%s2309_s11 + $0x20] sm:$0xff]  ;;  %v1997_v49 = vld [vmem:[%s2309_s11 + $0x18] sm:$0xff]  ;;  %v1996_v53 = vld [vmem:[%s2309_s11 + $0x10] sm:$0xff] }
  0x4c   : > { %1077 = vmatpush.bf16.msra.mxu0 %v2000_v37  ;;  %v2006_v46 = vld [vmem:[%s2309_s11 + $0x60] sm:$0xff]  ;;  %v2005_v50 = vld [vmem:[%s2309_s11 + $0x58] sm:$0xff]  ;;  %v2004_v54 = vld [vmem:[%s2309_s11 + $0x50] sm:$0xff] }
  0x4d   : > { %1106 = vmatpush.bf16.msra.mxu1 %v2008_v38  ;;  %v2014_v47 = vld [vmem:[%s2309_s11 + $0xa0] sm:$0xff]  ;;  %v2013_v51 = vld [vmem:[%s2309_s11 + $0x98] sm:$0xff]  ;;  %v2012_v55 = vld [vmem:[%s2309_s11 + $0x90] sm:$0xff] }
  0x4e   : > { %1135 = vmatpush.bf16.msra.mxu2 %v2016_v39  ;;  %v2022_v48 = vld [vmem:[%s2309_s11 + $0xe0] sm:$0xff]  ;;  %v2021_v52 = vld [vmem:[%s2309_s11 + $0xd8] sm:$0xff]  ;;  %v2020_v56 = vld [vmem:[%s2309_s11 + $0xd0] sm:$0xff] }
  0x4f   : > { %1164 = vmatpush.bf16.msra.mxu3 %v2024_v40  ;;  %v1995_v57 = vld [vmem:[%s2309_s11 + $0x8] sm:$0xff]  ;;  %v1994_v61 = vld [vmem:[%s2309_s11] sm:$0xff]  ;;  %v2049_v9 = vld [vmem:[%s2309_s11 + $0x1b8] sm:$0xff] }
  0x50   : > { %1078 = vmatpush.bf16.msra.mxu0 %v1999_v41  ;;  %v2003_v58 = vld [vmem:[%s2309_s11 + $0x48] sm:$0xff]  ;;  %v2002_v62 = vld [vmem:[%s2309_s11 + $0x40] sm:$0xff]  ;;  %v2033_v10 = vld [vmem:[%s2309_s11 + $0x138] sm:$0xff] }
  0x51   : > { %1107 = vmatpush.bf16.msra.mxu1 %v2007_v42  ;;  %v2011_v59 = vld [vmem:[%s2309_s11 + $0x88] sm:$0xff]  ;;  %v2010_v63 = vld [vmem:[%s2309_s11 + $0x80] sm:$0xff]  ;;  %v2057_v15 = vld [vmem:[%s2309_s11 + $0x1f8] sm:$0xff] }
  0x52   : > { %1136 = vmatpush.bf16.msra.mxu2 %v2015_v43  ;;  %v2019_v60 = vld [vmem:[%s2309_s11 + $0xc8] sm:$0xff]  ;;  %v2018_v0 = vld [vmem:[%s2309_s11 + $0xc0] sm:$0xff]  ;;  %v2041_v16 = vld [vmem:[%s2309_s11 + $0x178] sm:$0xff] }
  0x53   : > { %1165 = vmatpush.bf16.msra.mxu3 %v2023_v44  ;;  %v1575_v1 = vld [vmem:[%s2311_s12] sm:$0xf]  ;;  %v1962_v3 = vld [vmem:[%s2311_s12 + $0x4] sm:$0xf]  ;;  %v1583_v5 = vld [vmem:[%s2311_s12 + $0x8] sm:$0xf] }
  0x54   : > { %1079 = vmatpush.bf16.msra.mxu0 %v1998_v45  ;;  %v1966_v2 = vld [vmem:[%s2311_s12 + $0x1c] sm:$0xf0]  ;;  %v1577_v4 = vld [vmem:[%s2311_s12 + $0x20] sm:$0xf0]  ;;  %v1967_v6 = vld [vmem:[%s2311_s12 + $0x24] sm:$0xf0] }
  0x55   : > { %1108 = vmatpush.bf16.msra.mxu1 %v2006_v46  ;;  %v1963_v7 = vld [vmem:[%s2311_s12 + $0xc] sm:$0xf]  ;;  %v1576_v11 = vor.u32 %v1966_v2, %v1575_v1  ;;  %v1580_v12 = vor.u32 %v1962_v3, %v1577_v4  ;;  %v1584_v13 = vor.u32 %v1967_v6, %v1583_v5  ;;  %v2048_v17 = vld [vmem:[%s2309_s11 + $0x1b0] sm:$0xff]  ;;  %v1607_v25 = vld [vmem:[%s2311_s12 + $0x40] sm:$0xf] }
  0x56   : > { %1137 = vmatpush.bf16.msra.mxu2 %v2014_v47  ;;  %v1585_v8 = vld [vmem:[%s2311_s12 + $0x28] sm:$0xf0]  ;;  %v2032_v18 = vld [vmem:[%s2309_s11 + $0x130] sm:$0xff]  ;;  %v2046_v26 = vld [vmem:[%s2309_s11 + $0x1a0] sm:$0xff] }
  0x57   : > { %1166 = vmatpush.bf16.msra.mxu3 %v2022_v48  ;;  %v1588_v14 = vor.u32 %v1963_v7, %v1585_v8  ;;  %v2056_v19 = vld [vmem:[%s2309_s11 + $0x1f0] sm:$0xff]  ;;  %v2047_v21 = vld [vmem:[%s2309_s11 + $0x1a8] sm:$0xff]  ;;  %v2030_v27 = vld [vmem:[%s2309_s11 + $0x120] sm:$0xff] }
  0x58   : > { %1080 = vmatpush.bf16.msra.mxu0 %v1997_v49  ;;  %v2040_v20 = vld [vmem:[%s2309_s11 + $0x170] sm:$0xff]  ;;  %v2031_v22 = vld [vmem:[%s2309_s11 + $0x128] sm:$0xff]  ;;  %v1974_v28 = vld [vmem:[%s2311_s12 + $0x5c] sm:$0xf0] }
  0x59   : > { %1109 = vmatpush.bf16.msra.mxu1 %v2005_v50  ;;  %v2055_v23 = vld [vmem:[%s2309_s11 + $0x1e8] sm:$0xff]  ;;  %v1970_v29 = vld [vmem:[%s2311_s12 + $0x44] sm:$0xf]  ;;  %v2045_v37 = vld [vmem:[%s2309_s11 + $0x198] sm:$0xff]  ;;  %v1608_v39 = vor.u32 %v1974_v28, %v1607_v25 }
  0x5a   : > { %1138 = vmatpush.bf16.msra.mxu2 %v2013_v51  ;;  %v2039_v24 = vld [vmem:[%s2309_s11 + $0x168] sm:$0xff]  ;;  %v1609_v30 = vld [vmem:[%s2311_s12 + $0x60] sm:$0xf0]  ;;  %v2029_v38 = vld [vmem:[%s2309_s11 + $0x118] sm:$0xff] }
  0x5b   : > { %1167 = vmatpush.bf16.msra.mxu3 %v2021_v52  ;;  %v1615_v31 = vld [vmem:[%s2311_s12 + $0x48] sm:$0xf]  ;;  %v1971_v33 = vld [vmem:[%s2311_s12 + $0x4c] sm:$0xf]  ;;  %v2054_v35 = vld [vmem:[%s2309_s11 + $0x1e0] sm:$0xff]  ;;  %v1612_v40 = vor.u32 %v1970_v29, %v1609_v30 }
  0x5c   : > { %1081 = vmatpush.bf16.msra.mxu0 %v1996_v53  ;;  %v1975_v32 = vld [vmem:[%s2311_s12 + $0x64] sm:$0xf0]  ;;  %v1617_v34 = vld [vmem:[%s2311_s12 + $0x68] sm:$0xf0]  ;;  %v2038_v36 = vld [vmem:[%s2309_s11 + $0x160] sm:$0xff] }
  0x5d   : > { %1110 = vmatpush.bf16.msra.mxu1 %v2004_v54  ;;  %v1616_v41 = vor.u32 %v1975_v32, %v1615_v31  ;;  %v1620_v42 = vor.u32 %v1971_v33, %v1617_v34  ;;  %v2053_v43 = vld [vmem:[%s2309_s11 + $0x1d8] sm:$0xff]  ;;  %v2044_v45 = vld [vmem:[%s2309_s11 + $0x190] sm:$0xff]  ;;  %v2043_v49 = vld [vmem:[%s2309_s11 + $0x188] sm:$0xff] }
  0x5e   : > { %1139 = vmatpush.bf16.msra.mxu2 %v2012_v55  ;;  %v2037_v44 = vld [vmem:[%s2309_s11 + $0x158] sm:$0xff]  ;;  %v2028_v46 = vld [vmem:[%s2309_s11 + $0x110] sm:$0xff]  ;;  %v2027_v50 = vld [vmem:[%s2309_s11 + $0x108] sm:$0xff] }
  0x5f   : > { %1168 = vmatpush.bf16.msra.mxu3 %v2020_v56  ;;  %v2052_v47 = vld [vmem:[%s2309_s11 + $0x1d0] sm:$0xff]  ;;  %v2051_v51 = vld [vmem:[%s2309_s11 + $0x1c8] sm:$0xff]  ;;  %v1639_v53 = vld [vmem:[%s2311_s12 + $0x80] sm:$0xf] }
  0x60   : > { %1082 = vmatpush.bf16.msra.mxu0 %v1995_v57  ;;  %v2036_v48 = vld [vmem:[%s2309_s11 + $0x150] sm:$0xff]  ;;  %v2035_v52 = vld [vmem:[%s2309_s11 + $0x148] sm:$0xff]  ;;  %v2042_v54 = vld [vmem:[%s2309_s11 + $0x180] sm:$0xff] }
  0x61   : > { %1111 = vmatpush.bf16.msra.mxu1 %v2003_v58  ;;  %v2026_v55 = vld [vmem:[%s2309_s11 + $0x100] sm:$0xff]  ;;  %v1623_v29 = vld [vmem:[%s2311_s12 + $0x50] sm:$0xf]  ;;  %v1972_v31 = vld [vmem:[%s2311_s12 + $0x54] sm:$0xf] }
  0x62   : > { %1140 = vmatpush.bf16.msra.mxu2 %v2011_v59  ;;  %v1982_v56 = vld [vmem:[%s2311_s12 + $0x9c] sm:$0xf0]  ;;  %v1978_v57 = vld [vmem:[%s2311_s12 + $0x84] sm:$0xf]  ;;  %v1647_v59 = vld [vmem:[%s2311_s12 + $0x88] sm:$0xf] }
  0x63   : > { %1169 = vmatpush.bf16.msra.mxu3 %v2019_v60  ;;  %v1641_v58 = vld [vmem:[%s2311_s12 + $0xa0] sm:$0xf0]  ;;  %v1983_v60 = vld [vmem:[%s2311_s12 + $0xa4] sm:$0xf0]  ;;  %v1640_v1 = vor.u32 %v1982_v56, %v1639_v53  ;;  %v1671_v5 = vld [vmem:[%s2311_s12 + $0xc0] sm:$0xf] }
  0x64   : > { %1083 = vmatpush.bf16.msra.mxu0 %v1994_v61  ;;  %v1979_v61 = vld [vmem:[%s2311_s12 + $0x8c] sm:$0xf]  ;;  %v1644_v2 = vor.u32 %v1978_v57, %v1641_v58  ;;  %v1648_v3 = vor.u32 %v1983_v60, %v1647_v59  ;;  %v1990_v6 = vld [vmem:[%s2311_s12 + $0xdc] sm:$0xf0]  ;;  %v1986_v7 = vld [vmem:[%s2311_s12 + $0xc4] sm:$0xf] }
  0x65   : > { %1112 = vmatpush.bf16.msra.mxu1 %v2002_v62  ;;  %v1649_v62 = vld [vmem:[%s2311_s12 + $0xa8] sm:$0xf0]  ;;  %v1673_v8 = vld [vmem:[%s2311_s12 + $0xe0] sm:$0xf0]  ;;  %v1976_v30 = vld [vmem:[%s2311_s12 + $0x6c] sm:$0xf0] }
  0x66   : > { %1141 = vmatpush.bf16.msra.mxu2 %v2010_v63  ;;  %v2050_v63 = vld [vmem:[%s2309_s11 + $0x1c0] sm:$0xff]  ;;  %v1652_v4 = vor.u32 %v1979_v61, %v1649_v62  ;;  %v1625_v32 = vld [vmem:[%s2311_s12 + $0x70] sm:$0xf0]  ;;  %v1631_v33 = vld [vmem:[%s2311_s12 + $0x58] sm:$0xf] }
  0x67   : > { %1170 = vmatpush.bf16.msra.mxu3 %v2018_v0  ;;  %1084 = vmatmul.bf16.vlgmr.msra.gmra.mxu0 %v1576_v11  ;;  %v2034_v0 = vld [vmem:[%s2309_s11 + $0x140] sm:$0xff]  ;;  %v1987_v11 = vld [vmem:[%s2311_s12 + $0xcc] sm:$0xf]  ;;  %v1977_v34 = vld [vmem:[%s2311_s12 + $0x74] sm:$0xf0] }
  0x68   : > { %1192 = vmatpush.bf16.msrb.mxu0 %v2033_v10  ;;  %1113 = vmatmul.bf16.vlgmr.msra.gmra.mxu1 %v1580_v12  ;;  %v1991_v10 = vld [vmem:[%s2311_s12 + $0xe4] sm:$0xf0]  ;;  %v1681_v12 = vld [vmem:[%s2311_s12 + $0xe8] sm:$0xf0]  ;;  %v1687_v53 = vld [vmem:[%s2311_s12 + $0xd0] sm:$0xf] }
  0x69   : > { %1142 = vmatmul.bf16.vlgmr.msra.gmra.mxu2 %v1584_v13  ;;  %1221 = vmatpush.bf16.msrb.mxu1 %v2041_v16  ;;  %v1672_v13 = vor.u32 %v1990_v6, %v1671_v5  ;;  %v1684_v16 = vor.u32 %v1987_v11, %v1681_v12  ;;  %v1689_v56 = vld [vmem:[%s2311_s12 + $0xf0] sm:$0xf0]  ;;  %v1695_v57 = vld [vmem:[%s2311_s12 + $0xd8] sm:$0xf]  ;;  %v1989_v59 = vld [vmem:[%s2311_s12 + $0xdc] sm:$0xf] }
  0x6a   : > { %1250 = vmatpush.bf16.msrb.mxu2 %v2049_v9  ;;  %1171 = vmatmul.bf16.vlgmr.msra.gmra.mxu3 %v1588_v14  ;;  %v1679_v9 = vld [vmem:[%s2311_s12 + $0xc8] sm:$0xf]  ;;  %v1676_v14 = vor.u32 %v1986_v7, %v1673_v8  ;;  %v1993_v58 = vld [vmem:[%s2311_s12 + $0xf4] sm:$0xf0]  ;;  %v1697_v60 = vld [vmem:[%s2311_s12 + $0xf8] sm:$0xf0] }
  0x6b   : > { %1279 = vmatpush.bf16.msrb.mxu3 %v2057_v15  ;;  %v1680_v15 = vor.u32 %v1991_v10, %v1679_v9 }
  0x6c   : > { %1193 = vmatpush.bf16.msrb.mxu0 %v2032_v18  ;;  %v1968_v18 = vld [vmem:[%s2311_s12 + $0x2c] sm:$0xf0] }
  0x6d   : > { %1222 = vmatpush.bf16.msrb.mxu1 %v2040_v20  ;;  %v1593_v20 = vld [vmem:[%s2311_s12 + $0x30] sm:$0xf0] }
  0x6e   : > { %1251 = vmatpush.bf16.msrb.mxu2 %v2048_v17  ;;  %v1591_v17 = vld [vmem:[%s2311_s12 + $0x10] sm:$0xf] }
  0x6f   : > { %1280 = vmatpush.bf16.msrb.mxu3 %v2056_v19  ;;  %v1964_v19 = vld [vmem:[%s2311_s12 + $0x14] sm:$0xf]  ;;  %v1592_v25 = vor.u32 %v1968_v18, %v1591_v17 }
  0x70   : > { %1194 = vmatpush.bf16.msrb.mxu0 %v2031_v22  ;;  %v1969_v22 = vld [vmem:[%s2311_s12 + $0x34] sm:$0xf0] }
  0x71   : > { %1223 = vmatpush.bf16.msrb.mxu1 %v2039_v24  ;;  %v1601_v24 = vld [vmem:[%s2311_s12 + $0x38] sm:$0xf0] }
  0x72   : > { %1252 = vmatpush.bf16.msrb.mxu2 %v2047_v21  ;;  %v1599_v21 = vld [vmem:[%s2311_s12 + $0x18] sm:$0xf] }
  0x73   : > { %1281 = vmatpush.bf16.msrb.mxu3 %v2055_v23  ;;  %v1965_v23 = vld [vmem:[%s2311_s12 + $0x1c] sm:$0xf] }
  0x74   : > { %1195 = vmatpush.bf16.msrb.mxu0 %v2030_v27  ;;  %v1600_v27 = vor.u32 %v1969_v22, %v1599_v21  ;;  %v1604_v28 = vor.u32 %v1965_v23, %v1601_v24 }
  0x75   : > { %1224 = vmatpush.bf16.msrb.mxu1 %v2038_v36  ;;  %v1633_v36 = vld [vmem:[%s2311_s12 + $0x78] sm:$0xf0] }
  0x76   : > { %1253 = vmatpush.bf16.msrb.mxu2 %v2046_v26  ;;  %v1596_v26 = vor.u32 %v1964_v19, %v1593_v20 }
  0x77   : > { %1282 = vmatpush.bf16.msrb.mxu3 %v2054_v35  ;;  %1089 = vmatmul.bf16.gmra.mxu0 %v1608_v39  ;;  %v1973_v35 = vld [vmem:[%s2311_s12 + $0x5c] sm:$0xf]  ;;  %v1632_v39 = vor.u32 %v1977_v34, %v1631_v33 }
  0x78   : > { %1196 = vmatpush.bf16.msrb.mxu0 %v2029_v38  ;;  %1118 = vmatmul.bf16.gmra.mxu1 %v1612_v40  ;;  %v1628_v38 = vor.u32 %v1972_v31, %v1625_v32  ;;  %v1636_v40 = vor.u32 %v1973_v35, %v1633_v36 }
  0x79   : > { %1147 = vmatmul.bf16.gmra.mxu2 %v1616_v41  ;;  %1225 = vmatpush.bf16.msrb.mxu1 %v2037_v44  ;;  %v1655_v41 = vld [vmem:[%s2311_s12 + $0x90] sm:$0xf]  ;;  %v1657_v44 = vld [vmem:[%s2311_s12 + $0xb0] sm:$0xf0] }
  0x7a   : > { %1254 = vmatpush.bf16.msrb.mxu2 %v2045_v37  ;;  %1176 = vmatmul.bf16.gmra.mxu3 %v1620_v42  ;;  %v1624_v37 = vor.u32 %v1976_v30, %v1623_v29  ;;  %v1984_v42 = vld [vmem:[%s2311_s12 + $0xac] sm:$0xf0] }
  0x7b   : > { %1283 = vmatpush.bf16.msrb.mxu3 %v2053_v43  ;;  %v1980_v43 = vld [vmem:[%s2311_s12 + $0x94] sm:$0xf] }
  0x7c   : > { %1197 = vmatpush.bf16.msrb.mxu0 %v2028_v46  ;;  %v1985_v46 = vld [vmem:[%s2311_s12 + $0xb4] sm:$0xf0] }
  0x7d   : > { %1226 = vmatpush.bf16.msrb.mxu1 %v2036_v48  ;;  %v1665_v48 = vld [vmem:[%s2311_s12 + $0xb8] sm:$0xf0] }
  0x7e   : > { %1255 = vmatpush.bf16.msrb.mxu2 %v2044_v45  ;;  %v1663_v45 = vld [vmem:[%s2311_s12 + $0x98] sm:$0xf] }
  0x7f   : > { %1284 = vmatpush.bf16.msrb.mxu3 %v2052_v47  ;;  %v1981_v47 = vld [vmem:[%s2311_s12 + $0x9c] sm:$0xf] }
  0x80   : > { %1198 = vmatpush.bf16.msrb.mxu0 %v2027_v50  ;;  %v1660_v50 = vor.u32 %v1980_v43, %v1657_v44 }
  0x81   : > { %1227 = vmatpush.bf16.msrb.mxu1 %v2035_v52  ;;  %v1668_v52 = vor.u32 %v1981_v47, %v1665_v48  ;;  %v364_v48 = vld [vmem:[#allocation2 + $0x30] sm:$0xff] }
  0x82   : > { %1256 = vmatpush.bf16.msrb.mxu2 %v2043_v49  ;;  %v1656_v49 = vor.u32 %v1984_v42, %v1655_v41 }
  0x83   : > { %1285 = vmatpush.bf16.msrb.mxu3 %v2051_v51  ;;  %v1664_v51 = vor.u32 %v1985_v46, %v1663_v45 }
  0x84   : > { %1199 = vmatpush.bf16.msrb.mxu0 %v2026_v55  ;;  %v1988_v55 = vld [vmem:[%s2311_s12 + $0xd4] sm:$0xf] }
  0x85   : > { %1228 = vmatpush.bf16.msrb.mxu1 %v2034_v0  ;;  %v1692_v62 = vor.u32 %v1988_v55, %v1689_v56  ;;  %v1700_v0 = vor.u32 %v1989_v59, %v1697_v60 }
  0x86   : > { %1257 = vmatpush.bf16.msrb.mxu2 %v2042_v54  ;;  %v1992_v54 = vld [vmem:[%s2311_s12 + $0xec] sm:$0xf0] }
  0x87   : > { %1286 = vmatpush.bf16.msrb.mxu3 %v2050_v63  ;;  %1094 = vmatmul.bf16.gmra.mxu0 %v1640_v1  ;;  %v1688_v61 = vor.u32 %v1992_v54, %v1687_v53  ;;  %v1696_v63 = vor.u32 %v1993_v58, %v1695_v57 }
  0x88   : > { %1123 = vmatmul.bf16.gmra.mxu1 %v1644_v2 }
  0x89   : > { %1152 = vmatmul.bf16.gmra.mxu2 %v1648_v3 }
  0x8a   : > { %1181 = vmatmul.bf16.gmra.mxu3 %v1652_v4 }
  0x97   : > { %1099 = vmatmul.bf16.gmra.mxu0 %v1672_v13 }
  0x98   : > { %1128 = vmatmul.bf16.gmra.mxu1 %v1676_v14 }
  0x99   : > { %1157 = vmatmul.bf16.gmra.mxu2 %v1680_v15 }
  0x9a   : > { %1186 = vmatmul.bf16.gmra.mxu3 %v1684_v16 }
  0xa7   : > { %1200 = vmatmul.bf16.vlgmr.msrb.gmra.mxu0 %v1592_v25 }
  0xa8   : > { %1229 = vmatmul.bf16.vlgmr.msrb.gmra.mxu1 %v1596_v26 }
  0xa9   : > { %1258 = vmatmul.bf16.vlgmr.msrb.gmra.mxu2 %v1600_v27 }
  0xaa   : > { %1287 = vmatmul.bf16.vlgmr.msrb.gmra.mxu3 %v1604_v28 }
  0xb7   : > { %1205 = vmatmul.bf16.gmra.mxu0 %v1624_v37 }
  0xb8   : > { %1234 = vmatmul.bf16.gmra.mxu1 %v1628_v38 }
  0xb9   : > { %1263 = vmatmul.bf16.gmra.mxu2 %v1632_v39 }
  0xba   : > { %1292 = vmatmul.bf16.gmra.mxu3 %v1636_v40 }
  0xc7   : > { %1210 = vmatmul.bf16.gmra.mxu0 %v1656_v49 }
  0xc8   : > { %1239 = vmatmul.bf16.gmra.mxu1 %v1660_v50 }
  0xc9   : > { %1268 = vmatmul.bf16.gmra.mxu2 %v1664_v51 }
  0xca   : > { %1297 = vmatmul.bf16.gmra.mxu3 %v1668_v52 }
  0xd7   : > { %1215 = vmatmul.bf16.gmra.mxu0 %v1688_v61  ;;  %v365_v61 = vld [vmem:[#allocation2] sm:$0xff] }
  0xd8   : > { %1244 = vmatmul.bf16.gmra.mxu1 %v1692_v62 }
  0xd9   : > { %1273 = vmatmul.bf16.gmra.mxu2 %v1696_v63 }
  0xda   : > { %1302 = vmatmul.bf16.gmra.mxu3 %v1700_v0 }
  0xe4   : > { %v1085_v1 = vpop.f32.mrf.mxu0 }
  0xe5   : > { %v1114_v2 = vpop.f32.mrf.mxu1 }
  0xe6   : > { %v1115_v31 = vadd.f32 %v1114_v2, %v1085_v1 }
  0xec   : > { %v1143_v3 = vpop.f32.mrf.mxu2  ;;  %v1087_v5 = vpop.f32.mrf.mxu0 }
  0xed   : > { %v1172_v4 = vpop.f32.mrf.mxu3  ;;  %v1116_v6 = vpop.f32.mrf.mxu1  ;;  %v1144_v32 = vadd.f32 %v1143_v3, %v1115_v31 }
  0xee   : > { %v1117_v38 = vadd.f32 %v1116_v6, %v1087_v5 }
  0xef   : > { %v1173_v35 = vadd.f32 %v1172_v4, %v1144_v32 }
  0xf4   : > { %v1145_v7 = vpop.f32.mrf.mxu2  ;;  %v1090_v9 = vpop.f32.mrf.mxu0 }
  0xf5   : > { %v1174_v8 = vpop.f32.mrf.mxu3  ;;  %v1119_v10 = vpop.f32.mrf.mxu1  ;;  %v1146_v40 = vadd.f32 %v1145_v7, %v1117_v38 }
  0xf6   : > { %v1120_v49 = vadd.f32 %v1119_v10, %v1090_v9  ;;  %v366_v10 = vld [vmem:[#allocation2 + $0x18] sm:$0xff] }
  0xf7   : > { %v1175_v44 = vadd.f32 %v1174_v8, %v1146_v40  ;;  %v367_v40 = vld [vmem:[#allocation2 + $0x10] sm:$0xff] }
  0xfc   : > { %v1148_v11 = vpop.f32.mrf.mxu2  ;;  %v1092_v13 = vpop.f32.mrf.mxu0 }
  0xfd   : > { %v1177_v12 = vpop.f32.mrf.mxu3  ;;  %v1121_v14 = vpop.f32.mrf.mxu1  ;;  %v1149_v52 = vadd.f32 %v1148_v11, %v1120_v49 }
  0xfe   : > { %v1122_v62 = vadd.f32 %v1121_v14, %v1092_v13 }
  0xff   : > { %v1178_v57 = vadd.f32 %v1177_v12, %v1149_v52 }
 0x104   : > { %v1150_v15 = vpop.f32.mrf.mxu2  ;;  %v1095_v17 = vpop.f32.mrf.mxu0 }
 0x105   : > { %v1179_v16 = vpop.f32.mrf.mxu3  ;;  %v1124_v18 = vpop.f32.mrf.mxu1  ;;  %v1151_v1 = vadd.f32 %v1150_v15, %v1122_v62 }
 0x106   : > { %v1125_v11 = vadd.f32 %v1124_v18, %v1095_v17 }
 0x107   : > { %v1180_v6 = vadd.f32 %v1179_v16, %v1151_v1  ;;  %v370_v1 = vld [vmem:[#allocation2 + $0x28] sm:$0xff] }
 0x10c   : > { %v1153_v19 = vpop.f32.mrf.mxu2  ;;  %v2444_v21 = vpop.f32.mrf.mxu0 }
 0x10d   : > { %v2442_v20 = vpop.f32.mrf.mxu3  ;;  %v2446_v22 = vpop.f32.mrf.mxu1  ;;  %v1154_v32 = vadd.f32 %v1153_v19, %v1125_v11 }
 0x10e   : > { %v1127_v16 = vadd.f32 %v2446_v22, %v2444_v21 }
 0x10f   : > { %v1183_v15 = vadd.f32 %v2442_v20, %v1154_v32 }
 0x114   : > { %v2448_v23 = vpop.f32.mrf.mxu2  ;;  %v2452_v25 = vpop.f32.mrf.mxu0 }
 0x115   : > { %v2450_v24 = vpop.f32.mrf.mxu3  ;;  %v2454_v26 = vpop.f32.mrf.mxu1  ;;  %v1156_v17 = vadd.f32 %v2448_v23, %v1127_v16 }
 0x116   : > { %v1130_v49 = vadd.f32 %v2454_v26, %v2452_v25 }
 0x11c   : > { %v2456_v27 = vpop.f32.mrf.mxu2  ;;  %v2460_v29 = vpop.f32.mrf.mxu0 }
 0x11d   : > { %v2458_v28 = vpop.f32.mrf.mxu3  ;;  %v2462_v30 = vpop.f32.mrf.mxu1  ;;  %v1159_v22 = vadd.f32 %v2456_v27, %v1130_v49 }
 0x124   : > { %v2464_v33 = vpop.f32.mrf.mxu2  ;;  %v1201_v36 = vpop.f32.mrf.mxu0 }
 0x125   : > { %v2466_v34 = vpop.f32.mrf.mxu3  ;;  %v1230_v37 = vpop.f32.mrf.mxu1  ;;  %v1202_v39 = vadd.f32 %v1201_v36, %v1173_v35 }
 0x127   : > { %v1231_v41 = vadd.f32 %v1230_v37, %v1202_v39 }
 0x12c   : > { %v1259_v42 = vpop.f32.mrf.mxu2  ;;  %v1203_v46 = vpop.f32.mrf.mxu0 }
 0x12d   : > { %v1288_v43 = vpop.f32.mrf.mxu3  ;;  %v1260_v45 = vadd.f32 %v1259_v42, %v1231_v41  ;;  %v1232_v47 = vpop.f32.mrf.mxu1  ;;  %v1204_v51 = vadd.f32 %v1203_v46, %v1175_v44 }
 0x12f   : > { %v1289_v50 = vadd.f32 %v1288_v43, %v1260_v45  ;;  %v1233_v54 = vadd.f32 %v1232_v47, %v1204_v51  ;;  %v1185_v45 = vadd.f32 %v2450_v24, %v1156_v17  ;;  %v368_v47 = vld [vmem:[#allocation2 + $0x8] sm:$0xff] }
 0x131   : > { %v1308_v53 = vadd.f32 %v1289_v50, %v364_v48 }
 0x133   : > { %1316 = vst [vmem:[#allocation2 + $0x30] sm:$0xff] %v1308_v53 }
 0x134   : > { %v1261_v55 = vpop.f32.mrf.mxu2  ;;  %v1206_v59 = vpop.f32.mrf.mxu0 }
 0x135   : > { %v1290_v56 = vpop.f32.mrf.mxu3  ;;  %v1262_v58 = vadd.f32 %v1261_v55, %v1233_v54  ;;  %v1235_v60 = vpop.f32.mrf.mxu1  ;;  %v1207_v0 = vadd.f32 %v1206_v59, %v1178_v57  ;;  %v1188_v54 = vadd.f32 %v2458_v28, %v1159_v22  ;;  %v1132_v57 = vadd.f32 %v2462_v30, %v2460_v29 }
 0x137   : > { %v1291_v63 = vadd.f32 %v1290_v56, %v1262_v58  ;;  %v1236_v3 = vadd.f32 %v1235_v60, %v1207_v0  ;;  %v369_v56 = vld [vmem:[#allocation2 + $0x20] sm:$0xff]  ;;  %v1161_v26 = vadd.f32 %v2464_v33, %v1132_v57 }
 0x139   : > { %v1309_v2 = vadd.f32 %v1291_v63, %v365_v61  ;;  %v1190_v63 = vadd.f32 %v2466_v34, %v1161_v26 }
 0x13b   : > { %1317 = vst [vmem:[#allocation2] sm:$0xff] %v1309_v2 }
 0x13c   : > { %v1264_v4 = vpop.f32.mrf.mxu2  ;;  %v1208_v8 = vpop.f32.mrf.mxu0 }
 0x13d   : > { %v1293_v5 = vpop.f32.mrf.mxu3  ;;  %v1265_v7 = vadd.f32 %v1264_v4, %v1236_v3  ;;  %v1237_v9 = vpop.f32.mrf.mxu1  ;;  %v1209_v31 = vadd.f32 %v1208_v8, %v1180_v6 }
 0x13f   : > { %v1294_v12 = vadd.f32 %v1293_v5, %v1265_v7  ;;  %v1238_v13 = vadd.f32 %v1237_v9, %v1209_v31  ;;  %v371_v7 = vld [vmem:[#allocation2 + $0x38] sm:$0xff] }
 0x141   : > { %v1310_v35 = vadd.f32 %v1294_v12, %v366_v10 }
 0x143   : > { %1318 = vst [vmem:[#allocation2 + $0x18] sm:$0xff] %v1310_v35 }
 0x144   : > { %v1266_v14 = vpop.f32.mrf.mxu2  ;;  %v1211_v38 = vpop.f32.mrf.mxu0 }
 0x145   : > { %v1295_v36 = vpop.f32.mrf.mxu3  ;;  %v1267_v37 = vadd.f32 %v1266_v14, %v1238_v13  ;;  %v1240_v39 = vpop.f32.mrf.mxu1  ;;  %v1212_v42 = vadd.f32 %v1211_v38, %v1183_v15 }
 0x147   : > { %v1296_v41 = vadd.f32 %v1295_v36, %v1267_v37  ;;  %v1241_v19 = vadd.f32 %v1240_v39, %v1212_v42 }
 0x149   : > { %v1311_v18 = vadd.f32 %v1296_v41, %v367_v40 }
 0x14b   : > { %1319 = vst [vmem:[#allocation2 + $0x10] sm:$0xff] %v1311_v18 }
 0x14c   : > { %v1269_v43 = vpop.f32.mrf.mxu2  ;;  %v1213_v20 = vpop.f32.mrf.mxu0 }
 0x14d   : > { %v1298_v44 = vpop.f32.mrf.mxu3  ;;  %v1270_v46 = vadd.f32 %v1269_v43, %v1241_v19  ;;  %v1242_v48 = vpop.f32.mrf.mxu1  ;;  %v1214_v21 = vadd.f32 %v1213_v20, %v1185_v45 }
 0x14f   : > { %v1299_v50 = vadd.f32 %v1298_v44, %v1270_v46  ;;  %v1243_v23 = vadd.f32 %v1242_v48, %v1214_v21 }
 0x151   : > { %v1312_v51 = vadd.f32 %v1299_v50, %v368_v47 }
 0x153   : > { %1320 = vst [vmem:[#allocation2 + $0x8] sm:$0xff] %v1312_v51 }
 0x154   : > { %v1271_v52 = vpop.f32.mrf.mxu2  ;;  %v1216_v24 = vpop.f32.mrf.mxu0 }
 0x155   : > { %v1300_v53 = vpop.f32.mrf.mxu3  ;;  %v1272_v55 = vadd.f32 %v1271_v52, %v1243_v23  ;;  %v1217_v59 = vadd.f32 %v1216_v24, %v1188_v54  ;;  %v1245_v25 = vpop.f32.mrf.mxu1 }
 0x157   : > { %v1301_v58 = vadd.f32 %v1300_v53, %v1272_v55  ;;  %v1246_v27 = vadd.f32 %v1245_v25, %v1217_v59 }
 0x159   : > { %v1313_v60 = vadd.f32 %v1301_v58, %v369_v56 }
 0x15b   : > { %1321 = vst [vmem:[#allocation2 + $0x20] sm:$0xff] %v1313_v60 }
 0x15c   : > { %v1274_v61 = vpop.f32.mrf.mxu2  ;;  %v1218_v28 = vpop.f32.mrf.mxu0 }
 0x15d   : > { %v1303_v62 = vpop.f32.mrf.mxu3  ;;  %v1275_v0 = vadd.f32 %v1274_v61, %v1246_v27  ;;  %v1219_v3 = vadd.f32 %v1218_v28, %v1190_v63  ;;  %v1247_v5 = vpop.f32.mrf.mxu1 }
 0x15f   : > { %v1304_v2 = vadd.f32 %v1303_v62, %v1275_v0  ;;  %v1248_v29 = vadd.f32 %v1247_v5, %v1219_v3 }
 0x161   : > { %v1314_v4 = vadd.f32 %v1304_v2, %v370_v1 }
 0x163   : > { %1322 = vst [vmem:[#allocation2 + $0x28] sm:$0xff] %v1314_v4 }
 0x164   : > { %v1276_v30 = vpop.f32.mrf.mxu2 }
 0x165   : > { %v1277_v6 = vadd.f32 %v1276_v30, %v1248_v29  ;;  %v1305_v33 = vpop.f32.mrf.mxu3 }
 0x167   : > { %v1306_v8 = vadd.f32 %v1305_v33, %v1277_v6  ;;  %1327 = sbr.rel (%p1957_p11) target bundleno = 464 (0x1d0), region = 67 }
 0x169   : > { %v1315_v9 = vadd.f32 %v1306_v8, %v371_v7 }
 0x16b   : > { %1323 = vst [vmem:[#allocation2 + $0x38] sm:$0xff] %v1315_v9 }
 0x16c   : > { %v1328_v34 = vld [vmem:[#allocation2 + $0x30] sm:$0xff]  ;;  %v1329_v10 = vld [vmem:[#allocation2] sm:$0xff]  ;;  %v1330_v11 = vld [vmem:[#allocation2 + $0x18] sm:$0xff] }
 0x16d   : > { %v1336_v12 = vadd.f32 %v1329_v10, %v1328_v34  ;;  %v1331_v31 = vld [vmem:[#allocation2 + $0x10] sm:$0xff]  ;;  %v1332_v35 = vld [vmem:[#allocation2 + $0x8] sm:$0xff]  ;;  %v1333_v14 = vld [vmem:[#allocation2 + $0x20] sm:$0xff] }
 0x16e   : > { %v1334_v15 = vld [vmem:[#allocation2 + $0x28] sm:$0xff]  ;;  %v1380_v30 = vld [vmem:[%s2517_s2] sm:$0x1] }
 0x16f   : > { %v1337_v32 = vadd.f32 %v1336_v12, %v1330_v11  ;;  %v2122_v9 = vld [vmem:[%s2518_s3] ss:$0 sm:$0xff] }
 0x171   : > { %v1338_v13 = vadd.f32 %v1337_v32, %v1331_v31 }
 0x172   : > { %v1335_v38 = vld [vmem:[#allocation2 + $0x38] sm:$0xff] }
 0x173   : > { %v1339_v36 = vadd.f32 %v1338_v13, %v1332_v35 }
 0x175   : > { %v1340_v37 = vadd.f32 %v1339_v36, %v1333_v14 }
 0x177   : > { %v1341_v39 = vadd.f32 %v1340_v37, %v1334_v15 }
 0x179   : > { %v1342_v40 = vadd.f32 %v1341_v39, %v1335_v38 }
 0x17b   : > { %v1343_v16 = vrot.slane %v1342_v40, 4 }
 0x17d   : > { %v1344_v41 = vadd.f32 %v1343_v16, %v1342_v40 }
 0x17f   : > { %v1345_v42 = vrot.slane %v1344_v41, 2 }
 0x181   : > { %v1346_v17 = vadd.f32 %v1345_v42, %v1344_v41 }
 0x183   : > { %v1347_v18 = vrot.slane %v1346_v17, 1 }
 0x185   : > { %v1348_v19 = vadd.f32 %v1347_v18, %v1346_v17 }
 0x187   : > { %v1349_v43 = vmul.f32 0.015625, %v1348_v19 }
 0x189   : > { %v1350_v44 = vsub.f32 %v1328_v34, %v1349_v43  ;;  %v1351_v45 = vsub.f32 %v1329_v10, %v1349_v43  ;;  %v1352_v46 = vsub.f32 %v1330_v11, %v1349_v43  ;;  %v1353_v20 = vsub.f32 %v1331_v31, %v1349_v43 }
 0x18a   : > { %v1354_v47 = vsub.f32 %v1332_v35, %v1349_v43  ;;  %v1355_v21 = vsub.f32 %v1333_v14, %v1349_v43  ;;  %v1356_v23 = vsub.f32 %v1334_v15, %v1349_v43  ;;  %v1357_v54 = vsub.f32 %v1335_v38, %v1349_v43 }
 0x18b   : > { %v1358_v48 = vmul.f32 %v1350_v44, %v1350_v44  ;;  %v1359_v49 = vmul.f32 %v1351_v45, %v1351_v45  ;;  %v1360_v50 = vmul.f32 %v1352_v46, %v1352_v46  ;;  %v1361_v22 = vmul.f32 %v1353_v20, %v1353_v20 }
 0x18c   : > { %v1362_v52 = vmul.f32 %v1354_v47, %v1354_v47  ;;  %v1363_v55 = vmul.f32 %v1355_v21, %v1355_v21  ;;  %v1364_v56 = vmul.f32 %v1356_v23, %v1356_v23  ;;  %v1365_v58 = vmul.f32 %v1357_v54, %v1357_v54 }
 0x18d   : > { %v1366_v51 = vadd.f32 %v1359_v49, %v1358_v48 }
 0x18f   : > { %v1367_v53 = vadd.f32 %v1366_v51, %v1360_v50 }
 0x191   : > { %v1368_v24 = vadd.f32 %v1367_v53, %v1361_v22 }
 0x193   : > { %v1369_v57 = vadd.f32 %v1368_v24, %v1362_v52 }
 0x195   : > { %v1370_v59 = vadd.f32 %v1369_v57, %v1363_v55 }
 0x197   : > { %v1371_v25 = vadd.f32 %v1370_v59, %v1364_v56 }
 0x199   : > { %v1372_v26 = vadd.f32 %v1371_v25, %v1365_v58 }
 0x19b   : > { %v1373_v60 = vrot.slane %v1372_v26, 4 }
 0x19d   : > { %v1374_v27 = vadd.f32 %v1373_v60, %v1372_v26 }
 0x19f   : > { %v1375_v61 = vrot.slane %v1374_v27, 2 }
 0x1a1   : > { %v1376_v62 = vadd.f32 %v1375_v61, %v1374_v27 }
 0x1a3   : > { %v1377_v63 = vrot.slane %v1376_v62, 1 }
 0x1a5   : > { %v1378_v0 = vadd.f32 %v1377_v63, %v1376_v62 }
 0x1a7   : > { %v1379_v28 = vmul.f32 0.015625, %v1378_v0 }
 0x1a9   : > { %v1381_v1 = vadd.f32 1e-05, %v1379_v28 }
 0x1ab   : > { %2123 = vrsqrt.f32 %v1381_v1  ;;  %vm1388_vm0 = vweird.f32 %v1381_v1 }
 0x1b1   : > { %v2124_v2 = vpop.eup %2123 }
 0x1b2   : > { %v1383_v3 = vmul.f32 %v2124_v2, %v1381_v1  ;;  %vm1389_vm1 = vweird.f32 %v2124_v2 }
 0x1b3   : > { %vm1390_vm2 = vmor %vm1388_vm0, %vm1389_vm1 }
 0x1b4   : > { %v1384_v4 = vmul.f32 %v2124_v2, %v1383_v3 }
 0x1b6   : > { %v1385_v5 = vmul.f32 0.5, %v1384_v4 }
 0x1b8   : > { %v1386_v29 = vsub.f32 1.5, %v1385_v5 }
 0x1ba   : > { %v1387_v6 = vmul.f32 %v2124_v2, %v1386_v29 }
 0x1bc   : > { %v1391_v7 = vsel %vm1390_vm2, %v2124_v2, %v1387_v6 }
 0x1bd   : > { %v1392_v33 = vmul.f32 %v1391_v7, %v1380_v30 }
 0x1bf   : > { %v1394_v8 = vperm.slane %v1392_v33, 0 }
 0x1c1   : > { %v1396_v34 = vmul.f32 %v1394_v8, %v1350_v44  ;;  %v1397_v10 = vmul.f32 %v1394_v8, %v1351_v45  ;;  %v1398_v11 = vmul.f32 %v1394_v8, %v1352_v46  ;;  %v1399_v12 = vmul.f32 %v1394_v8, %v1353_v20 }
 0x1c2   : > { %v1400_v31 = vmul.f32 %v1394_v8, %v1354_v47  ;;  %v1401_v32 = vmul.f32 %v1394_v8, %v1355_v21  ;;  %v1402_v35 = vmul.f32 %v1394_v8, %v1356_v23  ;;  %v1403_v13 = vmul.f32 %v1394_v8, %v1357_v54 }
 0x1c3   : > { %v1408_v14 = vadd.f32 %v2122_v9, %v1396_v34  ;;  %v1409_v36 = vadd.f32 %v2122_v9, %v1397_v10  ;;  %v1410_v15 = vadd.f32 %v2122_v9, %v1398_v11  ;;  %v1411_v37 = vadd.f32 %v2122_v9, %v1399_v12 }
 0x1c4   : > { %v1412_v38 = vadd.f32 %v2122_v9, %v1400_v31  ;;  %v1413_v39 = vadd.f32 %v2122_v9, %v1401_v32  ;;  %v1414_v40 = vadd.f32 %v2122_v9, %v1402_v35  ;;  %v1415_v16 = vadd.f32 %v2122_v9, %v1403_v13 }
 0x1c5   : > { %vm1416_vm3 = vcmp.ge.f32.partialorder %v1408_v14, 0.0  ;;  %vm1417_vm4 = vcmp.ge.f32.partialorder %v1409_v36, 0.0  ;;  %v1424_v41 = vmul.f32 0.2, %v1408_v14  ;;  %v1425_v42 = vmul.f32 0.2, %v1409_v36 }
 0x1c6   : > { %vm1418_vm5 = vcmp.ge.f32.partialorder %v1410_v15, 0.0  ;;  %vm1419_vm6 = vcmp.ge.f32.partialorder %v1411_v37, 0.0  ;;  %v1426_v17 = vmul.f32 0.2, %v1410_v15  ;;  %v1427_v18 = vmul.f32 0.2, %v1411_v37 }
 0x1c7   : > { %v1432_v19 = vsel %vm1416_vm3, %v1408_v14, %v1424_v41  ;;  %v1433_v43 = vsel %vm1417_vm4, %v1409_v36, %v1425_v42  ;;  %vm1420_vm7 = vcmp.ge.f32.partialorder %v1412_v38, 0.0  ;;  %vm1421_vm8 = vcmp.ge.f32.partialorder %v1413_v39, 0.0 }
 0x1c8   : > { %v2061_v44 = vpack.c.bf16 %v1433_v43, %v1432_v19  ;;  %v1434_v45 = vsel %vm1418_vm5, %v1410_v15, %v1426_v17  ;;  %v1435_v46 = vsel %vm1419_vm6, %v1411_v37, %v1427_v18  ;;  %v1428_v20 = vmul.f32 0.2, %v1412_v38 }
 0x1c9   : > { %v2066_v47 = vpack.c.bf16 %v1435_v46, %v1434_v45  ;;  %v1429_v48 = vmul.f32 0.2, %v1413_v39  ;;  %vm1422_vm9 = vcmp.ge.f32.partialorder %v1414_v40, 0.0  ;;  %vm1423_vm10 = vcmp.ge.f32.partialorder %v1415_v16, 0.0 }
 0x1ca   : > { %2062 = vst [vmem:[%s2519_s4] sm:$0xff] %v2061_v44   ;;  %v1436_v49 = vsel %vm1420_vm7, %v1412_v38, %v1428_v20  ;;  %v1430_v50 = vmul.f32 0.2, %v1414_v40  ;;  %v1431_v21 = vmul.f32 0.2, %v1415_v16 }
 0x1cb   : > { %2078 = vst [vmem:[%s2519_s4 + $0x8] sm:$0xff] %v2066_v47   ;;  %v1437_v22 = vsel %vm1421_vm8, %v1413_v39, %v1429_v48 }
 0x1cc   : > { %v2071_v51 = vpack.c.bf16 %v1437_v22, %v1436_v49  ;;  %v1438_v23 = vsel %vm1422_vm9, %v1414_v40, %v1430_v50  ;;  %v1439_v52 = vsel %vm1423_vm10, %v1415_v16, %v1431_v21 }
 0x1cd   : > { %v2076_v53 = vpack.c.bf16 %v1439_v52, %v1438_v23 }
 0x1ce   : > { %2079 = vst [vmem:[%s2519_s4 + $0x10] sm:$0xff] %v2071_v51  }
 0x1cf   : > { %2080 = vst [vmem:[%s2519_s4 + $0x18] sm:$0xff] %v2076_v53  }
 0x1d0 PF: > { %s14_s19 = sadd.s32 1, %s2163_s19   ;;  %s2520_s15 = smov %s2151_s16 }
 0x1d1   : > { %p11_p12 = scmp.ge.s32.totalorder %s14_s19, 4   ;;  %s2521_s16 = smov %s2226_s23 }
 0x1d2   : > { %s2522_s17 = smov %s2159_s18  ;;  %s2523_s18 = smov %s2525_s20 }
 0x1d3   :  { %13 = sbr.rel (!%p11_p12) target bundleno = 3 (0x3), region = 111 }

// kernel: discriminator.6
= control target key start
LH: loop header
LB: loop body
LE: loop exit
PB: predicated region body
PF: predicated region fallthrough
CT: control target
= control target key end

     0   :  { %s2873_s0 = inlined_call_operand.vmem [shape: bf16[16,2048], index: 0, kind: input, shape index: {}]   ;;  %s2874_s1 = inlined_call_operand.vmem [shape: bf16[2048,256], index: 1, kind: input, shape index: {}]   ;;  %s2875_s2 = inlined_call_operand.vmem [shape: f32[1,256], index: 2, kind: input, shape index: {}]   ;;  %s2876_s3 = inlined_call_operand.vmem [shape: f32[1,256], index: 3, kind: input, shape index: {}]   ;;  %s2877_s4 = inlined_call_operand.vmem [shape: bf16[16,256], index: 4, kind: output, shape index: {}]  }
   0x1   :  { %2881 = sst [smem:[#allocation9_spill]] %s2873_s0 }
   0x2   :  { %2882 = sst [smem:[#allocation10_spill]] %s2874_s1 }
   0x3   :  { %s2342_s15 = smov 0   ;;  %s2344_s16 = smov 0  }
   0x4   :  { %s2346_s17 = smov 0   ;;  %s2348_s18 = smov 0  }
   0x5   :  { %s2350_s19 = smov 0   ;;  %s2352_s20 = smov 0  }
   0x6   :  { %s2354_s21 = smov 0   ;;  %s2356_s22 = smov 0  }
   0x7   :  { %s2358_s23 = smov 0   ;;  %s2360_s24 = smov 0  }
   0x8   :  { %s2362_s25 = smov 0  }
   0x9 LB: > { %2883 = sst [smem:[#allocation6_spill]] %s2310_s24  ;;  %s1748_s26 = sadd.s32 4294967295, %s2314_s25   ;;  %s2314_s25 = sphi %s2362_s25, %s14_s25   ;;  %s2310_s24 = sphi %s2360_s24, %s2893_s24   ;;  %s2306_s23 = sphi %s2358_s23, %s2901_s23   ;;  %s2302_s22 = sphi %s2356_s22, %s2891_s22   ;;  %s2298_s21 = sphi %s2354_s21, %s2900_s21   ;;  %s2294_s20 = sphi %s2352_s20, %s2899_s20   ;;  %s2290_s19 = sphi %s2350_s19, %s2898_s19   ;;  %s2286_s18 = sphi %s2348_s18, %s2897_s18   ;;  %s2282_s17 = sphi %s2346_s17, %s2896_s17   ;;  %s2278_s16 = sphi %s2344_s16, %s2895_s16   ;;  %s2274_s15 = sphi %s2342_s15, %s2894_s15  }
   0xa   : > { %s23_s27 = sadd.s32 1, %s2306_s23  ;;  %s26_s28 = sadd.s32 1, %s2310_s24 }
   0xb   : > { %p24_p0 = scmp.ge.s32.totalorder %s23_s27, 2  ;;  %s33_s29 = sadd.s32 1, %s2294_s20 }
   0xc   : > { %p40_p1 = scmp.ne.s32.totalorder %s2294_s20, %s2290_s19  ;;  %p41_p2 = scmp.eq.s32.totalorder %s2314_s25, 0 }
   0xd   : > { %s2903_s27 = smov (%p24_p0, %s23_s27), 0  ;;  %s2905_s28 = smov (!%p24_p0, %s26_s28), %s2310_s24 }
   0xe   : > { %2884 = sst [smem:[#allocation7_spill]] %s2903_s27  ;;  %s30_s30 = ssub.s32 %s2306_s23, %s2903_s27 }
   0xf   : > { %p28_p3 = scmp.ge.s32.totalorder %s2905_s28, 2  ;;  %p31_p4 = scmp.eq.s32.totalorder %s30_s30, 0 }
  0x10   : > { %p2409_p5 = por %p41_p2, %p40_p1  ;;  %s61_s6 = sadd.s32 1, %s2286_s18 }
  0x11   : > { %s2907_s28 = smov (%p28_p3, %s2905_s28), 0  ;;  %p68_p6 = scmp.ne.s32.totalorder %s2286_s18, %s2282_s17 }
  0x12   : > { %2886 = sst [smem:[#allocation8_spill]] %s2907_s28  ;;  %s57_s8 = ssub.s32 %s2310_s24, %s2907_s28 }
  0x13   : > { %s2417_s7 = scalar_select %p31_p4, %s2294_s20, %s33_s29  }
  0x14   : > { %s58_s9 = sor.u32 %s57_s8, %s30_s30  ;;  %p137_p7 = scmp.eq.s32.totalorder %s57_s8, 0 }
  0x15   : > { %p59_p8 = scmp.eq.s32.totalorder %s58_s9, 0  ;;  %p2423_p9 = por %p68_p6, %p41_p2 }
  0x16   : > { %s139_s11 = sadd.s32 1, %s2278_s16  ;;  %p149_p10 = scmp.ne.s32.totalorder %s2278_s16, %s2274_s15 }
  0x17   : > { %s2431_s12 = scalar_select %p59_p8, %s2286_s18, %s61_s6  }
  0x18   : > { %s2434_s13 = scalar_select %p137_p7, %s2278_s16, %s139_s11  }
  0x19   : > { %p150_p11 = scmp.eq.s32.totalorder %s1748_s26, 3  ;;  %p1751_p13 = scmp.ge.s32.totalorder %s2314_s25, 4 }
  0x1b   : > { %p2436_p12 = por %p150_p11, %p149_p10  ;;  %172 = sbr.rel (%p1751_p13) target bundleno = 188 (0xbc), region = 16 }
  0x20   : > { %175 = sbr.rel (!%p2409_p5) target bundleno = 50 (0x32), region = 20  ;;  %s177_s29 = sand.u32 (%p2409_p5), 1, %s2294_s20  }
  0x21   : > { %s2057_s30 = sshll.u32 (%p2409_p5), %s2306_s23, 5  ;;  %s1752_s8 = sshll.u32 (%p2409_p5), %s177_s29, 6 }
  0x22   : > { %s2889_s0 = sld [smem:[#allocation9_spill]] (%p2409_p5)  ;;  %s179_s26 = scalar_lea.vmem (%p2409_p5), [#allocation3], %s1752_s8 }
  0x28   : > { %s182_s11 = scalar_lea.vmem %s2889_s0, %s2057_s30 }
  0x29   : > { %v195_v0 = vld [vmem:[%s182_s11] sm:$0xff]  ;;  %v197_v1 = vld [vmem:[%s182_s11 + $0x8] sm:$0xff]  ;;  %v199_v2 = vld [vmem:[%s182_s11 + $0x10] sm:$0xff] }
  0x2a   : > { %196 = vst [vmem:[%s179_s26] sm:$0xff] %v195_v0  ;;  %v201_v3 = vld [vmem:[%s182_s11 + $0x18] sm:$0xff]  ;;  %v203_v4 = vld [vmem:[%s182_s11 + $0x40] sm:$0xff]  ;;  %v205_v5 = vld [vmem:[%s182_s11 + $0x48] sm:$0xff] }
  0x2b   : > { %198 = vst [vmem:[%s179_s26 + $0x8] sm:$0xff] %v197_v1  ;;  %v207_v6 = vld [vmem:[%s182_s11 + $0x50] sm:$0xff]  ;;  %v209_v7 = vld [vmem:[%s182_s11 + $0x58] sm:$0xff] }
  0x2c   : > { %200 = vst [vmem:[%s179_s26 + $0x10] sm:$0xff] %v199_v2 }
  0x2d   : > { %202 = vst [vmem:[%s179_s26 + $0x18] sm:$0xff] %v201_v3 }
  0x2e   : > { %204 = vst [vmem:[%s179_s26 + $0x20] sm:$0xff] %v203_v4 }
  0x2f   : > { %206 = vst [vmem:[%s179_s26 + $0x28] sm:$0xff] %v205_v5 }
  0x30   : > { %208 = vst [vmem:[%s179_s26 + $0x30] sm:$0xff] %v207_v6 }
  0x31   : > { %210 = vst [vmem:[%s179_s26 + $0x38] sm:$0xff] %v209_v7 }
  0x32 PF: > { %216 = sbr.rel (!%p2423_p9) target bundleno = 188 (0xbc), region = 43  ;;  %s218_s5 = sand.u32 (%p2423_p9), 1, %s2286_s18  }
  0x33   : > { %s2058_s29 = sshll.u32 (%p2423_p9), %s2306_s23, 8  ;;  %s1755_s30 = sshll.u32 (%p2423_p9), %s218_s5, 9 }
  0x34   : > { %s223_s8 = sadd.s32 (%p2423_p9), %s2310_s24, %s2058_s29  ;;  %s2890_s1 = sld [smem:[#allocation10_spill]] (%p2423_p9) }
  0x35   : > { %s1758_s6 = sshll.u32 (%p2423_p9), %s223_s8, 2  ;;  %s2461_s10 = scalar_lea.vmem (%p2423_p9), [#allocation4], %s1755_s30 }
  0x3a   : > { %s2456_s28 = scalar_lea.vmem %s2890_s1, %s1758_s6 }
  0x3b   : > { %v242_v8 = vld [vmem:[%s2456_s28] sm:$0xf]  ;;  %v244_v9 = vld [vmem:[%s2456_s28 + $0x8] sm:$0xf]  ;;  %v246_v10 = vld [vmem:[%s2456_s28 + $0x10] sm:$0xf] }
  0x3c   : > { %243 = vst [vmem:[%s2461_s10] sm:$0xf] %v242_v8  ;;  %v248_v11 = vld [vmem:[%s2456_s28 + $0x18] sm:$0xf]  ;;  %v250_v12 = vld [vmem:[%s2456_s28 + $0x20] sm:$0xf] }
  0x3d   : > { %245 = vst [vmem:[%s2461_s10 + $0x4] sm:$0xf] %v244_v9  ;;  %v252_v13 = vld [vmem:[%s2456_s28 + $0x28] sm:$0xf]  ;;  %v254_v14 = vld [vmem:[%s2456_s28 + $0x30] sm:$0xf] }
  0x3e   : > { %247 = vst [vmem:[%s2461_s10 + $0x8] sm:$0xf] %v246_v10  ;;  %v256_v15 = vld [vmem:[%s2456_s28 + $0x38] sm:$0xf]  ;;  %v258_v16 = vld [vmem:[%s2456_s28 + $0x40] sm:$0xf] }
  0x3f   : > { %249 = vst [vmem:[%s2461_s10 + $0xc] sm:$0xf] %v248_v11  ;;  %v260_v17 = vld [vmem:[%s2456_s28 + $0x48] sm:$0xf]  ;;  %v262_v18 = vld [vmem:[%s2456_s28 + $0x50] sm:$0xf] }
  0x40   : > { %251 = vst [vmem:[%s2461_s10 + $0x10] sm:$0xf] %v250_v12  ;;  %v264_v19 = vld [vmem:[%s2456_s28 + $0x58] sm:$0xf]  ;;  %v266_v20 = vld [vmem:[%s2456_s28 + $0x60] sm:$0xf] }
  0x41   : > { %253 = vst [vmem:[%s2461_s10 + $0x14] sm:$0xf] %v252_v13  ;;  %v268_v21 = vld [vmem:[%s2456_s28 + $0x68] sm:$0xf]  ;;  %v270_v22 = vld [vmem:[%s2456_s28 + $0x70] sm:$0xf] }
  0x42   : > { %255 = vst [vmem:[%s2461_s10 + $0x18] sm:$0xf] %v254_v14  ;;  %v272_v23 = vld [vmem:[%s2456_s28 + $0x78] sm:$0xf]  ;;  %v274_v24 = vld [vmem:[%s2456_s28 + $0x80] sm:$0xf] }
  0x43   : > { %257 = vst [vmem:[%s2461_s10 + $0x1c] sm:$0xf] %v256_v15  ;;  %v276_v25 = vld [vmem:[%s2456_s28 + $0x88] sm:$0xf]  ;;  %v278_v26 = vld [vmem:[%s2456_s28 + $0x90] sm:$0xf] }
  0x44   : > { %259 = vst [vmem:[%s2461_s10 + $0x20] sm:$0xf] %v258_v16  ;;  %v280_v27 = vld [vmem:[%s2456_s28 + $0x98] sm:$0xf]  ;;  %v282_v28 = vld [vmem:[%s2456_s28 + $0xa0] sm:$0xf] }
  0x45   : > { %261 = vst [vmem:[%s2461_s10 + $0x24] sm:$0xf] %v260_v17  ;;  %v284_v29 = vld [vmem:[%s2456_s28 + $0xa8] sm:$0xf]  ;;  %v286_v30 = vld [vmem:[%s2456_s28 + $0xb0] sm:$0xf] }
  0x46   : > { %263 = vst [vmem:[%s2461_s10 + $0x28] sm:$0xf] %v262_v18  ;;  %v288_v31 = vld [vmem:[%s2456_s28 + $0xb8] sm:$0xf]  ;;  %v290_v32 = vld [vmem:[%s2456_s28 + $0xc0] sm:$0xf] }
  0x47   : > { %265 = vst [vmem:[%s2461_s10 + $0x2c] sm:$0xf] %v264_v19  ;;  %v292_v33 = vld [vmem:[%s2456_s28 + $0xc8] sm:$0xf]  ;;  %v294_v34 = vld [vmem:[%s2456_s28 + $0xd0] sm:$0xf] }
  0x48   : > { %267 = vst [vmem:[%s2461_s10 + $0x30] sm:$0xf] %v266_v20  ;;  %v296_v35 = vld [vmem:[%s2456_s28 + $0xd8] sm:$0xf]  ;;  %v298_v36 = vld [vmem:[%s2456_s28 + $0xe0] sm:$0xf] }
  0x49   : > { %269 = vst [vmem:[%s2461_s10 + $0x34] sm:$0xf] %v268_v21  ;;  %v300_v37 = vld [vmem:[%s2456_s28 + $0xe8] sm:$0xf]  ;;  %v302_v38 = vld [vmem:[%s2456_s28 + $0xf0] sm:$0xf] }
  0x4a   : > { %271 = vst [vmem:[%s2461_s10 + $0x38] sm:$0xf] %v270_v22  ;;  %v304_v39 = vld [vmem:[%s2456_s28 + $0xf8] sm:$0xf]  ;;  %v306_v40 = vld [vmem:[%s2456_s28 + $0x100] sm:$0xf] }
  0x4b   : > { %273 = vst [vmem:[%s2461_s10 + $0x3c] sm:$0xf] %v272_v23  ;;  %v308_v41 = vld [vmem:[%s2456_s28 + $0x108] sm:$0xf]  ;;  %v310_v42 = vld [vmem:[%s2456_s28 + $0x110] sm:$0xf] }
  0x4c   : > { %275 = vst [vmem:[%s2461_s10 + $0x40] sm:$0xf] %v274_v24  ;;  %v312_v43 = vld [vmem:[%s2456_s28 + $0x118] sm:$0xf]  ;;  %v314_v44 = vld [vmem:[%s2456_s28 + $0x120] sm:$0xf] }
  0x4d   : > { %277 = vst [vmem:[%s2461_s10 + $0x44] sm:$0xf] %v276_v25  ;;  %v316_v45 = vld [vmem:[%s2456_s28 + $0x128] sm:$0xf]  ;;  %v318_v46 = vld [vmem:[%s2456_s28 + $0x130] sm:$0xf] }
  0x4e   : > { %279 = vst [vmem:[%s2461_s10 + $0x48] sm:$0xf] %v278_v26  ;;  %v320_v47 = vld [vmem:[%s2456_s28 + $0x138] sm:$0xf]  ;;  %v322_v48 = vld [vmem:[%s2456_s28 + $0x140] sm:$0xf] }
  0x4f   : > { %281 = vst [vmem:[%s2461_s10 + $0x4c] sm:$0xf] %v280_v27  ;;  %v324_v49 = vld [vmem:[%s2456_s28 + $0x148] sm:$0xf]  ;;  %v326_v50 = vld [vmem:[%s2456_s28 + $0x150] sm:$0xf] }
  0x50   : > { %283 = vst [vmem:[%s2461_s10 + $0x50] sm:$0xf] %v282_v28  ;;  %v328_v51 = vld [vmem:[%s2456_s28 + $0x158] sm:$0xf]  ;;  %v330_v52 = vld [vmem:[%s2456_s28 + $0x160] sm:$0xf] }
  0x51   : > { %285 = vst [vmem:[%s2461_s10 + $0x54] sm:$0xf] %v284_v29  ;;  %v332_v53 = vld [vmem:[%s2456_s28 + $0x168] sm:$0xf]  ;;  %v334_v54 = vld [vmem:[%s2456_s28 + $0x170] sm:$0xf] }
  0x52   : > { %287 = vst [vmem:[%s2461_s10 + $0x58] sm:$0xf] %v286_v30  ;;  %v336_v55 = vld [vmem:[%s2456_s28 + $0x178] sm:$0xf]  ;;  %v338_v56 = vld [vmem:[%s2456_s28 + $0x180] sm:$0xf] }
  0x53   : > { %289 = vst [vmem:[%s2461_s10 + $0x5c] sm:$0xf] %v288_v31  ;;  %v340_v57 = vld [vmem:[%s2456_s28 + $0x188] sm:$0xf]  ;;  %v342_v58 = vld [vmem:[%s2456_s28 + $0x190] sm:$0xf] }
  0x54   : > { %291 = vst [vmem:[%s2461_s10 + $0x60] sm:$0xf] %v290_v32  ;;  %v344_v59 = vld [vmem:[%s2456_s28 + $0x198] sm:$0xf]  ;;  %v346_v60 = vld [vmem:[%s2456_s28 + $0x1a0] sm:$0xf] }
  0x55   : > { %293 = vst [vmem:[%s2461_s10 + $0x64] sm:$0xf] %v292_v33  ;;  %v348_v61 = vld [vmem:[%s2456_s28 + $0x1a8] sm:$0xf]  ;;  %v350_v62 = vld [vmem:[%s2456_s28 + $0x1b0] sm:$0xf] }
  0x56   : > { %295 = vst [vmem:[%s2461_s10 + $0x68] sm:$0xf] %v294_v34  ;;  %v352_v63 = vld [vmem:[%s2456_s28 + $0x1b8] sm:$0xf]  ;;  %v354_v0 = vld [vmem:[%s2456_s28 + $0x1c0] sm:$0xf] }
  0x57   : > { %297 = vst [vmem:[%s2461_s10 + $0x6c] sm:$0xf] %v296_v35  ;;  %v356_v1 = vld [vmem:[%s2456_s28 + $0x1c8] sm:$0xf]  ;;  %v358_v2 = vld [vmem:[%s2456_s28 + $0x1d0] sm:$0xf] }
  0x58   : > { %299 = vst [vmem:[%s2461_s10 + $0x70] sm:$0xf] %v298_v36  ;;  %v360_v3 = vld [vmem:[%s2456_s28 + $0x1d8] sm:$0xf]  ;;  %v362_v4 = vld [vmem:[%s2456_s28 + $0x1e0] sm:$0xf] }
  0x59   : > { %301 = vst [vmem:[%s2461_s10 + $0x74] sm:$0xf] %v300_v37  ;;  %v364_v5 = vld [vmem:[%s2456_s28 + $0x1e8] sm:$0xf]  ;;  %v366_v6 = vld [vmem:[%s2456_s28 + $0x1f0] sm:$0xf] }
  0x5a   : > { %303 = vst [vmem:[%s2461_s10 + $0x78] sm:$0xf] %v302_v38  ;;  %v368_v7 = vld [vmem:[%s2456_s28 + $0x1f8] sm:$0xf]  ;;  %v370_v8 = vld [vmem:[%s2456_s28 + $0x200] sm:$0xf] }
  0x5b   : > { %305 = vst [vmem:[%s2461_s10 + $0x7c] sm:$0xf] %v304_v39  ;;  %v372_v9 = vld [vmem:[%s2456_s28 + $0x208] sm:$0xf]  ;;  %v374_v10 = vld [vmem:[%s2456_s28 + $0x210] sm:$0xf] }
  0x5c   : > { %307 = vst [vmem:[%s2461_s10 + $0x80] sm:$0xf] %v306_v40  ;;  %v376_v11 = vld [vmem:[%s2456_s28 + $0x218] sm:$0xf]  ;;  %v378_v12 = vld [vmem:[%s2456_s28 + $0x220] sm:$0xf] }
  0x5d   : > { %309 = vst [vmem:[%s2461_s10 + $0x84] sm:$0xf] %v308_v41  ;;  %v380_v13 = vld [vmem:[%s2456_s28 + $0x228] sm:$0xf]  ;;  %v382_v14 = vld [vmem:[%s2456_s28 + $0x230] sm:$0xf] }
  0x5e   : > { %311 = vst [vmem:[%s2461_s10 + $0x88] sm:$0xf] %v310_v42  ;;  %v384_v15 = vld [vmem:[%s2456_s28 + $0x238] sm:$0xf]  ;;  %v386_v16 = vld [vmem:[%s2456_s28 + $0x240] sm:$0xf] }
  0x5f   : > { %313 = vst [vmem:[%s2461_s10 + $0x8c] sm:$0xf] %v312_v43  ;;  %v388_v17 = vld [vmem:[%s2456_s28 + $0x248] sm:$0xf]  ;;  %v390_v18 = vld [vmem:[%s2456_s28 + $0x250] sm:$0xf] }
  0x60   : > { %315 = vst [vmem:[%s2461_s10 + $0x90] sm:$0xf] %v314_v44  ;;  %v392_v19 = vld [vmem:[%s2456_s28 + $0x258] sm:$0xf]  ;;  %v394_v20 = vld [vmem:[%s2456_s28 + $0x260] sm:$0xf] }
  0x61   : > { %317 = vst [vmem:[%s2461_s10 + $0x94] sm:$0xf] %v316_v45  ;;  %v396_v21 = vld [vmem:[%s2456_s28 + $0x268] sm:$0xf]  ;;  %v398_v22 = vld [vmem:[%s2456_s28 + $0x270] sm:$0xf] }
  0x62   : > { %319 = vst [vmem:[%s2461_s10 + $0x98] sm:$0xf] %v318_v46  ;;  %v400_v23 = vld [vmem:[%s2456_s28 + $0x278] sm:$0xf]  ;;  %v402_v24 = vld [vmem:[%s2456_s28 + $0x280] sm:$0xf] }
  0x63   : > { %321 = vst [vmem:[%s2461_s10 + $0x9c] sm:$0xf] %v320_v47  ;;  %v404_v25 = vld [vmem:[%s2456_s28 + $0x288] sm:$0xf]  ;;  %v406_v26 = vld [vmem:[%s2456_s28 + $0x290] sm:$0xf] }
  0x64   : > { %323 = vst [vmem:[%s2461_s10 + $0xa0] sm:$0xf] %v322_v48  ;;  %v408_v27 = vld [vmem:[%s2456_s28 + $0x298] sm:$0xf]  ;;  %v410_v28 = vld [vmem:[%s2456_s28 + $0x2a0] sm:$0xf] }
  0x65   : > { %325 = vst [vmem:[%s2461_s10 + $0xa4] sm:$0xf] %v324_v49  ;;  %v412_v29 = vld [vmem:[%s2456_s28 + $0x2a8] sm:$0xf]  ;;  %v414_v30 = vld [vmem:[%s2456_s28 + $0x2b0] sm:$0xf] }
  0x66   : > { %327 = vst [vmem:[%s2461_s10 + $0xa8] sm:$0xf] %v326_v50  ;;  %v416_v31 = vld [vmem:[%s2456_s28 + $0x2b8] sm:$0xf]  ;;  %v418_v32 = vld [vmem:[%s2456_s28 + $0x2c0] sm:$0xf] }
  0x67   : > { %329 = vst [vmem:[%s2461_s10 + $0xac] sm:$0xf] %v328_v51  ;;  %v420_v33 = vld [vmem:[%s2456_s28 + $0x2c8] sm:$0xf]  ;;  %v422_v34 = vld [vmem:[%s2456_s28 + $0x2d0] sm:$0xf] }
  0x68   : > { %331 = vst [vmem:[%s2461_s10 + $0xb0] sm:$0xf] %v330_v52  ;;  %v424_v35 = vld [vmem:[%s2456_s28 + $0x2d8] sm:$0xf]  ;;  %v426_v36 = vld [vmem:[%s2456_s28 + $0x2e0] sm:$0xf] }
  0x69   : > { %333 = vst [vmem:[%s2461_s10 + $0xb4] sm:$0xf] %v332_v53  ;;  %v428_v37 = vld [vmem:[%s2456_s28 + $0x2e8] sm:$0xf]  ;;  %v430_v38 = vld [vmem:[%s2456_s28 + $0x2f0] sm:$0xf] }
  0x6a   : > { %335 = vst [vmem:[%s2461_s10 + $0xb8] sm:$0xf] %v334_v54  ;;  %v432_v39 = vld [vmem:[%s2456_s28 + $0x2f8] sm:$0xf]  ;;  %v434_v40 = vld [vmem:[%s2456_s28 + $0x300] sm:$0xf] }
  0x6b   : > { %337 = vst [vmem:[%s2461_s10 + $0xbc] sm:$0xf] %v336_v55  ;;  %v436_v41 = vld [vmem:[%s2456_s28 + $0x308] sm:$0xf]  ;;  %v438_v42 = vld [vmem:[%s2456_s28 + $0x310] sm:$0xf] }
  0x6c   : > { %339 = vst [vmem:[%s2461_s10 + $0xc0] sm:$0xf] %v338_v56  ;;  %v440_v43 = vld [vmem:[%s2456_s28 + $0x318] sm:$0xf]  ;;  %v442_v44 = vld [vmem:[%s2456_s28 + $0x320] sm:$0xf] }
  0x6d   : > { %341 = vst [vmem:[%s2461_s10 + $0xc4] sm:$0xf] %v340_v57  ;;  %v444_v45 = vld [vmem:[%s2456_s28 + $0x328] sm:$0xf]  ;;  %v446_v46 = vld [vmem:[%s2456_s28 + $0x330] sm:$0xf] }
  0x6e   : > { %343 = vst [vmem:[%s2461_s10 + $0xc8] sm:$0xf] %v342_v58  ;;  %v448_v47 = vld [vmem:[%s2456_s28 + $0x338] sm:$0xf]  ;;  %v450_v48 = vld [vmem:[%s2456_s28 + $0x340] sm:$0xf] }
  0x6f   : > { %345 = vst [vmem:[%s2461_s10 + $0xcc] sm:$0xf] %v344_v59  ;;  %v452_v49 = vld [vmem:[%s2456_s28 + $0x348] sm:$0xf]  ;;  %v454_v50 = vld [vmem:[%s2456_s28 + $0x350] sm:$0xf] }
  0x70   : > { %347 = vst [vmem:[%s2461_s10 + $0xd0] sm:$0xf] %v346_v60  ;;  %v456_v51 = vld [vmem:[%s2456_s28 + $0x358] sm:$0xf]  ;;  %v458_v52 = vld [vmem:[%s2456_s28 + $0x360] sm:$0xf] }
  0x71   : > { %349 = vst [vmem:[%s2461_s10 + $0xd4] sm:$0xf] %v348_v61  ;;  %v460_v53 = vld [vmem:[%s2456_s28 + $0x368] sm:$0xf]  ;;  %v462_v54 = vld [vmem:[%s2456_s28 + $0x370] sm:$0xf] }
  0x72   : > { %351 = vst [vmem:[%s2461_s10 + $0xd8] sm:$0xf] %v350_v62  ;;  %v464_v55 = vld [vmem:[%s2456_s28 + $0x378] sm:$0xf]  ;;  %v466_v56 = vld [vmem:[%s2456_s28 + $0x380] sm:$0xf] }
  0x73   : > { %353 = vst [vmem:[%s2461_s10 + $0xdc] sm:$0xf] %v352_v63  ;;  %v468_v57 = vld [vmem:[%s2456_s28 + $0x388] sm:$0xf]  ;;  %v470_v58 = vld [vmem:[%s2456_s28 + $0x390] sm:$0xf] }
  0x74   : > { %355 = vst [vmem:[%s2461_s10 + $0xe0] sm:$0xf] %v354_v0  ;;  %v472_v59 = vld [vmem:[%s2456_s28 + $0x398] sm:$0xf]  ;;  %v474_v60 = vld [vmem:[%s2456_s28 + $0x3a0] sm:$0xf] }
  0x75   : > { %357 = vst [vmem:[%s2461_s10 + $0xe4] sm:$0xf] %v356_v1  ;;  %v476_v61 = vld [vmem:[%s2456_s28 + $0x3a8] sm:$0xf]  ;;  %v478_v62 = vld [vmem:[%s2456_s28 + $0x3b0] sm:$0xf] }
  0x76   : > { %359 = vst [vmem:[%s2461_s10 + $0xe8] sm:$0xf] %v358_v2  ;;  %v480_v63 = vld [vmem:[%s2456_s28 + $0x3b8] sm:$0xf]  ;;  %v482_v0 = vld [vmem:[%s2456_s28 + $0x3c0] sm:$0xf] }
  0x77   : > { %361 = vst [vmem:[%s2461_s10 + $0xec] sm:$0xf] %v360_v3  ;;  %v484_v1 = vld [vmem:[%s2456_s28 + $0x3c8] sm:$0xf]  ;;  %v486_v2 = vld [vmem:[%s2456_s28 + $0x3d0] sm:$0xf] }
  0x78   : > { %363 = vst [vmem:[%s2461_s10 + $0xf0] sm:$0xf] %v362_v4  ;;  %v488_v3 = vld [vmem:[%s2456_s28 + $0x3d8] sm:$0xf]  ;;  %v490_v4 = vld [vmem:[%s2456_s28 + $0x3e0] sm:$0xf] }
  0x79   : > { %365 = vst [vmem:[%s2461_s10 + $0xf4] sm:$0xf] %v364_v5  ;;  %v492_v5 = vld [vmem:[%s2456_s28 + $0x3e8] sm:$0xf] }
  0x7a   : > { %367 = vst [vmem:[%s2461_s10 + $0xf8] sm:$0xf] %v366_v6  ;;  %v494_v6 = vld [vmem:[%s2456_s28 + $0x3f0] sm:$0xf] }
  0x7b   : > { %369 = vst [vmem:[%s2461_s10 + $0xfc] sm:$0xf] %v368_v7  ;;  %v496_v7 = vld [vmem:[%s2456_s28 + $0x3f8] sm:$0xf] }
  0x7c   : > { %371 = vst [vmem:[%s2461_s10 + $0x100] sm:$0xf] %v370_v8 }
  0x7d   : > { %373 = vst [vmem:[%s2461_s10 + $0x104] sm:$0xf] %v372_v9 }
  0x7e   : > { %375 = vst [vmem:[%s2461_s10 + $0x108] sm:$0xf] %v374_v10 }
  0x7f   : > { %377 = vst [vmem:[%s2461_s10 + $0x10c] sm:$0xf] %v376_v11 }
  0x80   : > { %379 = vst [vmem:[%s2461_s10 + $0x110] sm:$0xf] %v378_v12 }
  0x81   : > { %381 = vst [vmem:[%s2461_s10 + $0x114] sm:$0xf] %v380_v13 }
  0x82   : > { %383 = vst [vmem:[%s2461_s10 + $0x118] sm:$0xf] %v382_v14 }
  0x83   : > { %385 = vst [vmem:[%s2461_s10 + $0x11c] sm:$0xf] %v384_v15 }
  0x84   : > { %387 = vst [vmem:[%s2461_s10 + $0x120] sm:$0xf] %v386_v16 }
  0x85   : > { %389 = vst [vmem:[%s2461_s10 + $0x124] sm:$0xf] %v388_v17 }
  0x86   : > { %391 = vst [vmem:[%s2461_s10 + $0x128] sm:$0xf] %v390_v18 }
  0x87   : > { %393 = vst [vmem:[%s2461_s10 + $0x12c] sm:$0xf] %v392_v19 }
  0x88   : > { %395 = vst [vmem:[%s2461_s10 + $0x130] sm:$0xf] %v394_v20 }
  0x89   : > { %397 = vst [vmem:[%s2461_s10 + $0x134] sm:$0xf] %v396_v21 }
  0x8a   : > { %399 = vst [vmem:[%s2461_s10 + $0x138] sm:$0xf] %v398_v22 }
  0x8b   : > { %401 = vst [vmem:[%s2461_s10 + $0x13c] sm:$0xf] %v400_v23 }
  0x8c   : > { %403 = vst [vmem:[%s2461_s10 + $0x140] sm:$0xf] %v402_v24 }
  0x8d   : > { %405 = vst [vmem:[%s2461_s10 + $0x144] sm:$0xf] %v404_v25 }
  0x8e   : > { %407 = vst [vmem:[%s2461_s10 + $0x148] sm:$0xf] %v406_v26 }
  0x8f   : > { %409 = vst [vmem:[%s2461_s10 + $0x14c] sm:$0xf] %v408_v27 }
  0x90   : > { %411 = vst [vmem:[%s2461_s10 + $0x150] sm:$0xf] %v410_v28 }
  0x91   : > { %413 = vst [vmem:[%s2461_s10 + $0x154] sm:$0xf] %v412_v29 }
  0x92   : > { %415 = vst [vmem:[%s2461_s10 + $0x158] sm:$0xf] %v414_v30 }
  0x93   : > { %417 = vst [vmem:[%s2461_s10 + $0x15c] sm:$0xf] %v416_v31 }
  0x94   : > { %419 = vst [vmem:[%s2461_s10 + $0x160] sm:$0xf] %v418_v32 }
  0x95   : > { %421 = vst [vmem:[%s2461_s10 + $0x164] sm:$0xf] %v420_v33 }
  0x96   : > { %423 = vst [vmem:[%s2461_s10 + $0x168] sm:$0xf] %v422_v34 }
  0x97   : > { %425 = vst [vmem:[%s2461_s10 + $0x16c] sm:$0xf] %v424_v35 }
  0x98   : > { %427 = vst [vmem:[%s2461_s10 + $0x170] sm:$0xf] %v426_v36 }
  0x99   : > { %429 = vst [vmem:[%s2461_s10 + $0x174] sm:$0xf] %v428_v37 }
  0x9a   : > { %431 = vst [vmem:[%s2461_s10 + $0x178] sm:$0xf] %v430_v38 }
  0x9b   : > { %433 = vst [vmem:[%s2461_s10 + $0x17c] sm:$0xf] %v432_v39 }
  0x9c   : > { %435 = vst [vmem:[%s2461_s10 + $0x180] sm:$0xf] %v434_v40 }
  0x9d   : > { %437 = vst [vmem:[%s2461_s10 + $0x184] sm:$0xf] %v436_v41 }
  0x9e   : > { %439 = vst [vmem:[%s2461_s10 + $0x188] sm:$0xf] %v438_v42 }
  0x9f   : > { %441 = vst [vmem:[%s2461_s10 + $0x18c] sm:$0xf] %v440_v43 }
  0xa0   : > { %443 = vst [vmem:[%s2461_s10 + $0x190] sm:$0xf] %v442_v44 }
  0xa1   : > { %445 = vst [vmem:[%s2461_s10 + $0x194] sm:$0xf] %v444_v45 }
  0xa2   : > { %447 = vst [vmem:[%s2461_s10 + $0x198] sm:$0xf] %v446_v46 }
  0xa3   : > { %449 = vst [vmem:[%s2461_s10 + $0x19c] sm:$0xf] %v448_v47 }
  0xa4   : > { %451 = vst [vmem:[%s2461_s10 + $0x1a0] sm:$0xf] %v450_v48 }
  0xa5   : > { %453 = vst [vmem:[%s2461_s10 + $0x1a4] sm:$0xf] %v452_v49 }
  0xa6   : > { %455 = vst [vmem:[%s2461_s10 + $0x1a8] sm:$0xf] %v454_v50 }
  0xa7   : > { %457 = vst [vmem:[%s2461_s10 + $0x1ac] sm:$0xf] %v456_v51 }
  0xa8   : > { %459 = vst [vmem:[%s2461_s10 + $0x1b0] sm:$0xf] %v458_v52 }
  0xa9   : > { %461 = vst [vmem:[%s2461_s10 + $0x1b4] sm:$0xf] %v460_v53 }
  0xaa   : > { %463 = vst [vmem:[%s2461_s10 + $0x1b8] sm:$0xf] %v462_v54 }
  0xab   : > { %465 = vst [vmem:[%s2461_s10 + $0x1bc] sm:$0xf] %v464_v55 }
  0xac   : > { %467 = vst [vmem:[%s2461_s10 + $0x1c0] sm:$0xf] %v466_v56 }
  0xad   : > { %469 = vst [vmem:[%s2461_s10 + $0x1c4] sm:$0xf] %v468_v57 }
  0xae   : > { %471 = vst [vmem:[%s2461_s10 + $0x1c8] sm:$0xf] %v470_v58 }
  0xaf   : > { %473 = vst [vmem:[%s2461_s10 + $0x1cc] sm:$0xf] %v472_v59 }
  0xb0   : > { %475 = vst [vmem:[%s2461_s10 + $0x1d0] sm:$0xf] %v474_v60 }
  0xb1   : > { %477 = vst [vmem:[%s2461_s10 + $0x1d4] sm:$0xf] %v476_v61 }
  0xb2   : > { %479 = vst [vmem:[%s2461_s10 + $0x1d8] sm:$0xf] %v478_v62 }
  0xb3   : > { %481 = vst [vmem:[%s2461_s10 + $0x1dc] sm:$0xf] %v480_v63 }
  0xb4   : > { %483 = vst [vmem:[%s2461_s10 + $0x1e0] sm:$0xf] %v482_v0 }
  0xb5   : > { %485 = vst [vmem:[%s2461_s10 + $0x1e4] sm:$0xf] %v484_v1 }
  0xb6   : > { %487 = vst [vmem:[%s2461_s10 + $0x1e8] sm:$0xf] %v486_v2 }
  0xb7   : > { %489 = vst [vmem:[%s2461_s10 + $0x1ec] sm:$0xf] %v488_v3 }
  0xb8   : > { %491 = vst [vmem:[%s2461_s10 + $0x1f0] sm:$0xf] %v490_v4 }
  0xb9   : > { %493 = vst [vmem:[%s2461_s10 + $0x1f4] sm:$0xf] %v492_v5 }
  0xba   : > { %495 = vst [vmem:[%s2461_s10 + $0x1f8] sm:$0xf] %v494_v6 }
  0xbb   : > { %497 = vst [vmem:[%s2461_s10 + $0x1fc] sm:$0xf] %v496_v7 }
  0xbc PF: > { %p1759_p0 = scmp.ge.s32.totalorder %s2314_s25, 1  ;;  %p788_p1 = scmp.lt.s32.totalorder %s2314_s25, 5 }
  0xbe   : > { %p789_p2 = pnand %p1759_p0, %p788_p1 }
  0xbf   : > { %s795_s0 = sand.u32 (!%p789_p2), 1, %s2290_s19   ;;  %s802_s11 = sand.u32 (!%p789_p2), 1, %s2282_s17  }
  0xc0   : > { %792 = sbr.rel (%p789_p2) target bundleno = 505 (0x1f9), region = 92  ;;  %s1760_s26 = sshll.u32 (!%p789_p2), %s795_s0, 6 }
  0xc1   : > { %s1761_s28 = sshll.u32 (!%p789_p2), %s802_s11, 9  ;;  %s833_s5 = sand.u32 (!%p789_p2), 1, %s2274_s15  }
  0xc2   : > { %p838_p3 = scmp.lt.s32.totalorder (!%p789_p2), %s2302_s22, 1  ;;  %s1762_s29 = sshll.u32 (!%p789_p2), %s833_s5, 3 }
  0xc3   : > { %s2733_s24 = scalar_lea.vmem (!%p789_p2), [#allocation3], %s1760_s26  ;;  %s2735_s17 = scalar_lea.vmem (!%p789_p2), [#allocation4], %s1761_s28 }
  0xc4   : > { %s2737_s19 = scalar_lea.vmem (!%p789_p2), [#allocation5], %s1762_s29  ;;  %p1763_p4 = scmp.ne.s32.totalorder (!%p789_p2), %s2298_s21, 0 }
  0xc5   : > { %s2723_s30 = scalar_select %p838_p3, %s2302_s22, 1 }
  0xc6   : > { %847 = sbr.rel (%p1763_p4) target bundleno = 206 (0xce), region = 104 }
  0xc7   : > { %s840_s9 = scalar_lea.vmem %s2875_s2, %s2723_s30  ;;  %s843_s27 = scalar_lea.vmem %s2876_s3, %s2723_s30 }
  0xcb   : > { %v2316_v8 = vmov 0.0  }
  0xcc   : > { %848 = vst [vmem:[#allocation2] sm:$0xff] %v2316_v8 }
  0xcd   : > { %849 = vst [vmem:[#allocation2 + $0x8] sm:$0xff] %v2316_v8 }
  0xce PF: > { %v2074_v9 = vld [vmem:[%s2735_s17 + $0x38] sm:$0xff]  ;;  %v2073_v13 = vld [vmem:[%s2735_s17 + $0x30] sm:$0xff]  ;;  %v2072_v17 = vld [vmem:[%s2735_s17 + $0x28] sm:$0xff]  ;;  %p2052_p5 = scmp.ne.s32.totalorder %s2298_s21, 1 }
  0xcf   : > { %v2082_v10 = vld [vmem:[%s2735_s17 + $0x78] sm:$0xff]  ;;  %1412 = vmatpush.bf16.msra.mxu0 %v2074_v9  ;;  %v2081_v14 = vld [vmem:[%s2735_s17 + $0x70] sm:$0xff]  ;;  %v2080_v18 = vld [vmem:[%s2735_s17 + $0x68] sm:$0xff] }
  0xd0   : > { %v2090_v11 = vld [vmem:[%s2735_s17 + $0xb8] sm:$0xff]  ;;  %1426 = vmatpush.bf16.msra.mxu1 %v2082_v10  ;;  %v2089_v15 = vld [vmem:[%s2735_s17 + $0xb0] sm:$0xff]  ;;  %v2088_v19 = vld [vmem:[%s2735_s17 + $0xa8] sm:$0xff] }
  0xd1   : > { %v2098_v12 = vld [vmem:[%s2735_s17 + $0xf8] sm:$0xff]  ;;  %1440 = vmatpush.bf16.msra.mxu2 %v2090_v11  ;;  %v2097_v16 = vld [vmem:[%s2735_s17 + $0xf0] sm:$0xff]  ;;  %v2096_v20 = vld [vmem:[%s2735_s17 + $0xe8] sm:$0xff] }
  0xd2   : > { %1454 = vmatpush.bf16.msra.mxu3 %v2098_v12  ;;  %v2071_v21 = vld [vmem:[%s2735_s17 + $0x20] sm:$0xff]  ;;  %v2070_v25 = vld [vmem:[%s2735_s17 + $0x18] sm:$0xff]  ;;  %v2069_v29 = vld [vmem:[%s2735_s17 + $0x10] sm:$0xff] }
  0xd3   : > { %1413 = vmatpush.bf16.msra.mxu0 %v2073_v13  ;;  %v2079_v22 = vld [vmem:[%s2735_s17 + $0x60] sm:$0xff]  ;;  %v2078_v26 = vld [vmem:[%s2735_s17 + $0x58] sm:$0xff]  ;;  %v2077_v30 = vld [vmem:[%s2735_s17 + $0x50] sm:$0xff] }
  0xd4   : > { %1427 = vmatpush.bf16.msra.mxu1 %v2081_v14  ;;  %v2087_v23 = vld [vmem:[%s2735_s17 + $0xa0] sm:$0xff]  ;;  %v2086_v27 = vld [vmem:[%s2735_s17 + $0x98] sm:$0xff]  ;;  %v2085_v31 = vld [vmem:[%s2735_s17 + $0x90] sm:$0xff] }
  0xd5   : > { %1441 = vmatpush.bf16.msra.mxu2 %v2089_v15  ;;  %v2095_v24 = vld [vmem:[%s2735_s17 + $0xe0] sm:$0xff]  ;;  %v2094_v28 = vld [vmem:[%s2735_s17 + $0xd8] sm:$0xff]  ;;  %v2093_v32 = vld [vmem:[%s2735_s17 + $0xd0] sm:$0xff] }
  0xd6   : > { %1455 = vmatpush.bf16.msra.mxu3 %v2097_v16  ;;  %v2068_v33 = vld [vmem:[%s2735_s17 + $0x8] sm:$0xff]  ;;  %v2067_v37 = vld [vmem:[%s2735_s17] sm:$0xff]  ;;  %v2106_v41 = vld [vmem:[%s2735_s17 + $0x138] sm:$0xff] }
  0xd7   : > { %1414 = vmatpush.bf16.msra.mxu0 %v2072_v17  ;;  %v2076_v34 = vld [vmem:[%s2735_s17 + $0x48] sm:$0xff]  ;;  %v2075_v38 = vld [vmem:[%s2735_s17 + $0x40] sm:$0xff]  ;;  %v2114_v42 = vld [vmem:[%s2735_s17 + $0x178] sm:$0xff] }
  0xd8   : > { %1428 = vmatpush.bf16.msra.mxu1 %v2080_v18  ;;  %v2084_v35 = vld [vmem:[%s2735_s17 + $0x88] sm:$0xff]  ;;  %v2083_v39 = vld [vmem:[%s2735_s17 + $0x80] sm:$0xff]  ;;  %v2122_v51 = vld [vmem:[%s2735_s17 + $0x1b8] sm:$0xff] }
  0xd9   : > { %1442 = vmatpush.bf16.msra.mxu2 %v2088_v19  ;;  %v2092_v36 = vld [vmem:[%s2735_s17 + $0xc8] sm:$0xff]  ;;  %v2091_v40 = vld [vmem:[%s2735_s17 + $0xc0] sm:$0xff]  ;;  %v2130_v52 = vld [vmem:[%s2735_s17 + $0x1f8] sm:$0xff] }
  0xda   : > { %1456 = vmatpush.bf16.msra.mxu3 %v2096_v20  ;;  %v1774_v43 = vld [vmem:[%s2733_s24 + $0x8] sm:$0xf]  ;;  %v2060_v45 = vld [vmem:[%s2733_s24 + $0xc] sm:$0xf]  ;;  %v1766_v47 = vld [vmem:[%s2733_s24] sm:$0xf] }
  0xdb   : > { %1415 = vmatpush.bf16.msra.mxu0 %v2071_v21  ;;  %v2064_v44 = vld [vmem:[%s2733_s24 + $0x24] sm:$0xf0]  ;;  %v1776_v46 = vld [vmem:[%s2733_s24 + $0x28] sm:$0xf0]  ;;  %v2063_v48 = vld [vmem:[%s2733_s24 + $0x1c] sm:$0xf0] }
  0xdc   : > { %1429 = vmatpush.bf16.msra.mxu1 %v2079_v22  ;;  %v2059_v49 = vld [vmem:[%s2733_s24 + $0x4] sm:$0xf]  ;;  %v1775_v53 = vor.u32 %v2064_v44, %v1774_v43  ;;  %v1779_v54 = vor.u32 %v2060_v45, %v1776_v46  ;;  %v1767_v55 = vor.u32 %v2063_v48, %v1766_v47  ;;  %v2105_v57 = vld [vmem:[%s2735_s17 + $0x130] sm:$0xff]  ;;  %v2104_v61 = vld [vmem:[%s2735_s17 + $0x128] sm:$0xff] }
  0xdd   : > { %1443 = vmatpush.bf16.msra.mxu2 %v2087_v23  ;;  %v1768_v50 = vld [vmem:[%s2733_s24 + $0x20] sm:$0xf0]  ;;  %v2113_v58 = vld [vmem:[%s2735_s17 + $0x170] sm:$0xff]  ;;  %v2112_v62 = vld [vmem:[%s2735_s17 + $0x168] sm:$0xff] }
  0xde   : > { %1457 = vmatpush.bf16.msra.mxu3 %v2095_v24  ;;  %v1771_v56 = vor.u32 %v2059_v49, %v1768_v50  ;;  %v2121_v59 = vld [vmem:[%s2735_s17 + $0x1b0] sm:$0xff]  ;;  %v2120_v63 = vld [vmem:[%s2735_s17 + $0x1a8] sm:$0xff]  ;;  %v2103_v1 = vld [vmem:[%s2735_s17 + $0x120] sm:$0xff] }
  0xdf   : > { %1416 = vmatpush.bf16.msra.mxu0 %v2070_v25  ;;  %v2129_v60 = vld [vmem:[%s2735_s17 + $0x1f0] sm:$0xff]  ;;  %v2128_v0 = vld [vmem:[%s2735_s17 + $0x1e8] sm:$0xff]  ;;  %v2111_v2 = vld [vmem:[%s2735_s17 + $0x160] sm:$0xff] }
  0xe0   : > { %1430 = vmatpush.bf16.msra.mxu1 %v2078_v26  ;;  %v2119_v3 = vld [vmem:[%s2735_s17 + $0x1a0] sm:$0xff]  ;;  %v2102_v5 = vld [vmem:[%s2735_s17 + $0x118] sm:$0xff]  ;;  %v2101_v9 = vld [vmem:[%s2735_s17 + $0x110] sm:$0xff] }
  0xe1   : > { %1444 = vmatpush.bf16.msra.mxu2 %v2086_v27  ;;  %v2127_v4 = vld [vmem:[%s2735_s17 + $0x1e0] sm:$0xff]  ;;  %v2110_v6 = vld [vmem:[%s2735_s17 + $0x158] sm:$0xff]  ;;  %v2109_v10 = vld [vmem:[%s2735_s17 + $0x150] sm:$0xff] }
  0xe2   : > { %1458 = vmatpush.bf16.msra.mxu3 %v2094_v28  ;;  %v2118_v7 = vld [vmem:[%s2735_s17 + $0x198] sm:$0xff]  ;;  %v2117_v11 = vld [vmem:[%s2735_s17 + $0x190] sm:$0xff]  ;;  %v2100_v13 = vld [vmem:[%s2735_s17 + $0x108] sm:$0xff] }
  0xe3   : > { %1417 = vmatpush.bf16.msra.mxu0 %v2069_v29  ;;  %v2126_v8 = vld [vmem:[%s2735_s17 + $0x1d8] sm:$0xff]  ;;  %v2125_v12 = vld [vmem:[%s2735_s17 + $0x1d0] sm:$0xff]  ;;  %v2108_v14 = vld [vmem:[%s2735_s17 + $0x148] sm:$0xff] }
  0xe4   : > { %1431 = vmatpush.bf16.msra.mxu1 %v2077_v30  ;;  %v2116_v15 = vld [vmem:[%s2735_s17 + $0x188] sm:$0xff]  ;;  %v2099_v17 = vld [vmem:[%s2735_s17 + $0x100] sm:$0xff]  ;;  %v1782_v21 = vld [vmem:[%s2733_s24 + $0x10] sm:$0xf] }
  0xe5   : > { %1445 = vmatpush.bf16.msra.mxu2 %v2085_v31  ;;  %v2124_v16 = vld [vmem:[%s2735_s17 + $0x1c8] sm:$0xff]  ;;  %v2107_v18 = vld [vmem:[%s2735_s17 + $0x140] sm:$0xff]  ;;  %v2065_v22 = vld [vmem:[%s2733_s24 + $0x2c] sm:$0xf0] }
  0xe6   : > { %1459 = vmatpush.bf16.msra.mxu3 %v2093_v32  ;;  %v2115_v19 = vld [vmem:[%s2735_s17 + $0x180] sm:$0xff]  ;;  %v2061_v23 = vld [vmem:[%s2733_s24 + $0x14] sm:$0xf]  ;;  %v1790_v25 = vld [vmem:[%s2733_s24 + $0x18] sm:$0xf]  ;;  %v1783_v29 = vor.u32 %v2065_v22, %v1782_v21 }
  0xe7   : > { %1418 = vmatpush.bf16.msra.mxu0 %v2068_v33  ;;  %v2123_v20 = vld [vmem:[%s2735_s17 + $0x1c0] sm:$0xff]  ;;  %v1784_v24 = vld [vmem:[%s2733_s24 + $0x30] sm:$0xf0]  ;;  %v2066_v26 = vld [vmem:[%s2733_s24 + $0x34] sm:$0xf0] }
  0xe8   : > { %1432 = vmatpush.bf16.msra.mxu1 %v2076_v34  ;;  %v2062_v27 = vld [vmem:[%s2733_s24 + $0x1c] sm:$0xf]  ;;  %v1787_v30 = vor.u32 %v2061_v23, %v1784_v24  ;;  %v1791_v31 = vor.u32 %v2066_v26, %v1790_v25 }
  0xe9   : > { %1446 = vmatpush.bf16.msra.mxu2 %v2084_v35  ;;  %v1792_v28 = vld [vmem:[%s2733_s24 + $0x38] sm:$0xf0] }
  0xea   : > { %1460 = vmatpush.bf16.msra.mxu3 %v2092_v36  ;;  %v1795_v32 = vor.u32 %v2062_v27, %v1792_v28 }
  0xeb   : > { %1419 = vmatpush.bf16.msra.mxu0 %v2067_v37 }
  0xec   : > { %1433 = vmatpush.bf16.msra.mxu1 %v2075_v38 }
  0xed   : > { %1447 = vmatpush.bf16.msra.mxu2 %v2083_v39 }
  0xee   : > { %1461 = vmatpush.bf16.msra.mxu3 %v2091_v40  ;;  %1420 = vmatmul.bf16.vlgmr.msra.gmra.mxu0 %v1767_v55  ;;  %v850_v55 = vld [vmem:[#allocation2] sm:$0xff] }
  0xef   : > { %1468 = vmatpush.bf16.msrb.mxu0 %v2106_v41  ;;  %1434 = vmatmul.bf16.vlgmr.msra.gmra.mxu1 %v1771_v56 }
  0xf0   : > { %1482 = vmatpush.bf16.msrb.mxu1 %v2114_v42  ;;  %1448 = vmatmul.bf16.vlgmr.msra.gmra.mxu2 %v1775_v53 }
  0xf1   : > { %1496 = vmatpush.bf16.msrb.mxu2 %v2122_v51  ;;  %1462 = vmatmul.bf16.vlgmr.msra.gmra.mxu3 %v1779_v54 }
  0xf2   : > { %1510 = vmatpush.bf16.msrb.mxu3 %v2130_v52 }
  0xf3   : > { %1469 = vmatpush.bf16.msrb.mxu0 %v2105_v57 }
  0xf4   : > { %1483 = vmatpush.bf16.msrb.mxu1 %v2113_v58 }
  0xf5   : > { %1497 = vmatpush.bf16.msrb.mxu2 %v2121_v59 }
  0xf6   : > { %1511 = vmatpush.bf16.msrb.mxu3 %v2129_v60 }
  0xf7   : > { %1470 = vmatpush.bf16.msrb.mxu0 %v2104_v61 }
  0xf8   : > { %1484 = vmatpush.bf16.msrb.mxu1 %v2112_v62 }
  0xf9   : > { %1498 = vmatpush.bf16.msrb.mxu2 %v2120_v63  ;;  %v851_v63 = vld [vmem:[#allocation2 + $0x8] sm:$0xff] }
  0xfa   : > { %1512 = vmatpush.bf16.msrb.mxu3 %v2128_v0 }
  0xfb   : > { %1471 = vmatpush.bf16.msrb.mxu0 %v2103_v1 }
  0xfc   : > { %1485 = vmatpush.bf16.msrb.mxu1 %v2111_v2 }
  0xfd   : > { %1499 = vmatpush.bf16.msrb.mxu2 %v2119_v3 }
  0xfe   : > { %1513 = vmatpush.bf16.msrb.mxu3 %v2127_v4 }
  0xff   : > { %1472 = vmatpush.bf16.msrb.mxu0 %v2102_v5 }
 0x100   : > { %1486 = vmatpush.bf16.msrb.mxu1 %v2110_v6 }
 0x101   : > { %1500 = vmatpush.bf16.msrb.mxu2 %v2118_v7 }
 0x102   : > { %1514 = vmatpush.bf16.msrb.mxu3 %v2126_v8 }
 0x103   : > { %1473 = vmatpush.bf16.msrb.mxu0 %v2101_v9 }
 0x104   : > { %1487 = vmatpush.bf16.msrb.mxu1 %v2109_v10 }
 0x105   : > { %1501 = vmatpush.bf16.msrb.mxu2 %v2117_v11 }
 0x106   : > { %1515 = vmatpush.bf16.msrb.mxu3 %v2125_v12 }
 0x107   : > { %1474 = vmatpush.bf16.msrb.mxu0 %v2100_v13 }
 0x108   : > { %1488 = vmatpush.bf16.msrb.mxu1 %v2108_v14 }
 0x109   : > { %1502 = vmatpush.bf16.msrb.mxu2 %v2116_v15 }
 0x10a   : > { %1516 = vmatpush.bf16.msrb.mxu3 %v2124_v16 }
 0x10b   : > { %1475 = vmatpush.bf16.msrb.mxu0 %v2099_v17 }
 0x10c   : > { %1489 = vmatpush.bf16.msrb.mxu1 %v2107_v18 }
 0x10d   : > { %1503 = vmatpush.bf16.msrb.mxu2 %v2115_v19 }
 0x10e   : > { %1517 = vmatpush.bf16.msrb.mxu3 %v2123_v20  ;;  %1476 = vmatmul.bf16.vlgmr.msrb.gmra.mxu0 %v1783_v29 }
 0x10f   : > { %1490 = vmatmul.bf16.vlgmr.msrb.gmra.mxu1 %v1787_v30 }
 0x110   : > { %1504 = vmatmul.bf16.vlgmr.msrb.gmra.mxu2 %v1791_v31 }
 0x111   : > { %1518 = vmatmul.bf16.vlgmr.msrb.gmra.mxu3 %v1795_v32 }
 0x16b   : > { %v1421_v33 = vpop.f32.mrf.mxu0 }
 0x16c   : > { %v1435_v34 = vpop.f32.mrf.mxu1 }
 0x16d   : > { %v1436_v37 = vadd.f32 %v1435_v34, %v1421_v33 }
 0x173   : > { %v1449_v35 = vpop.f32.mrf.mxu2  ;;  %v1423_v38 = vpop.f32.mrf.mxu0 }
 0x174   : > { %v1463_v36 = vpop.f32.mrf.mxu3  ;;  %v1437_v39 = vpop.f32.mrf.mxu1  ;;  %v1450_v40 = vadd.f32 %v1449_v35, %v1436_v37 }
 0x175   : > { %v1438_v44 = vadd.f32 %v1437_v39, %v1423_v38 }
 0x176   : > { %v1464_v43 = vadd.f32 %v1463_v36, %v1450_v40 }
 0x17b   : > { %v1451_v41 = vpop.f32.mrf.mxu2 }
 0x17c   : > { %v1465_v42 = vpop.f32.mrf.mxu3  ;;  %v1452_v48 = vadd.f32 %v1451_v41, %v1438_v44 }
 0x17e   : > { %v1466_v52 = vadd.f32 %v1465_v42, %v1452_v48 }
 0x18b   : > { %v1477_v45 = vpop.f32.mrf.mxu0 }
 0x18c   : > { %v1478_v46 = vadd.f32 %v1477_v45, %v1464_v43  ;;  %v1491_v47 = vpop.f32.mrf.mxu1 }
 0x18e   : > { %v1492_v49 = vadd.f32 %v1491_v47, %v1478_v46 }
 0x193   : > { %v1505_v50 = vpop.f32.mrf.mxu2  ;;  %v1479_v54 = vpop.f32.mrf.mxu0 }
 0x194   : > { %v1519_v51 = vpop.f32.mrf.mxu3  ;;  %v1506_v53 = vadd.f32 %v1505_v50, %v1492_v49  ;;  %v1480_v57 = vadd.f32 %v1479_v54, %v1466_v52  ;;  %v1493_v59 = vpop.f32.mrf.mxu1 }
 0x196   : > { %v1520_v56 = vadd.f32 %v1519_v51, %v1506_v53  ;;  %v1494_v60 = vadd.f32 %v1493_v59, %v1480_v57 }
 0x198   : > { %v1524_v58 = vadd.f32 %v1520_v56, %v850_v55 }
 0x19a   : > { %1526 = vst [vmem:[#allocation2] sm:$0xff] %v1524_v58 }
 0x19b   : > { %v1507_v61 = vpop.f32.mrf.mxu2 }
 0x19c   : > { %v1508_v62 = vadd.f32 %v1507_v61, %v1494_v60  ;;  %v1521_v0 = vpop.f32.mrf.mxu3 }
 0x19e   : > { %v1522_v1 = vadd.f32 %v1521_v0, %v1508_v62  ;;  %1531 = sbr.rel (%p2052_p5) target bundleno = 496 (0x1f0), region = 108 }
 0x1a0   : > { %v1525_v2 = vadd.f32 %v1522_v1, %v851_v63 }
 0x1a2   : > { %1527 = vst [vmem:[#allocation2 + $0x8] sm:$0xff] %v1525_v2 }
 0x1a3   : > { %v1532_v3 = vld [vmem:[#allocation2] sm:$0xff] }
 0x1a4   : > { %v1554_v31 = vld [vmem:[%s840_s9] sm:$0x1] }
 0x1a5   : > { %v2225_v36 = vld [vmem:[%s843_s27] ss:$0 sm:$0xff] }
 0x1a9   : > { %v1533_v4 = vld [vmem:[#allocation2 + $0x8] sm:$0xff] }
 0x1aa   : > { %v1534_v5 = vadd.f32 %v1533_v4, %v1532_v3 }
 0x1ac   : > { %v1535_v6 = vrot.slane %v1534_v5, 4 }
 0x1ae   : > { %v1536_v7 = vadd.f32 %v1535_v6, %v1534_v5 }
 0x1b0   : > { %v1537_v8 = vrot.slane %v1536_v7, 2 }
 0x1b2   : > { %v1538_v9 = vadd.f32 %v1537_v8, %v1536_v7 }
 0x1b4   : > { %v1539_v10 = vrot.slane %v1538_v9, 1 }
 0x1b6   : > { %v1540_v11 = vadd.f32 %v1539_v10, %v1538_v9 }
 0x1b8   : > { %v1541_v12 = vmul.f32 0.0625, %v1540_v11 }
 0x1ba   : > { %v1542_v13 = vsub.f32 %v1532_v3, %v1541_v12  ;;  %v1543_v14 = vsub.f32 %v1533_v4, %v1541_v12 }
 0x1bc   : > { %v1544_v15 = vmul.f32 %v1542_v13, %v1542_v13  ;;  %v1545_v16 = vmul.f32 %v1543_v14, %v1543_v14 }
 0x1be   : > { %v1546_v17 = vadd.f32 %v1545_v16, %v1544_v15 }
 0x1c0   : > { %v1547_v18 = vrot.slane %v1546_v17, 4 }
 0x1c2   : > { %v1548_v19 = vadd.f32 %v1547_v18, %v1546_v17 }
 0x1c4   : > { %v1549_v20 = vrot.slane %v1548_v19, 2 }
 0x1c6   : > { %v1550_v21 = vadd.f32 %v1549_v20, %v1548_v19 }
 0x1c8   : > { %v1551_v22 = vrot.slane %v1550_v21, 1 }
 0x1ca   : > { %v1552_v23 = vadd.f32 %v1551_v22, %v1550_v21 }
 0x1cc   : > { %v1553_v24 = vmul.f32 0.0625, %v1552_v23 }
 0x1ce   : > { %v1555_v25 = vadd.f32 1e-05, %v1553_v24 }
 0x1d0   : > { %2226 = vrsqrt.f32 %v1555_v25  ;;  %vm1562_vm0 = vweird.f32 %v1555_v25 }
 0x1d6   : > { %v2227_v26 = vpop.eup %2226 }
 0x1d7   : > { %v1557_v27 = vmul.f32 %v2227_v26, %v1555_v25  ;;  %vm1563_vm1 = vweird.f32 %v2227_v26 }
 0x1d8   : > { %vm1564_vm2 = vmor %vm1562_vm0, %vm1563_vm1 }
 0x1d9   : > { %v1558_v28 = vmul.f32 %v2227_v26, %v1557_v27 }
 0x1db   : > { %v1559_v29 = vmul.f32 0.5, %v1558_v28 }
 0x1dd   : > { %v1560_v30 = vsub.f32 1.5, %v1559_v29 }
 0x1df   : > { %v1561_v32 = vmul.f32 %v2227_v26, %v1560_v30 }
 0x1e1   : > { %v1565_v33 = vsel %vm1564_vm2, %v2227_v26, %v1561_v32 }
 0x1e2   : > { %v1566_v34 = vmul.f32 %v1565_v33, %v1554_v31 }
 0x1e4   : > { %v1568_v35 = vperm.slane %v1566_v34, 0 }
 0x1e6   : > { %v1570_v37 = vmul.f32 %v1568_v35, %v1542_v13  ;;  %v1571_v38 = vmul.f32 %v1568_v35, %v1543_v14 }
 0x1e8   : > { %v1576_v39 = vadd.f32 %v2225_v36, %v1570_v37  ;;  %v1577_v40 = vadd.f32 %v2225_v36, %v1571_v38 }
 0x1ea   : > { %vm1578_vm3 = vcmp.ge.f32.partialorder %v1576_v39, 0.0  ;;  %vm1579_vm4 = vcmp.ge.f32.partialorder %v1577_v40, 0.0  ;;  %v1580_v41 = vmul.f32 0.2, %v1576_v39  ;;  %v1581_v42 = vmul.f32 0.2, %v1577_v40 }
 0x1ec   : > { %v1582_v43 = vsel %vm1578_vm3, %v1576_v39, %v1580_v41  ;;  %v1583_v44 = vsel %vm1579_vm4, %v1577_v40, %v1581_v42 }
 0x1ed   : > { %v2134_v45 = vpack.c.bf16 %v1583_v44, %v1582_v43 }
 0x1ef   : > { %2135 = vst [vmem:[%s2737_s19] sm:$0xff] %v2134_v45  }
 0x1f0 PF: > { %1594 = sbr.rel (!%p2436_p12) target bundleno = 505 (0x1f9), region = 112  ;;  %s2054_s27 = sshll.u32 (%p2436_p12), %s2302_s22, 2 }
 0x1f1   : > { %s1596_s26 = scalar_lea.vmem (%p2436_p12), %s2877_s4, %s2054_s27 }
 0x1f6   : > { %v1613_v46 = vld [vmem:[%s2737_s19] sm:$0xf]  ;;  %v1615_v47 = vld [vmem:[%s2737_s19 + $0x4] sm:$0xf] }
 0x1f7   : > { %1614 = vst [vmem:[%s1596_s26] sm:$0xf] %v1613_v46 }
 0x1f8   : > { %1616 = vst [vmem:[%s1596_s26 + $0x8] sm:$0xf] %v1615_v47 }
 0x1f9 PF: > { %s14_s25 = sadd.s32 1, %s2314_s25   ;;  %s2891_s22 = sld [smem:[#allocation6_spill]] }
 0x1fa   : > { %p11_p6 = scmp.ge.s32.totalorder %s14_s25, 6   ;;  %s2892_s14 = sld [smem:[#allocation7_spill]] }
 0x1fb   : > { %s2893_s24 = sld [smem:[#allocation8_spill]]  ;;  %s2894_s15 = smov %s2278_s16 }
 0x1fc   : > { %s2895_s16 = smov %s2434_s13  ;;  %s2896_s17 = smov %s2286_s18 }
 0x1fd   : > { %s2897_s18 = smov %s2431_s12  ;;  %s2898_s19 = smov %s2294_s20 }
 0x1fe   : > { %s2899_s20 = smov %s2417_s7  ;;  %s2900_s21 = smov %s2306_s23 }
 0x1ff   :  { %13 = sbr.rel (!%p11_p6) target bundleno = 9 (0x9), region = 198 }
 0x200   : > { %s2901_s23 = smov %s2892_s14 }

// kernel: discriminator.7
= control target key start
LH: loop header
LB: loop body
LE: loop exit
PB: predicated region body
PF: predicated region fallthrough
CT: control target
= control target key end

     0   :  { %s4679_s18 = smov 0   ;;  %s5771_s0 = inlined_call_operand.vmem [shape: bf16[4,4096], index: 0, kind: input, shape index: {}]   ;;  %s5772_s1 = inlined_call_operand.vmem [shape: bf16[4096,512], index: 1, kind: input, shape index: {}]   ;;  %s5773_s2 = inlined_call_operand.vmem [shape: f32[1,512], index: 2, kind: input, shape index: {}]   ;;  %s5774_s3 = inlined_call_operand.vmem [shape: f32[1,512], index: 3, kind: input, shape index: {}]   ;;  %s5775_s4 = inlined_call_operand.vmem [shape: bf16[512,256], index: 4, kind: input, shape index: {}]   ;;  %s5776_s5 = inlined_call_operand.vmem [shape: f32[2,128], index: 5, kind: output, shape index: {}]  }
   0x1 LB: > { %s4685_s19 = sadd.s32 4294967295, %s4646_s18   ;;  %p3000_p0 = scmp.ge.s32.totalorder %s4646_s18, 1  ;;  %s4646_s18 = sphi %s4679_s18, %s15_s18  }
   0x2   : > { %p195_p1 = scmp.lt.s32.totalorder %s4646_s18, 5 }
   0x4   : > { %p196_p2 = pnand %p3000_p0, %p195_p1 }
   0x5   : > { %s3001_s20 = sshll.u32 (!%p196_p2), %s4685_s19, 3  ;;  %s3003_s21 = sshll.u32 (!%p196_p2), %s4685_s19, 7 }
   0x6   : > { %199 = sbr.rel (%p196_p2) target bundleno = 742 (0x2e6), region = 40  ;;  %p225_p3 = scmp.lt.s32.totalorder (!%p196_p2), %s3001_s20, 31 }
   0x7   : > { %p231_p4 = scmp.lt.s32.totalorder (!%p196_p2), %s3003_s21, 511  ;;  %p3006_p5 = scmp.ne.s32.totalorder (!%p196_p2), %s4685_s19, 0 }
   0xb   : > { %s5786_s20 = smov (!%p225_p3, %s3001_s20), 31  ;;  %s5788_s21 = smov (!%p231_p4, %s3003_s21), 511 }
   0xc   : > { %s3002_s22 = sshll.u32 %s5786_s20, 1  ;;  %s4290_s26 = sshll.u32 %s5788_s21, 4 }
   0xd   : > { %s4694_s25 = scalar_lea.vmem %s5771_s0, %s3002_s22  ;;  %s4699_s29 = scalar_lea.vmem %s5772_s1, %s4290_s26 }
   0xe   : > { %240 = sbr.rel (%p3006_p5) target bundleno = 22 (0x16), region = 44 }
  0x13   : > { %v4648_v0 = vmov 0.0  }
  0x14   : > { %241 = vst [vmem:[#allocation2] sm:$0xff] %v4648_v0 }
  0x15   : > { %242 = vst [vmem:[#allocation2 + $0x8] sm:$0xff] %v4648_v0 }
  0x16 PF: > { %v3121_v1 = vld [vmem:[%s4699_s29 + $0xe0] sm:$0xf]  ;;  %v4321_v2 = vld [vmem:[%s4699_s29 + $0xec] sm:$0xf0]  ;;  %vm2226_vm0 = vcmask 1043456   ;;  %p4031_p6 = scmp.ne.s32.totalorder %s4685_s19, 3 }
  0x17   : > { %v3249_v3 = vld [vmem:[%s4699_s29 + $0x1e0] sm:$0xf]  ;;  %v3122_v4 = vor.u32 %v4321_v2, %v3121_v1  ;;  %v4353_v5 = vld [vmem:[%s4699_s29 + $0x1ec] sm:$0xf0] }
  0x18   : > { %v3377_v6 = vld [vmem:[%s4699_s29 + $0x2e0] sm:$0xf]  ;;  %v4385_v7 = vld [vmem:[%s4699_s29 + $0x2ec] sm:$0xf0]  ;;  %v3250_v8 = vor.u32 %v4353_v5, %v3249_v3 }
  0x19   : > { %v3378_v9 = vor.u32 %v4385_v7, %v3377_v6  ;;  %v3505_v10 = vld [vmem:[%s4699_s29 + $0x3e0] sm:$0xf]  ;;  %v4417_v11 = vld [vmem:[%s4699_s29 + $0x3ec] sm:$0xf0]  ;;  %1804 = vmatpush.bf16.msra.mxu0 %v3122_v4 }
  0x1a   : > { %v3105_v12 = vld [vmem:[%s4699_s29 + $0xc0] sm:$0xf]  ;;  %v3506_v13 = vor.u32 %v4417_v11, %v3505_v10  ;;  %v4317_v14 = vld [vmem:[%s4699_s29 + $0xcc] sm:$0xf0]  ;;  %1817 = vmatpush.bf16.msra.mxu1 %v3250_v8 }
  0x1b   : > { %v3233_v15 = vld [vmem:[%s4699_s29 + $0x1c0] sm:$0xf]  ;;  %v4349_v16 = vld [vmem:[%s4699_s29 + $0x1cc] sm:$0xf0]  ;;  %1830 = vmatpush.bf16.msra.mxu2 %v3378_v9  ;;  %v3106_v17 = vor.u32 %v4317_v14, %v3105_v12 }
  0x1c   : > { %v3234_v18 = vor.u32 %v4349_v16, %v3233_v15  ;;  %v3361_v19 = vld [vmem:[%s4699_s29 + $0x2c0] sm:$0xf]  ;;  %v4381_v20 = vld [vmem:[%s4699_s29 + $0x2cc] sm:$0xf0]  ;;  %1843 = vmatpush.bf16.msra.mxu3 %v3506_v13 }
  0x1d   : > { %v3489_v21 = vld [vmem:[%s4699_s29 + $0x3c0] sm:$0xf]  ;;  %v3362_v22 = vor.u32 %v4381_v20, %v3361_v19  ;;  %v4413_v23 = vld [vmem:[%s4699_s29 + $0x3cc] sm:$0xf0]  ;;  %1805 = vmatpush.bf16.msra.mxu0 %v3106_v17 }
  0x1e   : > { %v3089_v24 = vld [vmem:[%s4699_s29 + $0xa0] sm:$0xf]  ;;  %v4313_v25 = vld [vmem:[%s4699_s29 + $0xac] sm:$0xf0]  ;;  %v3490_v26 = vor.u32 %v4413_v23, %v3489_v21  ;;  %1818 = vmatpush.bf16.msra.mxu1 %v3234_v18 }
  0x1f   : > { %v3217_v27 = vld [vmem:[%s4699_s29 + $0x1a0] sm:$0xf]  ;;  %v4345_v28 = vld [vmem:[%s4699_s29 + $0x1ac] sm:$0xf0]  ;;  %v3090_v30 = vor.u32 %v4313_v25, %v3089_v24  ;;  %1831 = vmatpush.bf16.msra.mxu2 %v3362_v22 }
  0x20   : > { %v3345_v29 = vld [vmem:[%s4699_s29 + $0x2a0] sm:$0xf]  ;;  %v4377_v31 = vld [vmem:[%s4699_s29 + $0x2ac] sm:$0xf0]  ;;  %v3218_v34 = vor.u32 %v4345_v28, %v3217_v27  ;;  %1844 = vmatpush.bf16.msra.mxu3 %v3490_v26 }
  0x21   : > { %v3473_v32 = vld [vmem:[%s4699_s29 + $0x3a0] sm:$0xf]  ;;  %v4409_v33 = vld [vmem:[%s4699_s29 + $0x3ac] sm:$0xf0]  ;;  %v3346_v35 = vor.u32 %v4377_v31, %v3345_v29  ;;  %1806 = vmatpush.bf16.msra.mxu0 %v3090_v30 }
  0x22   : > { %v3073_v36 = vld [vmem:[%s4699_s29 + $0x80] sm:$0xf]  ;;  %v4309_v37 = vld [vmem:[%s4699_s29 + $0x8c] sm:$0xf0]  ;;  %v3474_v39 = vor.u32 %v4409_v33, %v3473_v32  ;;  %1819 = vmatpush.bf16.msra.mxu1 %v3218_v34 }
  0x23   : > { %v3201_v38 = vld [vmem:[%s4699_s29 + $0x180] sm:$0xf]  ;;  %v4341_v40 = vld [vmem:[%s4699_s29 + $0x18c] sm:$0xf0]  ;;  %v3074_v45 = vor.u32 %v4309_v37, %v3073_v36  ;;  %1832 = vmatpush.bf16.msra.mxu2 %v3346_v35 }
  0x24   : > { %v3329_v41 = vld [vmem:[%s4699_s29 + $0x280] sm:$0xf]  ;;  %v4373_v42 = vld [vmem:[%s4699_s29 + $0x28c] sm:$0xf0]  ;;  %v3202_v46 = vor.u32 %v4341_v40, %v3201_v38  ;;  %1845 = vmatpush.bf16.msra.mxu3 %v3474_v39 }
  0x25   : > { %v3457_v43 = vld [vmem:[%s4699_s29 + $0x380] sm:$0xf]  ;;  %v4405_v44 = vld [vmem:[%s4699_s29 + $0x38c] sm:$0xf0]  ;;  %v3330_v47 = vor.u32 %v4373_v42, %v3329_v41  ;;  %1807 = vmatpush.bf16.msra.mxu0 %v3074_v45 }
  0x26   : > { %v3057_v48 = vld [vmem:[%s4699_s29 + $0x60] sm:$0xf]  ;;  %v4305_v49 = vld [vmem:[%s4699_s29 + $0x6c] sm:$0xf0]  ;;  %v3458_v51 = vor.u32 %v4405_v44, %v3457_v43  ;;  %1820 = vmatpush.bf16.msra.mxu1 %v3202_v46 }
  0x27   : > { %v3185_v50 = vld [vmem:[%s4699_s29 + $0x160] sm:$0xf]  ;;  %v4337_v52 = vld [vmem:[%s4699_s29 + $0x16c] sm:$0xf0]  ;;  %v3058_v57 = vor.u32 %v4305_v49, %v3057_v48  ;;  %1833 = vmatpush.bf16.msra.mxu2 %v3330_v47 }
  0x28   : > { %v3313_v53 = vld [vmem:[%s4699_s29 + $0x260] sm:$0xf]  ;;  %v4369_v54 = vld [vmem:[%s4699_s29 + $0x26c] sm:$0xf0]  ;;  %v3186_v58 = vor.u32 %v4337_v52, %v3185_v50  ;;  %1846 = vmatpush.bf16.msra.mxu3 %v3458_v51 }
  0x29   : > { %v3441_v55 = vld [vmem:[%s4699_s29 + $0x360] sm:$0xf]  ;;  %v4401_v56 = vld [vmem:[%s4699_s29 + $0x36c] sm:$0xf0]  ;;  %v3314_v59 = vor.u32 %v4369_v54, %v3313_v53  ;;  %1808 = vmatpush.bf16.msra.mxu0 %v3058_v57 }
  0x2a   : > { %v3041_v60 = vld [vmem:[%s4699_s29 + $0x40] sm:$0xf]  ;;  %v4301_v61 = vld [vmem:[%s4699_s29 + $0x4c] sm:$0xf0]  ;;  %v3442_v63 = vor.u32 %v4401_v56, %v3441_v55  ;;  %1821 = vmatpush.bf16.msra.mxu1 %v3186_v58 }
  0x2b   : > { %v3169_v62 = vld [vmem:[%s4699_s29 + $0x140] sm:$0xf]  ;;  %v4333_v0 = vld [vmem:[%s4699_s29 + $0x14c] sm:$0xf0]  ;;  %v3042_v5 = vor.u32 %v4301_v61, %v3041_v60  ;;  %1834 = vmatpush.bf16.msra.mxu2 %v3314_v59 }
  0x2c   : > { %v3297_v1 = vld [vmem:[%s4699_s29 + $0x240] sm:$0xf]  ;;  %v4365_v2 = vld [vmem:[%s4699_s29 + $0x24c] sm:$0xf0]  ;;  %v3170_v6 = vor.u32 %v4333_v0, %v3169_v62  ;;  %1847 = vmatpush.bf16.msra.mxu3 %v3442_v63 }
  0x2d   : > { %v3425_v3 = vld [vmem:[%s4699_s29 + $0x340] sm:$0xf]  ;;  %v4397_v4 = vld [vmem:[%s4699_s29 + $0x34c] sm:$0xf0]  ;;  %v3298_v7 = vor.u32 %v4365_v2, %v3297_v1  ;;  %1809 = vmatpush.bf16.msra.mxu0 %v3042_v5 }
  0x2e   : > { %v3025_v8 = vld [vmem:[%s4699_s29 + $0x20] sm:$0xf]  ;;  %v4297_v9 = vld [vmem:[%s4699_s29 + $0x2c] sm:$0xf0]  ;;  %v3426_v11 = vor.u32 %v4397_v4, %v3425_v3  ;;  %1822 = vmatpush.bf16.msra.mxu1 %v3170_v6 }
  0x2f   : > { %v3153_v10 = vld [vmem:[%s4699_s29 + $0x120] sm:$0xf]  ;;  %v4329_v12 = vld [vmem:[%s4699_s29 + $0x12c] sm:$0xf0]  ;;  %v3026_v17 = vor.u32 %v4297_v9, %v3025_v8  ;;  %1835 = vmatpush.bf16.msra.mxu2 %v3298_v7 }
  0x30   : > { %v3281_v13 = vld [vmem:[%s4699_s29 + $0x220] sm:$0xf]  ;;  %v4361_v14 = vld [vmem:[%s4699_s29 + $0x22c] sm:$0xf0]  ;;  %v3154_v20 = vor.u32 %v4329_v12, %v3153_v10  ;;  %1848 = vmatpush.bf16.msra.mxu3 %v3426_v11 }
  0x31   : > { %v3409_v15 = vld [vmem:[%s4699_s29 + $0x320] sm:$0xf]  ;;  %v4393_v16 = vld [vmem:[%s4699_s29 + $0x32c] sm:$0xf0]  ;;  %v3282_v21 = vor.u32 %v4361_v14, %v3281_v13  ;;  %1810 = vmatpush.bf16.msra.mxu0 %v3026_v17 }
  0x32   : > { %v3009_v18 = vld [vmem:[%s4699_s29] sm:$0xf]  ;;  %v4293_v19 = vld [vmem:[%s4699_s29 + $0xc] sm:$0xf0]  ;;  %v3410_v25 = vor.u32 %v4393_v16, %v3409_v15  ;;  %1823 = vmatpush.bf16.msra.mxu1 %v3154_v20 }
  0x33   : > { %v3137_v22 = vld [vmem:[%s4699_s29 + $0x100] sm:$0xf]  ;;  %v4325_v23 = vld [vmem:[%s4699_s29 + $0x10c] sm:$0xf0]  ;;  %v3010_v32 = vor.u32 %v4293_v19, %v3009_v18  ;;  %1836 = vmatpush.bf16.msra.mxu2 %v3282_v21 }
  0x34   : > { %v3265_v24 = vld [vmem:[%s4699_s29 + $0x200] sm:$0xf]  ;;  %v4357_v26 = vld [vmem:[%s4699_s29 + $0x20c] sm:$0xf0]  ;;  %v3138_v36 = vor.u32 %v4325_v23, %v3137_v22  ;;  %1849 = vmatpush.bf16.msra.mxu3 %v3410_v25 }
  0x35   : > { %v3393_v27 = vld [vmem:[%s4699_s29 + $0x300] sm:$0xf]  ;;  %v4389_v28 = vld [vmem:[%s4699_s29 + $0x30c] sm:$0xf0]  ;;  %v3266_v37 = vor.u32 %v4357_v26, %v3265_v24  ;;  %1811 = vmatpush.bf16.msra.mxu0 %v3010_v32 }
  0x36   : > { %v3633_v29 = vld [vmem:[%s4699_s29 + $0x4e0] sm:$0xf]  ;;  %v4449_v30 = vld [vmem:[%s4699_s29 + $0x4ec] sm:$0xf0]  ;;  %v3394_v40 = vor.u32 %v4389_v28, %v3393_v27  ;;  %1824 = vmatpush.bf16.msra.mxu1 %v3138_v36 }
  0x37   : > { %v3761_v31 = vld [vmem:[%s4699_s29 + $0x5e0] sm:$0xf]  ;;  %v4481_v33 = vld [vmem:[%s4699_s29 + $0x5ec] sm:$0xf0]  ;;  %v3634_v41 = vor.u32 %v4449_v30, %v3633_v29  ;;  %1837 = vmatpush.bf16.msra.mxu2 %v3266_v37 }
  0x38   : > { %v3889_v34 = vld [vmem:[%s4699_s29 + $0x6e0] sm:$0xf]  ;;  %v4513_v35 = vld [vmem:[%s4699_s29 + $0x6ec] sm:$0xf0]  ;;  %v3762_v42 = vor.u32 %v4481_v33, %v3761_v31  ;;  %1850 = vmatpush.bf16.msra.mxu3 %v3394_v40 }
  0x39   : > { %v4017_v38 = vld [vmem:[%s4699_s29 + $0x7e0] sm:$0xf]  ;;  %v4545_v39 = vld [vmem:[%s4699_s29 + $0x7ec] sm:$0xf0]  ;;  %v3890_v43 = vor.u32 %v4513_v35, %v3889_v34  ;;  %1856 = vmatpush.bf16.msrb.mxu0 %v3634_v41 }
  0x3a   : > { %v3617_v44 = vld [vmem:[%s4699_s29 + $0x4c0] sm:$0xf]  ;;  %v4445_v45 = vld [vmem:[%s4699_s29 + $0x4cc] sm:$0xf0]  ;;  %v4018_v47 = vor.u32 %v4545_v39, %v4017_v38  ;;  %1869 = vmatpush.bf16.msrb.mxu1 %v3762_v42 }
  0x3b   : > { %v3745_v46 = vld [vmem:[%s4699_s29 + $0x5c0] sm:$0xf]  ;;  %v4477_v48 = vld [vmem:[%s4699_s29 + $0x5cc] sm:$0xf0]  ;;  %v3618_v53 = vor.u32 %v4445_v45, %v3617_v44  ;;  %1882 = vmatpush.bf16.msrb.mxu2 %v3890_v43 }
  0x3c   : > { %v3873_v49 = vld [vmem:[%s4699_s29 + $0x6c0] sm:$0xf]  ;;  %v4509_v50 = vld [vmem:[%s4699_s29 + $0x6cc] sm:$0xf0]  ;;  %v3746_v56 = vor.u32 %v4477_v48, %v3745_v46  ;;  %1895 = vmatpush.bf16.msrb.mxu3 %v4018_v47 }
  0x3d   : > { %v4001_v51 = vld [vmem:[%s4699_s29 + $0x7c0] sm:$0xf]  ;;  %v4541_v52 = vld [vmem:[%s4699_s29 + $0x7cc] sm:$0xf0]  ;;  %v3874_v57 = vor.u32 %v4509_v50, %v3873_v49  ;;  %1857 = vmatpush.bf16.msrb.mxu0 %v3618_v53  ;;  %v246_v49 = vld [vmem:[%s4694_s25 + $0x8] sm:$0xff] }
  0x3e   : > { %v3601_v54 = vld [vmem:[%s4699_s29 + $0x4a0] sm:$0xf]  ;;  %v4441_v55 = vld [vmem:[%s4699_s29 + $0x4ac] sm:$0xf0]  ;;  %v4002_v61 = vor.u32 %v4541_v52, %v4001_v51  ;;  %1870 = vmatpush.bf16.msrb.mxu1 %v3746_v56  ;;  %507 = vst [vmem:[#allocation1 + $0x20] ss:$4 sm:$0xff] %v246_v49 }
  0x3f   : > { %v3729_v58 = vld [vmem:[%s4699_s29 + $0x5a0] sm:$0xf]  ;;  %v4473_v59 = vld [vmem:[%s4699_s29 + $0x5ac] sm:$0xf0]  ;;  %v3602_v2 = vor.u32 %v4441_v55, %v3601_v54  ;;  %1883 = vmatpush.bf16.msrb.mxu2 %v3874_v57 }
  0x40   : > { %v245_v60 = vld [vmem:[%s4694_s25] sm:$0xff]  ;;  %v4505_v63 = vld [vmem:[%s4699_s29 + $0x6ac] sm:$0xf0]  ;;  %v3730_v4 = vor.u32 %v4473_v59, %v3729_v58  ;;  %1896 = vmatpush.bf16.msrb.mxu3 %v4002_v61 }
  0x41   : > { %v3857_v62 = vld [vmem:[%s4699_s29 + $0x6a0] sm:$0xf]  ;;  %504 = vst [vmem:[#allocation1] ss:$4 sm:$0xff] %v245_v60  ;;  %v4537_v1 = vld [vmem:[%s4699_s29 + $0x7ac] sm:$0xf0]  ;;  %1858 = vmatpush.bf16.msrb.mxu0 %v3602_v2 }
  0x42   : > { %v3985_v0 = vld [vmem:[%s4699_s29 + $0x7a0] sm:$0xf]  ;;  %v3858_v5 = vor.u32 %v4505_v63, %v3857_v62  ;;  %v4437_v6 = vld [vmem:[%s4699_s29 + $0x48c] sm:$0xf0]  ;;  %1871 = vmatpush.bf16.msrb.mxu1 %v3730_v4  ;;  %v3123_v4 = vld [vmem:[%s4699_s29 + $0xf0] sm:$0xf0] }
  0x43   : > { %v3585_v3 = vld [vmem:[%s4699_s29 + $0x480] sm:$0xf]  ;;  %v4469_v8 = vld [vmem:[%s4699_s29 + $0x58c] sm:$0xf0]  ;;  %v3986_v9 = vor.u32 %v4537_v1, %v3985_v0 }
  0x44   : > { %v3713_v7 = vld [vmem:[%s4699_s29 + $0x580] sm:$0xf]  ;;  %v4501_v11 = vld [vmem:[%s4699_s29 + $0x68c] sm:$0xf0]  ;;  %v3586_v16 = vor.u32 %v4437_v6, %v3585_v3  ;;  %1884 = vmatpush.bf16.msrb.mxu2 %v3858_v5  ;;  %v4319_v3 = vld [vmem:[%s4699_s29 + $0xe4] sm:$0xf] }
  0x45   : > { %v3841_v10 = vld [vmem:[%s4699_s29 + $0x680] sm:$0xf]  ;;  %v4533_v13 = vld [vmem:[%s4699_s29 + $0x78c] sm:$0xf0]  ;;  %v3714_v21 = vor.u32 %v4469_v8, %v3713_v7  ;;  %1897 = vmatpush.bf16.msrb.mxu3 %v3986_v9  ;;  %v4351_v5 = vld [vmem:[%s4699_s29 + $0x1e4] sm:$0xf] }
  0x46   : > { %v3969_v12 = vld [vmem:[%s4699_s29 + $0x780] sm:$0xf]  ;;  %v4433_v15 = vld [vmem:[%s4699_s29 + $0x46c] sm:$0xf0]  ;;  %v3842_v22 = vor.u32 %v4501_v11, %v3841_v10  ;;  %1859 = vmatpush.bf16.msrb.mxu0 %v3586_v16  ;;  %v3251_v7 = vld [vmem:[%s4699_s29 + $0x1f0] sm:$0xf0] }
  0x47   : > { %v3569_v14 = vld [vmem:[%s4699_s29 + $0x460] sm:$0xf]  ;;  %v4465_v18 = vld [vmem:[%s4699_s29 + $0x56c] sm:$0xf0]  ;;  %v3970_v25 = vor.u32 %v4533_v13, %v3969_v12  ;;  %1872 = vmatpush.bf16.msrb.mxu1 %v3714_v21  ;;  %v4383_v8 = vld [vmem:[%s4699_s29 + $0x2e4] sm:$0xf] }
  0x48   : > { %v3697_v17 = vld [vmem:[%s4699_s29 + $0x560] sm:$0xf]  ;;  %v4497_v20 = vld [vmem:[%s4699_s29 + $0x66c] sm:$0xf0]  ;;  %v3570_v30 = vor.u32 %v4433_v15, %v3569_v14  ;;  %1885 = vmatpush.bf16.msrb.mxu2 %v3842_v22  ;;  %v3379_v9 = vld [vmem:[%s4699_s29 + $0x2f0] sm:$0xf0]  ;;  %v3126_v15 = vor.u32 %v4319_v3, %v3123_v4 }
  0x49   : > { %v3825_v19 = vld [vmem:[%s4699_s29 + $0x660] sm:$0xf]  ;;  %v4805_v23 = vld.sshfl [vmem:[#allocation1 + $0x10] sm:$0xff pattern:$0x73625140]  ;;  %v3698_v31 = vor.u32 %v4465_v18, %v3697_v17  ;;  %1898 = vmatpush.bf16.msrb.mxu3 %v3970_v25  ;;  %v3254_v18 = vor.u32 %v4351_v5, %v3251_v7 }
  0x4a   : > { %v4807_v24 = vld.sshfl [vmem:[#allocation1] sm:$0xff pattern:$0x73625140]  ;;  %1838 = vmatmul.bf16.vlgmr.msra.gmra.mxu2 %v4805_v23  ;;  %v4810_v26 = vld.sshfl [vmem:[#allocation1 + $0x18] sm:$0xff pattern:$0x73625140]  ;;  %v3826_v32 = vor.u32 %v4497_v20, %v3825_v19  ;;  %1860 = vmatpush.bf16.msrb.mxu0 %v3570_v30  ;;  %v3382_v19 = vor.u32 %v4383_v8, %v3379_v9 }
  0x4b   : > { %v4812_v27 = vld.sshfl [vmem:[#allocation1 + $0x8] sm:$0xff pattern:$0x73625140]  ;;  %v3953_v28 = vld [vmem:[%s4699_s29 + $0x760] sm:$0xf]  ;;  %1812 = vmatmul.bf16.vlgmr.msra.gmra.mxu0 %v4807_v24  ;;  %1851 = vmatmul.bf16.vlgmr.msra.gmra.mxu3 %v4810_v26 }
  0x4c   : > { %v4529_v29 = vld [vmem:[%s4699_s29 + $0x76c] sm:$0xf0]  ;;  %1825 = vmatmul.bf16.vlgmr.msra.gmra.mxu1 %v4812_v27  ;;  %v3553_v33 = vld [vmem:[%s4699_s29 + $0x440] sm:$0xf]  ;;  %1886 = vmatpush.bf16.msrb.mxu2 %v3826_v32  ;;  %v4415_v12 = vld [vmem:[%s4699_s29 + $0x3e4] sm:$0xf] }
  0x4d   : > { %v4429_v34 = vld [vmem:[%s4699_s29 + $0x44c] sm:$0xf0]  ;;  %v3681_v35 = vld [vmem:[%s4699_s29 + $0x540] sm:$0xf]  ;;  %v3954_v36 = vor.u32 %v4529_v29, %v3953_v28  ;;  %1873 = vmatpush.bf16.msrb.mxu1 %v3698_v31  ;;  %v3507_v13 = vld [vmem:[%s4699_s29 + $0x3f0] sm:$0xf0] }
  0x4e   : > { %v4461_v37 = vld [vmem:[%s4699_s29 + $0x54c] sm:$0xf0]  ;;  %v3809_v38 = vld [vmem:[%s4699_s29 + $0x640] sm:$0xf]  ;;  %v3554_v42 = vor.u32 %v4429_v34, %v3553_v33  ;;  %v4315_v16 = vld [vmem:[%s4699_s29 + $0xc4] sm:$0xf]  ;;  %v3510_v25 = vor.u32 %v4415_v12, %v3507_v13 }
  0x4f   : > { %v4493_v39 = vld [vmem:[%s4699_s29 + $0x64c] sm:$0xf0]  ;;  %v3937_v40 = vld [vmem:[%s4699_s29 + $0x740] sm:$0xf]  ;;  %v3682_v45 = vor.u32 %v4461_v37, %v3681_v35  ;;  %1899 = vmatpush.bf16.msrb.mxu3 %v3954_v36  ;;  %v3107_v17 = vld [vmem:[%s4699_s29 + $0xd0] sm:$0xf0] }
  0x50   : > { %v4525_v41 = vld [vmem:[%s4699_s29 + $0x74c] sm:$0xf0]  ;;  %v3537_v43 = vld [vmem:[%s4699_s29 + $0x420] sm:$0xf]  ;;  %v3810_v46 = vor.u32 %v4493_v39, %v3809_v38  ;;  %1861 = vmatpush.bf16.msrb.mxu0 %v3554_v42  ;;  %v4347_v20 = vld [vmem:[%s4699_s29 + $0x1c4] sm:$0xf]  ;;  %v3110_v34 = vor.u32 %v4315_v16, %v3107_v17 }
  0x51   : > { %v4425_v44 = vld [vmem:[%s4699_s29 + $0x42c] sm:$0xf0]  ;;  %v3665_v47 = vld [vmem:[%s4699_s29 + $0x520] sm:$0xf]  ;;  %v3938_v50 = vor.u32 %v4525_v41, %v3937_v40  ;;  %1874 = vmatpush.bf16.msrb.mxu1 %v3682_v45  ;;  %v3235_v21 = vld [vmem:[%s4699_s29 + $0x1d0] sm:$0xf0] }
  0x52   : > { %v4457_v48 = vld [vmem:[%s4699_s29 + $0x52c] sm:$0xf0]  ;;  %v3793_v51 = vld [vmem:[%s4699_s29 + $0x620] sm:$0xf]  ;;  %v3538_v55 = vor.u32 %v4425_v44, %v3537_v43  ;;  %1887 = vmatpush.bf16.msrb.mxu2 %v3810_v46  ;;  %v4379_v22 = vld [vmem:[%s4699_s29 + $0x2c4] sm:$0xf]  ;;  %v3238_v37 = vor.u32 %v4347_v20, %v3235_v21 }
  0x53   : > { %v4489_v52 = vld [vmem:[%s4699_s29 + $0x62c] sm:$0xf0]  ;;  %v3921_v53 = vld [vmem:[%s4699_s29 + $0x720] sm:$0xf]  ;;  %v3666_v58 = vor.u32 %v4457_v48, %v3665_v47  ;;  %1900 = vmatpush.bf16.msrb.mxu3 %v3938_v50  ;;  %v3363_v28 = vld [vmem:[%s4699_s29 + $0x2d0] sm:$0xf0] }
  0x54   : > { %v4521_v54 = vld [vmem:[%s4699_s29 + $0x72c] sm:$0xf0]  ;;  %v3521_v56 = vld [vmem:[%s4699_s29 + $0x400] sm:$0xf]  ;;  %v3794_v59 = vor.u32 %v4489_v52, %v3793_v51  ;;  %1862 = vmatpush.bf16.msrb.mxu0 %v3538_v55  ;;  %v4411_v29 = vld [vmem:[%s4699_s29 + $0x3c4] sm:$0xf]  ;;  %v3366_v38 = vor.u32 %v4379_v22, %v3363_v28 }
  0x55   : > { %v4421_v57 = vld [vmem:[%s4699_s29 + $0x40c] sm:$0xf0]  ;;  %v3649_v60 = vld [vmem:[%s4699_s29 + $0x500] sm:$0xf]  ;;  %v3922_v63 = vor.u32 %v4521_v54, %v3921_v53  ;;  %1875 = vmatpush.bf16.msrb.mxu1 %v3666_v58  ;;  %v3491_v30 = vld [vmem:[%s4699_s29 + $0x3d0] sm:$0xf0] }
  0x56   : > { %v4453_v61 = vld [vmem:[%s4699_s29 + $0x50c] sm:$0xf0]  ;;  %v3777_v62 = vld [vmem:[%s4699_s29 + $0x600] sm:$0xf]  ;;  %v3522_v6 = vor.u32 %v4421_v57, %v3521_v56  ;;  %1888 = vmatpush.bf16.msrb.mxu2 %v3794_v59  ;;  %v4311_v32 = vld [vmem:[%s4699_s29 + $0xa4] sm:$0xf]  ;;  %v3494_v41 = vor.u32 %v4411_v29, %v3491_v30 }
  0x57   : > { %v4485_v0 = vld [vmem:[%s4699_s29 + $0x60c] sm:$0xf0]  ;;  %v3905_v1 = vld [vmem:[%s4699_s29 + $0x700] sm:$0xf]  ;;  %v3650_v10 = vor.u32 %v4453_v61, %v3649_v60  ;;  %1901 = vmatpush.bf16.msrb.mxu3 %v3922_v63  ;;  %v3091_v33 = vld [vmem:[%s4699_s29 + $0xb0] sm:$0xf0] }
  0x58   : > { %v4517_v2 = vld [vmem:[%s4699_s29 + $0x70c] sm:$0xf0]  ;;  %v3778_v11 = vor.u32 %v4485_v0, %v3777_v62  ;;  %1863 = vmatpush.bf16.msrb.mxu0 %v3522_v6  ;;  %v4864_v35 = vld.sshfl [vmem:[#allocation1 + $0x20] sm:$0xff pattern:$0x73625140]  ;;  %v3094_v47 = vor.u32 %v4311_v32, %v3091_v33 }
  0x59   : > { %v3906_v14 = vor.u32 %v4517_v2, %v3905_v1  ;;  %1876 = vmatpush.bf16.msrb.mxu1 %v3650_v10  ;;  %v4860_v31 = vld.sshfl [vmem:[#allocation1 + $0x30] sm:$0xff pattern:$0x73625140]  ;;  %v4866_v36 = vld.sshfl [vmem:[#allocation1 + $0x38] sm:$0xff pattern:$0x73625140] }
  0x5a   : > { %1889 = vmatpush.bf16.msrb.mxu2 %v3778_v11  ;;  %v4343_v39 = vld [vmem:[%s4699_s29 + $0x1a4] sm:$0xf]  ;;  %v4869_v40 = vld.sshfl [vmem:[#allocation1 + $0x28] sm:$0xff pattern:$0x73625140] }
  0x5b   : > { %1902 = vmatpush.bf16.msrb.mxu3 %v3906_v14  ;;  %v3219_v42 = vld [vmem:[%s4699_s29 + $0x1b0] sm:$0xf0]  ;;  %v4375_v43 = vld [vmem:[%s4699_s29 + $0x2a4] sm:$0xf]  ;;  %1864 = vmatmul.bf16.vlgmr.msrb.gmra.mxu0 %v4864_v35 }
  0x5c   : > { %1908 = vmatpush.bf16.msra.mxu0 %v3126_v15  ;;  %v3347_v44 = vld [vmem:[%s4699_s29 + $0x2b0] sm:$0xf0]  ;;  %v4407_v45 = vld [vmem:[%s4699_s29 + $0x3a4] sm:$0xf]  ;;  %1877 = vmatmul.bf16.vlgmr.msrb.gmra.mxu1 %v4869_v40  ;;  %v3222_v48 = vor.u32 %v4343_v39, %v3219_v42 }
  0x5d   : > { %1921 = vmatpush.bf16.msra.mxu1 %v3254_v18  ;;  %1890 = vmatmul.bf16.vlgmr.msrb.gmra.mxu2 %v4860_v31  ;;  %v3475_v46 = vld [vmem:[%s4699_s29 + $0x3b0] sm:$0xf0]  ;;  %v3350_v49 = vor.u32 %v4375_v43, %v3347_v44  ;;  %v4307_v50 = vld [vmem:[%s4699_s29 + $0x84] sm:$0xf] }
  0x5e   : > { %1934 = vmatpush.bf16.msra.mxu2 %v3382_v19  ;;  %1903 = vmatmul.bf16.vlgmr.msrb.gmra.mxu3 %v4866_v36  ;;  %v3075_v51 = vld [vmem:[%s4699_s29 + $0x90] sm:$0xf0]  ;;  %v4339_v52 = vld [vmem:[%s4699_s29 + $0x184] sm:$0xf]  ;;  %v3478_v53 = vor.u32 %v4407_v45, %v3475_v46 }
  0x5f   : > { %1947 = vmatpush.bf16.msra.mxu3 %v3510_v25  ;;  %v3203_v54 = vld [vmem:[%s4699_s29 + $0x190] sm:$0xf0]  ;;  %v4371_v55 = vld [vmem:[%s4699_s29 + $0x284] sm:$0xf]  ;;  %v3078_v59 = vor.u32 %v4307_v50, %v3075_v51 }
  0x60   : > { %1909 = vmatpush.bf16.msra.mxu0 %v3110_v34  ;;  %v3331_v56 = vld [vmem:[%s4699_s29 + $0x290] sm:$0xf0]  ;;  %v4403_v57 = vld [vmem:[%s4699_s29 + $0x384] sm:$0xf]  ;;  %v3206_v60 = vor.u32 %v4339_v52, %v3203_v54 }
  0x61   : > { %1922 = vmatpush.bf16.msra.mxu1 %v3238_v37  ;;  %v3459_v58 = vld [vmem:[%s4699_s29 + $0x390] sm:$0xf0]  ;;  %v3334_v61 = vor.u32 %v4371_v55, %v3331_v56  ;;  %v4303_v62 = vld [vmem:[%s4699_s29 + $0x64] sm:$0xf] }
  0x62   : > { %1935 = vmatpush.bf16.msra.mxu2 %v3366_v38  ;;  %v3059_v63 = vld [vmem:[%s4699_s29 + $0x70] sm:$0xf0]  ;;  %v4335_v0 = vld [vmem:[%s4699_s29 + $0x164] sm:$0xf]  ;;  %v3462_v1 = vor.u32 %v4403_v57, %v3459_v58 }
  0x63   : > { %1948 = vmatpush.bf16.msra.mxu3 %v3494_v41  ;;  %v3187_v2 = vld [vmem:[%s4699_s29 + $0x170] sm:$0xf0]  ;;  %v4367_v3 = vld [vmem:[%s4699_s29 + $0x264] sm:$0xf]  ;;  %v3062_v7 = vor.u32 %v4303_v62, %v3059_v63 }
  0x64   : > { %1910 = vmatpush.bf16.msra.mxu0 %v3094_v47  ;;  %v3315_v4 = vld [vmem:[%s4699_s29 + $0x270] sm:$0xf0]  ;;  %v4399_v5 = vld [vmem:[%s4699_s29 + $0x364] sm:$0xf]  ;;  %v3190_v8 = vor.u32 %v4335_v0, %v3187_v2 }
  0x65   : > { %1923 = vmatpush.bf16.msra.mxu1 %v3222_v48  ;;  %v3443_v6 = vld [vmem:[%s4699_s29 + $0x370] sm:$0xf0]  ;;  %v3318_v9 = vor.u32 %v4367_v3, %v3315_v4  ;;  %v4299_v10 = vld [vmem:[%s4699_s29 + $0x44] sm:$0xf] }
  0x66   : > { %1936 = vmatpush.bf16.msra.mxu2 %v3350_v49  ;;  %v3043_v11 = vld [vmem:[%s4699_s29 + $0x50] sm:$0xf0]  ;;  %v4331_v12 = vld [vmem:[%s4699_s29 + $0x144] sm:$0xf]  ;;  %v3446_v13 = vor.u32 %v4399_v5, %v3443_v6 }
  0x67   : > { %1949 = vmatpush.bf16.msra.mxu3 %v3478_v53  ;;  %v3171_v14 = vld [vmem:[%s4699_s29 + $0x150] sm:$0xf0]  ;;  %v4363_v15 = vld [vmem:[%s4699_s29 + $0x244] sm:$0xf]  ;;  %v3046_v19 = vor.u32 %v4299_v10, %v3043_v11 }
  0x68   : > { %1911 = vmatpush.bf16.msra.mxu0 %v3078_v59  ;;  %v3299_v16 = vld [vmem:[%s4699_s29 + $0x250] sm:$0xf0]  ;;  %v4395_v17 = vld [vmem:[%s4699_s29 + $0x344] sm:$0xf]  ;;  %v3174_v20 = vor.u32 %v4331_v12, %v3171_v14 }
  0x69   : > { %1924 = vmatpush.bf16.msra.mxu1 %v3206_v60  ;;  %v3427_v18 = vld [vmem:[%s4699_s29 + $0x350] sm:$0xf0]  ;;  %v3302_v21 = vor.u32 %v4363_v15, %v3299_v16  ;;  %v4295_v22 = vld [vmem:[%s4699_s29 + $0x24] sm:$0xf] }
  0x6a   : > { %1937 = vmatpush.bf16.msra.mxu2 %v3334_v61  ;;  %v3027_v25 = vld [vmem:[%s4699_s29 + $0x30] sm:$0xf0]  ;;  %v4327_v28 = vld [vmem:[%s4699_s29 + $0x124] sm:$0xf]  ;;  %v3430_v29 = vor.u32 %v4395_v17, %v3427_v18 }
  0x6b   : > { %1950 = vmatpush.bf16.msra.mxu3 %v3462_v1  ;;  %v3155_v30 = vld [vmem:[%s4699_s29 + $0x130] sm:$0xf0]  ;;  %v4359_v32 = vld [vmem:[%s4699_s29 + $0x224] sm:$0xf]  ;;  %v3030_v38 = vor.u32 %v4295_v22, %v3027_v25 }
  0x6c   : > { %1912 = vmatpush.bf16.msra.mxu0 %v3062_v7  ;;  %v3283_v33 = vld [vmem:[%s4699_s29 + $0x230] sm:$0xf0]  ;;  %v4391_v34 = vld [vmem:[%s4699_s29 + $0x324] sm:$0xf]  ;;  %v3158_v42 = vor.u32 %v4327_v28, %v3155_v30 }
  0x6d   : > { %1925 = vmatpush.bf16.msra.mxu1 %v3190_v8  ;;  %v3411_v37 = vld [vmem:[%s4699_s29 + $0x330] sm:$0xf0]  ;;  %v4291_v39 = vld [vmem:[%s4699_s29 + $0x4] sm:$0xf]  ;;  %v3286_v43 = vor.u32 %v4359_v32, %v3283_v33 }
  0x6e   : > { %1938 = vmatpush.bf16.msra.mxu2 %v3318_v9  ;;  %v3011_v41 = vld [vmem:[%s4699_s29 + $0x10] sm:$0xf0]  ;;  %v4323_v44 = vld [vmem:[%s4699_s29 + $0x104] sm:$0xf]  ;;  %v3414_v47 = vor.u32 %v4391_v34, %v3411_v37 }
  0x6f   : > { %1951 = vmatpush.bf16.msra.mxu3 %v3446_v13  ;;  %v3139_v45 = vld [vmem:[%s4699_s29 + $0x110] sm:$0xf0]  ;;  %v4355_v46 = vld [vmem:[%s4699_s29 + $0x204] sm:$0xf]  ;;  %v3014_v54 = vor.u32 %v4291_v39, %v3011_v41 }
  0x70   : > { %1913 = vmatpush.bf16.msra.mxu0 %v3046_v19  ;;  %v3267_v48 = vld [vmem:[%s4699_s29 + $0x210] sm:$0xf0]  ;;  %v4387_v49 = vld [vmem:[%s4699_s29 + $0x304] sm:$0xf]  ;;  %v3142_v58 = vor.u32 %v4323_v44, %v3139_v45 }
  0x71   : > { %1926 = vmatpush.bf16.msra.mxu1 %v3174_v20  ;;  %v3395_v50 = vld [vmem:[%s4699_s29 + $0x310] sm:$0xf0]  ;;  %v4447_v51 = vld [vmem:[%s4699_s29 + $0x4e4] sm:$0xf]  ;;  %v3270_v59 = vor.u32 %v4355_v46, %v3267_v48 }
  0x72   : > { %1939 = vmatpush.bf16.msra.mxu2 %v3302_v21  ;;  %v3635_v52 = vld [vmem:[%s4699_s29 + $0x4f0] sm:$0xf0]  ;;  %v4479_v53 = vld [vmem:[%s4699_s29 + $0x5e4] sm:$0xf]  ;;  %v3398_v62 = vor.u32 %v4387_v49, %v3395_v50 }
  0x73   : > { %1952 = vmatpush.bf16.msra.mxu3 %v3430_v29  ;;  %v3763_v55 = vld [vmem:[%s4699_s29 + $0x5f0] sm:$0xf0]  ;;  %v4511_v56 = vld [vmem:[%s4699_s29 + $0x6e4] sm:$0xf]  ;;  %v3638_v63 = vor.u32 %v4447_v51, %v3635_v52 }
  0x74   : > { %1914 = vmatpush.bf16.msra.mxu0 %v3030_v38  ;;  %v3891_v57 = vld [vmem:[%s4699_s29 + $0x6f0] sm:$0xf0]  ;;  %v4543_v60 = vld [vmem:[%s4699_s29 + $0x7e4] sm:$0xf]  ;;  %v3766_v0 = vor.u32 %v4479_v53, %v3763_v55 }
  0x75   : > { %1927 = vmatpush.bf16.msra.mxu1 %v3158_v42  ;;  %v4019_v61 = vld [vmem:[%s4699_s29 + $0x7f0] sm:$0xf0]  ;;  %v3894_v1 = vor.u32 %v4511_v56, %v3891_v57  ;;  %v4443_v2 = vld [vmem:[%s4699_s29 + $0x4c4] sm:$0xf] }
  0x76   : > { %1940 = vmatpush.bf16.msra.mxu2 %v3286_v43  ;;  %v3619_v3 = vld [vmem:[%s4699_s29 + $0x4d0] sm:$0xf0]  ;;  %v4475_v4 = vld [vmem:[%s4699_s29 + $0x5c4] sm:$0xf]  ;;  %v4022_v5 = vor.u32 %v4543_v60, %v4019_v61 }
  0x77   : > { %1953 = vmatpush.bf16.msra.mxu3 %v3414_v47  ;;  %v3747_v6 = vld [vmem:[%s4699_s29 + $0x5d0] sm:$0xf0]  ;;  %v4507_v7 = vld [vmem:[%s4699_s29 + $0x6c4] sm:$0xf]  ;;  %v3622_v11 = vor.u32 %v4443_v2, %v3619_v3 }
  0x78   : > { %1915 = vmatpush.bf16.msra.mxu0 %v3014_v54  ;;  %v3875_v8 = vld [vmem:[%s4699_s29 + $0x6d0] sm:$0xf0]  ;;  %v4539_v9 = vld [vmem:[%s4699_s29 + $0x7c4] sm:$0xf]  ;;  %v3750_v12 = vor.u32 %v4475_v4, %v3747_v6 }
  0x79   : > { %1928 = vmatpush.bf16.msra.mxu1 %v3142_v58  ;;  %v4003_v10 = vld [vmem:[%s4699_s29 + $0x7d0] sm:$0xf0]  ;;  %v3878_v13 = vor.u32 %v4507_v7, %v3875_v8  ;;  %v4439_v14 = vld [vmem:[%s4699_s29 + $0x4a4] sm:$0xf] }
  0x7a   : > { %1941 = vmatpush.bf16.msra.mxu2 %v3270_v59  ;;  %v3603_v15 = vld [vmem:[%s4699_s29 + $0x4b0] sm:$0xf0]  ;;  %v4471_v16 = vld [vmem:[%s4699_s29 + $0x5a4] sm:$0xf]  ;;  %v4006_v17 = vor.u32 %v4539_v9, %v4003_v10 }
  0x7b   : > { %1954 = vmatpush.bf16.msra.mxu3 %v3398_v62  ;;  %v3731_v18 = vld [vmem:[%s4699_s29 + $0x5b0] sm:$0xf0]  ;;  %v4503_v19 = vld [vmem:[%s4699_s29 + $0x6a4] sm:$0xf]  ;;  %1916 = vmatmul.bf16.vlgmr.msra.gmra.mxu0 %v4807_v24  ;;  %v3606_v25 = vor.u32 %v4439_v14, %v3603_v15 }
  0x7c   : > { %1960 = vmatpush.bf16.msrb.mxu0 %v3638_v63  ;;  %v3859_v20 = vld [vmem:[%s4699_s29 + $0x6b0] sm:$0xf0]  ;;  %v4535_v21 = vld [vmem:[%s4699_s29 + $0x7a4] sm:$0xf]  ;;  %1929 = vmatmul.bf16.vlgmr.msra.gmra.mxu1 %v4812_v27  ;;  %v3734_v28 = vor.u32 %v4471_v16, %v3731_v18 }
  0x7d   : > { %1973 = vmatpush.bf16.msrb.mxu1 %v3766_v0  ;;  %1942 = vmatmul.bf16.vlgmr.msra.gmra.mxu2 %v4805_v23  ;;  %v3987_v22 = vld [vmem:[%s4699_s29 + $0x7b0] sm:$0xf0]  ;;  %v3862_v29 = vor.u32 %v4503_v19, %v3859_v20  ;;  %v4435_v30 = vld [vmem:[%s4699_s29 + $0x484] sm:$0xf] }
  0x7e   : > { %1986 = vmatpush.bf16.msrb.mxu2 %v3894_v1  ;;  %1955 = vmatmul.bf16.vlgmr.msra.gmra.mxu3 %v4810_v26  ;;  %v3587_v32 = vld [vmem:[%s4699_s29 + $0x490] sm:$0xf0]  ;;  %v4467_v33 = vld [vmem:[%s4699_s29 + $0x584] sm:$0xf]  ;;  %v3990_v34 = vor.u32 %v4535_v21, %v3987_v22 }
  0x7f   : > { %1999 = vmatpush.bf16.msrb.mxu3 %v4022_v5  ;;  %v3715_v37 = vld [vmem:[%s4699_s29 + $0x590] sm:$0xf0]  ;;  %v4499_v38 = vld [vmem:[%s4699_s29 + $0x684] sm:$0xf]  ;;  %v3590_v43 = vor.u32 %v4435_v30, %v3587_v32  ;;  %v3129_v32 = vld [vmem:[%s4699_s29 + $0xe8] sm:$0xf] }
  0x80   : > { %1961 = vmatpush.bf16.msrb.mxu0 %v3622_v11  ;;  %v3843_v39 = vld [vmem:[%s4699_s29 + $0x690] sm:$0xf0]  ;;  %v4531_v41 = vld [vmem:[%s4699_s29 + $0x784] sm:$0xf]  ;;  %v3718_v44 = vor.u32 %v4467_v33, %v3715_v37  ;;  %v4322_v33 = vld [vmem:[%s4699_s29 + $0xf4] sm:$0xf0] }
  0x81   : > { %1974 = vmatpush.bf16.msrb.mxu1 %v3750_v12  ;;  %v3971_v42 = vld [vmem:[%s4699_s29 + $0x790] sm:$0xf0]  ;;  %v3846_v45 = vor.u32 %v4499_v38, %v3843_v39  ;;  %v4431_v46 = vld [vmem:[%s4699_s29 + $0x464] sm:$0xf]  ;;  %v4354_v38 = vld [vmem:[%s4699_s29 + $0x1f4] sm:$0xf0] }
  0x82   : > { %1987 = vmatpush.bf16.msrb.mxu2 %v3878_v13  ;;  %v3571_v47 = vld [vmem:[%s4699_s29 + $0x470] sm:$0xf0]  ;;  %v4463_v48 = vld [vmem:[%s4699_s29 + $0x564] sm:$0xf]  ;;  %v3974_v49 = vor.u32 %v4531_v41, %v3971_v42  ;;  %v3385_v39 = vld [vmem:[%s4699_s29 + $0x2e8] sm:$0xf] }
  0x83   : > { %2000 = vmatpush.bf16.msrb.mxu3 %v4006_v17  ;;  %v3699_v50 = vld [vmem:[%s4699_s29 + $0x570] sm:$0xf0]  ;;  %v4495_v51 = vld [vmem:[%s4699_s29 + $0x664] sm:$0xf]  ;;  %v3574_v55 = vor.u32 %v4431_v46, %v3571_v47  ;;  %v4386_v41 = vld [vmem:[%s4699_s29 + $0x2f4] sm:$0xf0]  ;;  %v3130_v47 = vor.u32 %v4322_v33, %v3129_v32 }
  0x84   : > { %1962 = vmatpush.bf16.msrb.mxu0 %v3606_v25  ;;  %v3827_v52 = vld [vmem:[%s4699_s29 + $0x670] sm:$0xf0]  ;;  %v4527_v53 = vld [vmem:[%s4699_s29 + $0x764] sm:$0xf]  ;;  %v3702_v56 = vor.u32 %v4463_v48, %v3699_v50  ;;  %v3113_v50 = vld [vmem:[%s4699_s29 + $0xc8] sm:$0xf] }
  0x85   : > { %1975 = vmatpush.bf16.msrb.mxu1 %v3734_v28  ;;  %v3955_v54 = vld [vmem:[%s4699_s29 + $0x770] sm:$0xf0]  ;;  %v3830_v57 = vor.u32 %v4495_v51, %v3827_v52  ;;  %v4427_v58 = vld [vmem:[%s4699_s29 + $0x444] sm:$0xf]  ;;  %v4318_v51 = vld [vmem:[%s4699_s29 + $0xd4] sm:$0xf0] }
  0x86   : > { %1988 = vmatpush.bf16.msrb.mxu2 %v3862_v29  ;;  %v3555_v59 = vld [vmem:[%s4699_s29 + $0x450] sm:$0xf0]  ;;  %v4459_v60 = vld [vmem:[%s4699_s29 + $0x544] sm:$0xf]  ;;  %v3958_v61 = vor.u32 %v4527_v53, %v3955_v54  ;;  %v3241_v52 = vld [vmem:[%s4699_s29 + $0x1c8] sm:$0xf] }
  0x87   : > { %2001 = vmatpush.bf16.msrb.mxu3 %v3990_v34  ;;  %v3683_v62 = vld [vmem:[%s4699_s29 + $0x550] sm:$0xf0]  ;;  %v4491_v63 = vld [vmem:[%s4699_s29 + $0x644] sm:$0xf]  ;;  %v3558_v3 = vor.u32 %v4427_v58, %v3555_v59  ;;  %v3257_v34 = vld [vmem:[%s4699_s29 + $0x1e8] sm:$0xf]  ;;  %v3114_v59 = vor.u32 %v4318_v51, %v3113_v50 }
  0x88   : > { %1963 = vmatpush.bf16.msrb.mxu0 %v3590_v43  ;;  %v3811_v0 = vld [vmem:[%s4699_s29 + $0x650] sm:$0xf0]  ;;  %v4523_v1 = vld [vmem:[%s4699_s29 + $0x744] sm:$0xf]  ;;  %v3686_v4 = vor.u32 %v4459_v60, %v3683_v62  ;;  %v3258_v48 = vor.u32 %v4354_v38, %v3257_v34  ;;  %v4350_v54 = vld [vmem:[%s4699_s29 + $0x1d4] sm:$0xf0] }
  0x89   : > { %1976 = vmatpush.bf16.msrb.mxu1 %v3718_v44  ;;  %v3939_v2 = vld [vmem:[%s4699_s29 + $0x750] sm:$0xf0]  ;;  %v3814_v5 = vor.u32 %v4491_v63, %v3811_v0  ;;  %v4423_v6 = vld [vmem:[%s4699_s29 + $0x424] sm:$0xf]  ;;  %v3513_v44 = vld [vmem:[%s4699_s29 + $0x3e8] sm:$0xf]  ;;  %v3242_v60 = vor.u32 %v4350_v54, %v3241_v52 }
  0x8a   : > { %1989 = vmatpush.bf16.msrb.mxu2 %v3846_v45  ;;  %v3539_v7 = vld [vmem:[%s4699_s29 + $0x430] sm:$0xf0]  ;;  %v4455_v8 = vld [vmem:[%s4699_s29 + $0x524] sm:$0xf]  ;;  %v3942_v9 = vor.u32 %v4523_v1, %v3939_v2  ;;  %v4418_v45 = vld [vmem:[%s4699_s29 + $0x3f4] sm:$0xf0] }
  0x8b   : > { %2002 = vmatpush.bf16.msrb.mxu3 %v3974_v49  ;;  %v3667_v10 = vld [vmem:[%s4699_s29 + $0x530] sm:$0xf0]  ;;  %v4487_v11 = vld [vmem:[%s4699_s29 + $0x624] sm:$0xf]  ;;  %v3542_v15 = vor.u32 %v4423_v6, %v3539_v7  ;;  %v3386_v49 = vor.u32 %v4386_v41, %v3385_v39  ;;  %v3514_v53 = vor.u32 %v4418_v45, %v3513_v44  ;;  %v4414_v58 = vld [vmem:[%s4699_s29 + $0x3d4] sm:$0xf0] }
  0x8c   : > { %1964 = vmatpush.bf16.msrb.mxu0 %v3574_v55  ;;  %v3795_v12 = vld [vmem:[%s4699_s29 + $0x630] sm:$0xf0]  ;;  %v4519_v13 = vld [vmem:[%s4699_s29 + $0x724] sm:$0xf]  ;;  %v3670_v18 = vor.u32 %v4455_v8, %v3667_v10  ;;  %v3369_v55 = vld [vmem:[%s4699_s29 + $0x2c8] sm:$0xf] }
  0x8d   : > { %1977 = vmatpush.bf16.msrb.mxu1 %v3702_v56  ;;  %v3923_v14 = vld [vmem:[%s4699_s29 + $0x730] sm:$0xf0]  ;;  %v4419_v16 = vld [vmem:[%s4699_s29 + $0x404] sm:$0xf]  ;;  %v3798_v19 = vor.u32 %v4487_v11, %v3795_v12  ;;  %v4382_v56 = vld [vmem:[%s4699_s29 + $0x2d4] sm:$0xf0] }
  0x8e   : > { %1990 = vmatpush.bf16.msrb.mxu2 %v3830_v57  ;;  %v3523_v17 = vld [vmem:[%s4699_s29 + $0x410] sm:$0xf0]  ;;  %v4451_v20 = vld [vmem:[%s4699_s29 + $0x504] sm:$0xf]  ;;  %v3926_v25 = vor.u32 %v4519_v13, %v3923_v14  ;;  %v3497_v57 = vld [vmem:[%s4699_s29 + $0x3c8] sm:$0xf] }
  0x8f   : > { %2003 = vmatpush.bf16.msrb.mxu3 %v3958_v61  ;;  %v3651_v21 = vld [vmem:[%s4699_s29 + $0x510] sm:$0xf0]  ;;  %v4483_v22 = vld [vmem:[%s4699_s29 + $0x604] sm:$0xf]  ;;  %v3526_v37 = vor.u32 %v4419_v16, %v3523_v17  ;;  %v3370_v61 = vor.u32 %v4382_v56, %v3369_v55  ;;  %v3097_v62 = vld [vmem:[%s4699_s29 + $0xa8] sm:$0xf]  ;;  %v3498_v1 = vor.u32 %v4414_v58, %v3497_v57 }
  0x90   : > { %1965 = vmatpush.bf16.msrb.mxu0 %v3558_v3  ;;  %v3779_v28 = vld [vmem:[%s4699_s29 + $0x610] sm:$0xf0]  ;;  %v4515_v29 = vld [vmem:[%s4699_s29 + $0x704] sm:$0xf]  ;;  %v3654_v42 = vor.u32 %v4451_v20, %v3651_v21  ;;  %v4314_v63 = vld [vmem:[%s4699_s29 + $0xb4] sm:$0xf0] }
  0x91   : > { %1978 = vmatpush.bf16.msrb.mxu1 %v3686_v4  ;;  %v3907_v30 = vld [vmem:[%s4699_s29 + $0x710] sm:$0xf0]  ;;  %v3782_v43 = vor.u32 %v4483_v22, %v3779_v28  ;;  %v3225_v0 = vld [vmem:[%s4699_s29 + $0x1a8] sm:$0xf]  ;;  %v4346_v2 = vld [vmem:[%s4699_s29 + $0x1b4] sm:$0xf0] }
  0x92   : > { %1991 = vmatpush.bf16.msrb.mxu2 %v3814_v5  ;;  %v3910_v46 = vor.u32 %v4515_v29, %v3907_v30  ;;  %v3353_v3 = vld [vmem:[%s4699_s29 + $0x2a8] sm:$0xf]  ;;  %v4378_v4 = vld [vmem:[%s4699_s29 + $0x2b4] sm:$0xf0]  ;;  %v3226_v7 = vor.u32 %v4346_v2, %v3225_v0 }
  0x93   : > { %2004 = vmatpush.bf16.msrb.mxu3 %v3942_v9  ;;  %v3481_v5 = vld [vmem:[%s4699_s29 + $0x3a8] sm:$0xf]  ;;  %v4410_v6 = vld [vmem:[%s4699_s29 + $0x3b4] sm:$0xf0]  ;;  %v3354_v8 = vor.u32 %v4378_v4, %v3353_v3 }
  0x94   : > { %1966 = vmatpush.bf16.msrb.mxu0 %v3542_v15  ;;  %v3081_v9 = vld [vmem:[%s4699_s29 + $0x88] sm:$0xf]  ;;  %v4342_v11 = vld [vmem:[%s4699_s29 + $0x194] sm:$0xf0] }
  0x95   : > { %1979 = vmatpush.bf16.msrb.mxu1 %v3670_v18  ;;  %v3209_v10 = vld [vmem:[%s4699_s29 + $0x188] sm:$0xf]  ;;  %v4374_v13 = vld [vmem:[%s4699_s29 + $0x294] sm:$0xf0] }
  0x96   : > { %1992 = vmatpush.bf16.msrb.mxu2 %v3798_v19  ;;  %v3337_v12 = vld [vmem:[%s4699_s29 + $0x288] sm:$0xf]  ;;  %v4406_v14 = vld [vmem:[%s4699_s29 + $0x394] sm:$0xf0]  ;;  %v3210_v16 = vor.u32 %v4342_v11, %v3209_v10 }
  0x97   : > { %2005 = vmatpush.bf16.msrb.mxu3 %v3926_v25  ;;  %v3338_v17 = vor.u32 %v4374_v13, %v3337_v12  ;;  %v3065_v18 = vld [vmem:[%s4699_s29 + $0x68] sm:$0xf]  ;;  %v4306_v19 = vld [vmem:[%s4699_s29 + $0x74] sm:$0xf0] }
  0x98   : > { %1967 = vmatpush.bf16.msrb.mxu0 %v3526_v37  ;;  %v3193_v20 = vld [vmem:[%s4699_s29 + $0x168] sm:$0xf]  ;;  %v4338_v22 = vld [vmem:[%s4699_s29 + $0x174] sm:$0xf0]  ;;  %v3066_v32 = vor.u32 %v4306_v19, %v3065_v18 }
  0x99   : > { %1980 = vmatpush.bf16.msrb.mxu1 %v3654_v42  ;;  %v3321_v25 = vld [vmem:[%s4699_s29 + $0x268] sm:$0xf]  ;;  %v4370_v28 = vld [vmem:[%s4699_s29 + $0x274] sm:$0xf0]  ;;  %v3194_v33 = vor.u32 %v4338_v22, %v3193_v20 }
  0x9a   : > { %1993 = vmatpush.bf16.msrb.mxu2 %v3782_v43  ;;  %v3449_v29 = vld [vmem:[%s4699_s29 + $0x368] sm:$0xf]  ;;  %v4402_v30 = vld [vmem:[%s4699_s29 + $0x374] sm:$0xf0]  ;;  %v3322_v34 = vor.u32 %v4370_v28, %v3321_v25 }
  0x9b   : > { %2006 = vmatpush.bf16.msrb.mxu3 %v3910_v46  ;;  %1968 = vmatmul.bf16.vlgmr.msrb.gmra.mxu0 %v4864_v35  ;;  %v4310_v35 = vld [vmem:[%s4699_s29 + $0x94] sm:$0xf0]  ;;  %v3049_v37 = vld [vmem:[%s4699_s29 + $0x48] sm:$0xf]  ;;  %v3450_v41 = vor.u32 %v4402_v30, %v3449_v29 }
  0x9c   : > { %2012 = vmatpush.bf16.msra.mxu0 %v3130_v47  ;;  %1981 = vmatmul.bf16.vlgmr.msrb.gmra.mxu1 %v4869_v40  ;;  %v3465_v40 = vld [vmem:[%s4699_s29 + $0x388] sm:$0xf]  ;;  %v3082_v15 = vor.u32 %v4310_v35, %v3081_v9  ;;  %v4302_v38 = vld [vmem:[%s4699_s29 + $0x54] sm:$0xf0] }
  0x9d   : > { %2025 = vmatpush.bf16.msra.mxu1 %v3258_v48  ;;  %1994 = vmatmul.bf16.vlgmr.msrb.gmra.mxu2 %v4860_v31  ;;  %v3098_v31 = vor.u32 %v4314_v63, %v3097_v62  ;;  %v3466_v21 = vor.u32 %v4406_v14, %v3465_v40  ;;  %v3177_v39 = vld [vmem:[%s4699_s29 + $0x148] sm:$0xf]  ;;  %v4334_v42 = vld [vmem:[%s4699_s29 + $0x154] sm:$0xf0]  ;;  %v3050_v47 = vor.u32 %v4302_v38, %v3049_v37 }
  0x9e   : > { %2038 = vmatpush.bf16.msra.mxu2 %v3386_v49  ;;  %2007 = vmatmul.bf16.vlgmr.msrb.gmra.mxu3 %v4866_v36  ;;  %v3482_v36 = vor.u32 %v4410_v6, %v3481_v5  ;;  %v3305_v43 = vld [vmem:[%s4699_s29 + $0x248] sm:$0xf]  ;;  %v4366_v44 = vld [vmem:[%s4699_s29 + $0x254] sm:$0xf0]  ;;  %v3178_v48 = vor.u32 %v4334_v42, %v3177_v39 }
  0x9f   : > { %2051 = vmatpush.bf16.msra.mxu3 %v3514_v53  ;;  %v3433_v45 = vld [vmem:[%s4699_s29 + $0x348] sm:$0xf]  ;;  %v4398_v46 = vld [vmem:[%s4699_s29 + $0x354] sm:$0xf0]  ;;  %v3306_v49 = vor.u32 %v4366_v44, %v3305_v43 }
  0xa0   : > { %2013 = vmatpush.bf16.msra.mxu0 %v3114_v59  ;;  %v3033_v50 = vld [vmem:[%s4699_s29 + $0x28] sm:$0xf]  ;;  %v4298_v51 = vld [vmem:[%s4699_s29 + $0x34] sm:$0xf0]  ;;  %v3434_v53 = vor.u32 %v4398_v46, %v3433_v45 }
  0xa1   : > { %2026 = vmatpush.bf16.msra.mxu1 %v3242_v60  ;;  %v3161_v52 = vld [vmem:[%s4699_s29 + $0x128] sm:$0xf]  ;;  %v4330_v54 = vld [vmem:[%s4699_s29 + $0x134] sm:$0xf0]  ;;  %v3034_v59 = vor.u32 %v4298_v51, %v3033_v50 }
  0xa2   : > { %2039 = vmatpush.bf16.msra.mxu2 %v3370_v61  ;;  %v3289_v55 = vld [vmem:[%s4699_s29 + $0x228] sm:$0xf]  ;;  %v4362_v56 = vld [vmem:[%s4699_s29 + $0x234] sm:$0xf0]  ;;  %v3162_v62 = vor.u32 %v4330_v54, %v3161_v52 }
  0xa3   : > { %2052 = vmatpush.bf16.msra.mxu3 %v3498_v1  ;;  %v3417_v57 = vld [vmem:[%s4699_s29 + $0x328] sm:$0xf]  ;;  %v4394_v58 = vld [vmem:[%s4699_s29 + $0x334] sm:$0xf0]  ;;  %v3290_v63 = vor.u32 %v4362_v56, %v3289_v55 }
  0xa4   : > { %2014 = vmatpush.bf16.msra.mxu0 %v3098_v31  ;;  %v3017_v60 = vld [vmem:[%s4699_s29 + $0x8] sm:$0xf]  ;;  %v4294_v61 = vld [vmem:[%s4699_s29 + $0x14] sm:$0xf0]  ;;  %v3418_v3 = vor.u32 %v4394_v58, %v3417_v57 }
  0xa5   : > { %2027 = vmatpush.bf16.msra.mxu1 %v3226_v7  ;;  %v3145_v0 = vld [vmem:[%s4699_s29 + $0x108] sm:$0xf]  ;;  %v4326_v1 = vld [vmem:[%s4699_s29 + $0x114] sm:$0xf0]  ;;  %v3018_v9 = vor.u32 %v4294_v61, %v3017_v60 }
  0xa6   : > { %2040 = vmatpush.bf16.msra.mxu2 %v3354_v8  ;;  %v3273_v2 = vld [vmem:[%s4699_s29 + $0x208] sm:$0xf]  ;;  %v4358_v4 = vld [vmem:[%s4699_s29 + $0x214] sm:$0xf0]  ;;  %v3146_v11 = vor.u32 %v4326_v1, %v3145_v0 }
  0xa7   : > { %2053 = vmatpush.bf16.msra.mxu3 %v3482_v36  ;;  %v3401_v5 = vld [vmem:[%s4699_s29 + $0x308] sm:$0xf]  ;;  %v4390_v6 = vld [vmem:[%s4699_s29 + $0x314] sm:$0xf0]  ;;  %v3274_v12 = vor.u32 %v4358_v4, %v3273_v2 }
  0xa8   : > { %2015 = vmatpush.bf16.msra.mxu0 %v3082_v15  ;;  %v3641_v31 = vld [vmem:[%s4699_s29 + $0x4e8] sm:$0xf]  ;;  %v4450_v7 = vld [vmem:[%s4699_s29 + $0x4f4] sm:$0xf0]  ;;  %v3402_v14 = vor.u32 %v4390_v6, %v3401_v5 }
  0xa9   : > { %2028 = vmatpush.bf16.msra.mxu1 %v3210_v16  ;;  %v3769_v8 = vld [vmem:[%s4699_s29 + $0x5e8] sm:$0xf]  ;;  %v4482_v35 = vld [vmem:[%s4699_s29 + $0x5f4] sm:$0xf0]  ;;  %v3642_v15 = vor.u32 %v4450_v7, %v3641_v31 }
  0xaa   : > { %2041 = vmatpush.bf16.msra.mxu2 %v3338_v17  ;;  %v3897_v10 = vld [vmem:[%s4699_s29 + $0x6e8] sm:$0xf]  ;;  %v4514_v36 = vld [vmem:[%s4699_s29 + $0x6f4] sm:$0xf0]  ;;  %v3770_v16 = vor.u32 %v4482_v35, %v3769_v8 }
  0xab   : > { %2054 = vmatpush.bf16.msra.mxu3 %v3466_v21  ;;  %v4025_v13 = vld [vmem:[%s4699_s29 + $0x7e8] sm:$0xf]  ;;  %v4546_v40 = vld [vmem:[%s4699_s29 + $0x7f4] sm:$0xf0]  ;;  %v3898_v17 = vor.u32 %v4514_v36, %v3897_v10 }
  0xac   : > { %2016 = vmatpush.bf16.msra.mxu0 %v3066_v32  ;;  %v3625_v18 = vld [vmem:[%s4699_s29 + $0x4c8] sm:$0xf]  ;;  %v4446_v19 = vld [vmem:[%s4699_s29 + $0x4d4] sm:$0xf0]  ;;  %v4026_v21 = vor.u32 %v4546_v40, %v4025_v13 }
  0xad   : > { %2029 = vmatpush.bf16.msra.mxu1 %v3194_v33  ;;  %v3753_v20 = vld [vmem:[%s4699_s29 + $0x5c8] sm:$0xf]  ;;  %v4478_v22 = vld [vmem:[%s4699_s29 + $0x5d4] sm:$0xf0]  ;;  %v3626_v32 = vor.u32 %v4446_v19, %v3625_v18 }
  0xae   : > { %2042 = vmatpush.bf16.msra.mxu2 %v3322_v34  ;;  %v3881_v25 = vld [vmem:[%s4699_s29 + $0x6c8] sm:$0xf]  ;;  %v4510_v28 = vld [vmem:[%s4699_s29 + $0x6d4] sm:$0xf0]  ;;  %v3754_v33 = vor.u32 %v4478_v22, %v3753_v20 }
  0xaf   : > { %2055 = vmatpush.bf16.msra.mxu3 %v3450_v41  ;;  %v4009_v29 = vld [vmem:[%s4699_s29 + $0x7c8] sm:$0xf]  ;;  %v4542_v30 = vld [vmem:[%s4699_s29 + $0x7d4] sm:$0xf0]  ;;  %v3882_v34 = vor.u32 %v4510_v28, %v3881_v25 }
  0xb0   : > { %2017 = vmatpush.bf16.msra.mxu0 %v3050_v47  ;;  %v3609_v37 = vld [vmem:[%s4699_s29 + $0x4a8] sm:$0xf]  ;;  %v4442_v38 = vld [vmem:[%s4699_s29 + $0x4b4] sm:$0xf0]  ;;  %v4010_v41 = vor.u32 %v4542_v30, %v4009_v29 }
  0xb1   : > { %2030 = vmatpush.bf16.msra.mxu1 %v3178_v48  ;;  %v3737_v39 = vld [vmem:[%s4699_s29 + $0x5a8] sm:$0xf]  ;;  %v4474_v42 = vld [vmem:[%s4699_s29 + $0x5b4] sm:$0xf0]  ;;  %v3610_v47 = vor.u32 %v4442_v38, %v3609_v37 }
  0xb2   : > { %2043 = vmatpush.bf16.msra.mxu2 %v3306_v49  ;;  %v3865_v43 = vld [vmem:[%s4699_s29 + $0x6a8] sm:$0xf]  ;;  %v4506_v44 = vld [vmem:[%s4699_s29 + $0x6b4] sm:$0xf0]  ;;  %v3738_v48 = vor.u32 %v4474_v42, %v3737_v39 }
  0xb3   : > { %2056 = vmatpush.bf16.msra.mxu3 %v3434_v53  ;;  %v3993_v45 = vld [vmem:[%s4699_s29 + $0x7a8] sm:$0xf]  ;;  %v4538_v46 = vld [vmem:[%s4699_s29 + $0x7b4] sm:$0xf0]  ;;  %v3866_v49 = vor.u32 %v4506_v44, %v3865_v43 }
  0xb4   : > { %2018 = vmatpush.bf16.msra.mxu0 %v3034_v59  ;;  %v4438_v50 = vld [vmem:[%s4699_s29 + $0x494] sm:$0xf0]  ;;  %v3721_v51 = vld [vmem:[%s4699_s29 + $0x588] sm:$0xf] }
  0xb5   : > { %2031 = vmatpush.bf16.msra.mxu1 %v3162_v62  ;;  %v4470_v52 = vld [vmem:[%s4699_s29 + $0x594] sm:$0xf0]  ;;  %v3977_v54 = vld [vmem:[%s4699_s29 + $0x788] sm:$0xf] }
  0xb6   : > { %2044 = vmatpush.bf16.msra.mxu2 %v3290_v63  ;;  %v4502_v53 = vld [vmem:[%s4699_s29 + $0x694] sm:$0xf0]  ;;  %v3722_v56 = vor.u32 %v4470_v52, %v3721_v51  ;;  %v3577_v58 = vld [vmem:[%s4699_s29 + $0x468] sm:$0xf]  ;;  %v4384_v52 = vld [vmem:[%s4699_s29 + $0x2ec] sm:$0xf] }
  0xb7   : > { %2057 = vmatpush.bf16.msra.mxu3 %v3418_v3  ;;  %v4434_v59 = vld [vmem:[%s4699_s29 + $0x474] sm:$0xf0]  ;;  %v3705_v60 = vld [vmem:[%s4699_s29 + $0x568] sm:$0xf] }
  0xb8   : > { %2019 = vmatpush.bf16.msra.mxu0 %v3018_v9  ;;  %v4466_v62 = vld [vmem:[%s4699_s29 + $0x574] sm:$0xf0]  ;;  %v3833_v63 = vld [vmem:[%s4699_s29 + $0x668] sm:$0xf]  ;;  %v3578_v3 = vor.u32 %v4434_v59, %v3577_v58 }
  0xb9   : > { %2032 = vmatpush.bf16.msra.mxu1 %v3146_v11  ;;  %v4498_v0 = vld [vmem:[%s4699_s29 + $0x674] sm:$0xf0]  ;;  %v3961_v1 = vld [vmem:[%s4699_s29 + $0x768] sm:$0xf]  ;;  %v3706_v4 = vor.u32 %v4466_v62, %v3705_v60 }
  0xba   : > { %2045 = vmatpush.bf16.msra.mxu2 %v3274_v12  ;;  %v4530_v2 = vld [vmem:[%s4699_s29 + $0x774] sm:$0xf0]  ;;  %v3834_v5 = vor.u32 %v4498_v0, %v3833_v63  ;;  %v3561_v6 = vld [vmem:[%s4699_s29 + $0x448] sm:$0xf]  ;;  %v4316_v63 = vld [vmem:[%s4699_s29 + $0xcc] sm:$0xf] }
  0xbb   : > { %2058 = vmatpush.bf16.msra.mxu3 %v3402_v14  ;;  %2020 = vmatmul.bf16.vlgmr.msra.gmra.mxu0 %v4807_v24  ;;  %v3994_v24 = vor.u32 %v4538_v46, %v3993_v45  ;;  %v4430_v31 = vld [vmem:[%s4699_s29 + $0x454] sm:$0xf0]  ;;  %v3689_v7 = vld [vmem:[%s4699_s29 + $0x548] sm:$0xf]  ;;  %v3962_v8 = vor.u32 %v4530_v2, %v3961_v1  ;;  %v3115_v0 = vld [vmem:[%s4699_s29 + $0xd8] sm:$0xf0] }
  0xbc   : > { %2064 = vmatpush.bf16.msrb.mxu0 %v3642_v15  ;;  %2033 = vmatmul.bf16.vlgmr.msra.gmra.mxu1 %v4812_v27  ;;  %v4534_v27 = vld [vmem:[%s4699_s29 + $0x794] sm:$0xf0]  ;;  %v3817_v35 = vld [vmem:[%s4699_s29 + $0x648] sm:$0xf]  ;;  %v3562_v12 = vor.u32 %v4430_v31, %v3561_v6  ;;  %v4348_v1 = vld [vmem:[%s4699_s29 + $0x1cc] sm:$0xf] }
  0xbd   : > { %2077 = vmatpush.bf16.msrb.mxu1 %v3770_v16  ;;  %2046 = vmatmul.bf16.vlgmr.msra.gmra.mxu2 %v4805_v23  ;;  %v3593_v23 = vld [vmem:[%s4699_s29 + $0x488] sm:$0xf]  ;;  %v3978_v61 = vor.u32 %v4534_v27, %v3977_v54  ;;  %v4462_v9 = vld [vmem:[%s4699_s29 + $0x554] sm:$0xf0]  ;;  %v4412_v6 = vld [vmem:[%s4699_s29 + $0x3cc] sm:$0xf] }
  0xbe   : > { %2090 = vmatpush.bf16.msrb.mxu2 %v3898_v17  ;;  %2059 = vmatmul.bf16.vlgmr.msra.gmra.mxu3 %v4810_v26  ;;  %v3849_v26 = vld [vmem:[%s4699_s29 + $0x688] sm:$0xf]  ;;  %v3594_v55 = vor.u32 %v4438_v50, %v3593_v23  ;;  %v4494_v10 = vld [vmem:[%s4699_s29 + $0x654] sm:$0xf0]  ;;  %v3690_v40 = vor.u32 %v4462_v9, %v3689_v7  ;;  %v3131_v23 = vld [vmem:[%s4699_s29 + $0xf8] sm:$0xf0] }
  0xbf   : > { %2103 = vmatpush.bf16.msrb.mxu3 %v4026_v21  ;;  %v3850_v57 = vor.u32 %v4502_v53, %v3849_v26  ;;  %v3945_v36 = vld [vmem:[%s4699_s29 + $0x748] sm:$0xf]  ;;  %v4526_v11 = vld [vmem:[%s4699_s29 + $0x754] sm:$0xf0]  ;;  %v3818_v14 = vor.u32 %v4494_v10, %v3817_v35  ;;  %v4352_v50 = vld [vmem:[%s4699_s29 + $0x1ec] sm:$0xf] }
  0xc0   : > { %2065 = vmatpush.bf16.msrb.mxu0 %v3626_v32  ;;  %v3545_v15 = vld [vmem:[%s4699_s29 + $0x428] sm:$0xf]  ;;  %v4426_v16 = vld [vmem:[%s4699_s29 + $0x434] sm:$0xf0]  ;;  %v3946_v19 = vor.u32 %v4526_v11, %v3945_v36  ;;  %v3387_v26 = vld [vmem:[%s4699_s29 + $0x2f8] sm:$0xf0] }
  0xc1   : > { %2078 = vmatpush.bf16.msrb.mxu1 %v3754_v33  ;;  %v3673_v17 = vld [vmem:[%s4699_s29 + $0x528] sm:$0xf]  ;;  %v4458_v20 = vld [vmem:[%s4699_s29 + $0x534] sm:$0xf0]  ;;  %v3546_v30 = vor.u32 %v4426_v16, %v3545_v15  ;;  %v3390_v62 = vor.u32 %v4384_v52, %v3387_v26  ;;  %v3499_v31 = vld [vmem:[%s4699_s29 + $0x3d8] sm:$0xf0] }
  0xc2   : > { %2091 = vmatpush.bf16.msrb.mxu2 %v3882_v34  ;;  %v3801_v21 = vld [vmem:[%s4699_s29 + $0x628] sm:$0xf]  ;;  %v4490_v22 = vld [vmem:[%s4699_s29 + $0x634] sm:$0xf0]  ;;  %v3674_v34 = vor.u32 %v4458_v20, %v3673_v17  ;;  %v4312_v36 = vld [vmem:[%s4699_s29 + $0xac] sm:$0xf] }
  0xc3   : > { %2104 = vmatpush.bf16.msrb.mxu3 %v4010_v41  ;;  %v3929_v28 = vld [vmem:[%s4699_s29 + $0x728] sm:$0xf]  ;;  %v4522_v29 = vld [vmem:[%s4699_s29 + $0x734] sm:$0xf0]  ;;  %v3802_v37 = vor.u32 %v4490_v22, %v3801_v21  ;;  %v3099_v11 = vld [vmem:[%s4699_s29 + $0xb8] sm:$0xf0] }
  0xc4   : > { %2066 = vmatpush.bf16.msrb.mxu0 %v3610_v47  ;;  %v3529_v32 = vld [vmem:[%s4699_s29 + $0x408] sm:$0xf]  ;;  %v4422_v33 = vld [vmem:[%s4699_s29 + $0x414] sm:$0xf0]  ;;  %v3930_v43 = vor.u32 %v4522_v29, %v3929_v28  ;;  %v4376_v15 = vld [vmem:[%s4699_s29 + $0x2ac] sm:$0xf]  ;;  %v3102_v21 = vor.u32 %v4312_v36, %v3099_v11 }
  0xc5   : > { %2079 = vmatpush.bf16.msrb.mxu1 %v3738_v48  ;;  %v3657_v38 = vld [vmem:[%s4699_s29 + $0x508] sm:$0xf]  ;;  %v4454_v39 = vld [vmem:[%s4699_s29 + $0x514] sm:$0xf0]  ;;  %v3530_v51 = vor.u32 %v4422_v33, %v3529_v32  ;;  %v3355_v16 = vld [vmem:[%s4699_s29 + $0x2b8] sm:$0xf0] }
  0xc6   : > { %2092 = vmatpush.bf16.msrb.mxu2 %v3866_v49  ;;  %v3785_v41 = vld [vmem:[%s4699_s29 + $0x608] sm:$0xf]  ;;  %v4486_v44 = vld [vmem:[%s4699_s29 + $0x614] sm:$0xf0]  ;;  %v4320_v49 = vld [vmem:[%s4699_s29 + $0xec] sm:$0xf]  ;;  %v3658_v27 = vor.u32 %v4454_v39, %v3657_v38  ;;  %v3358_v28 = vor.u32 %v4376_v15, %v3355_v16 }
  0xc7   : > { %2105 = vmatpush.bf16.msrb.mxu3 %v3994_v24  ;;  %v3913_v45 = vld [vmem:[%s4699_s29 + $0x708] sm:$0xf]  ;;  %v4518_v46 = vld [vmem:[%s4699_s29 + $0x714] sm:$0xf0]  ;;  %v3259_v24 = vld [vmem:[%s4699_s29 + $0x1f8] sm:$0xf0]  ;;  %v3134_v60 = vor.u32 %v4320_v49, %v3131_v23 }
  0xc8   : > { %2067 = vmatpush.bf16.msrb.mxu0 %v3594_v55  ;;  %v1813_v13 = vpop.f32.mrf.mxu0  ;;  %v3786_v55 = vor.u32 %v4486_v44, %v3785_v41  ;;  %v3914_v59 = vor.u32 %v4518_v46, %v3913_v45  ;;  %v5151_v17 = vld.sshfl [vmem:[#allocation1 + $0x20] sm:$0xff pattern:$0x73625140]  ;;  %v3483_v20 = vld [vmem:[%s4699_s29 + $0x3b8] sm:$0xf0] }
  0xc9   : > { %2080 = vmatpush.bf16.msrb.mxu1 %v3722_v56  ;;  %v1826_v18 = vpop.f32.mrf.mxu1  ;;  %v4416_v56 = vld [vmem:[%s4699_s29 + $0x3ec] sm:$0xf]  ;;  %v3339_v38 = vld [vmem:[%s4699_s29 + $0x298] sm:$0xf0] }
  0xca   : > { %2093 = vmatpush.bf16.msrb.mxu2 %v3850_v57  ;;  %v1827_v25 = vadd.f32 %v1826_v18, %v1813_v13  ;;  %v3515_v57 = vld [vmem:[%s4699_s29 + $0x3f8] sm:$0xf0]  ;;  %v3502_v13 = vor.u32 %v4412_v6, %v3499_v31  ;;  %v5159_v22 = vld.sshfl [vmem:[#allocation1 + $0x28] sm:$0xff pattern:$0x73625140] }
  0xcb   : > { %2106 = vmatpush.bf16.msrb.mxu3 %v3978_v61  ;;  %v3262_v61 = vor.u32 %v4352_v50, %v3259_v24  ;;  %v3518_v2 = vor.u32 %v4416_v56, %v3515_v57  ;;  %v5154_v18 = vld.sshfl [vmem:[#allocation1 + $0x38] sm:$0xff pattern:$0x73625140]  ;;  %v4308_v29 = vld [vmem:[%s4699_s29 + $0x8c] sm:$0xf] }
  0xcc   : > { %2068 = vmatpush.bf16.msrb.mxu0 %v3578_v3  ;;  %v3243_v3 = vld [vmem:[%s4699_s29 + $0x1d8] sm:$0xf0]  ;;  %v4340_v32 = vld [vmem:[%s4699_s29 + $0x18c] sm:$0xf] }
  0xcd   : > { %2081 = vmatpush.bf16.msrb.mxu1 %v3706_v4  ;;  %v1839_v42 = vpop.f32.mrf.mxu2  ;;  %v4380_v4 = vld [vmem:[%s4699_s29 + $0x2cc] sm:$0xf]  ;;  %v3246_v35 = vor.u32 %v4348_v1, %v3243_v3  ;;  %v3467_v41 = vld [vmem:[%s4699_s29 + $0x398] sm:$0xf0] }
  0xce   : > { %2094 = vmatpush.bf16.msrb.mxu2 %v3834_v5  ;;  %v1840_v47 = vadd.f32 %v1839_v42, %v1827_v25  ;;  %v1852_v48 = vpop.f32.mrf.mxu3  ;;  %v3371_v5 = vld [vmem:[%s4699_s29 + $0x2d8] sm:$0xf0]  ;;  %v4404_v39 = vld [vmem:[%s4699_s29 + $0x38c] sm:$0xf] }
  0xcf   : > { %2107 = vmatpush.bf16.msrb.mxu3 %v3962_v8  ;;  %v3118_v8 = vor.u32 %v4316_v63, %v3115_v0  ;;  %v3374_v10 = vor.u32 %v4380_v4, %v3371_v5  ;;  %v4304_v46 = vld [vmem:[%s4699_s29 + $0x6c] sm:$0xf]  ;;  %v3470_v50 = vor.u32 %v4404_v39, %v3467_v41  ;;  %v3323_v52 = vld [vmem:[%s4699_s29 + $0x278] sm:$0xf0] }
  0xd0   : > { %2069 = vmatpush.bf16.msrb.mxu0 %v3562_v12  ;;  %v5130_v53 = vadd.f32 %v1852_v48, %v1840_v47  ;;  %v1815_v54 = vpop.f32.mrf.mxu0  ;;  %v4344_v12 = vld [vmem:[%s4699_s29 + $0x1ac] sm:$0xf]  ;;  %v3067_v47 = vld [vmem:[%s4699_s29 + $0x78] sm:$0xf0] }
  0xd1   : > { %2082 = vmatpush.bf16.msrb.mxu1 %v3690_v40  ;;  %v1828_v58 = vpop.f32.mrf.mxu1  ;;  %v5145_v40 = vld.sshfl [vmem:[#allocation1 + $0x30] sm:$0xff pattern:$0x73625140]  ;;  %v4336_v48 = vld [vmem:[%s4699_s29 + $0x16c] sm:$0xf] }
  0xd2   : > { %2095 = vmatpush.bf16.msrb.mxu2 %v3818_v14  ;;  %v3227_v14 = vld [vmem:[%s4699_s29 + $0x1b8] sm:$0xf0]  ;;  %v4368_v24 = vld [vmem:[%s4699_s29 + $0x26c] sm:$0xf] }
  0xd3   : > { %2108 = vmatpush.bf16.msrb.mxu3 %v3946_v19  ;;  %v4408_v19 = vld [vmem:[%s4699_s29 + $0x3ac] sm:$0xf]  ;;  %v3230_v25 = vor.u32 %v4344_v12, %v3227_v14  ;;  %v3451_v54 = vld [vmem:[%s4699_s29 + $0x378] sm:$0xf0]  ;;  %v3326_v56 = vor.u32 %v4368_v24, %v3323_v52 }
  0xd4   : > { %2070 = vmatpush.bf16.msrb.mxu0 %v3546_v30  ;;  %v3083_v30 = vld [vmem:[%s4699_s29 + $0x98] sm:$0xf0]  ;;  %v3486_v33 = vor.u32 %v4408_v19, %v3483_v20  ;;  %v4400_v26 = vld [vmem:[%s4699_s29 + $0x36c] sm:$0xf] }
  0xd5   : > { %2083 = vmatpush.bf16.msrb.mxu1 %v3674_v34  ;;  %v1841_v7 = vpop.f32.mrf.mxu2  ;;  %v3211_v34 = vld [vmem:[%s4699_s29 + $0x198] sm:$0xf0]  ;;  %v3086_v42 = vor.u32 %v4308_v29, %v3083_v30  ;;  %v4300_v57 = vld [vmem:[%s4699_s29 + $0x4c] sm:$0xf] }
  0xd6   : > { %2096 = vmatpush.bf16.msrb.mxu2 %v3802_v37  ;;  %v1854_v9 = vpop.f32.mrf.mxu3  ;;  %v4372_v37 = vld [vmem:[%s4699_s29 + $0x28c] sm:$0xf]  ;;  %v3214_v44 = vor.u32 %v4340_v32, %v3211_v34  ;;  %v3051_v58 = vld [vmem:[%s4699_s29 + $0x58] sm:$0xf0] }
  0xd7   : > { %2109 = vmatpush.bf16.msrb.mxu3 %v3930_v43  ;;  %v3342_v45 = vor.u32 %v4372_v37, %v3339_v38  ;;  %v4364_v63 = vld [vmem:[%s4699_s29 + $0x24c] sm:$0xf]  ;;  %v3307_v0 = vld [vmem:[%s4699_s29 + $0x258] sm:$0xf0]  ;;  %v3054_v4 = vor.u32 %v4300_v57, %v3051_v58 }
  0xd8   : > { %2071 = vmatpush.bf16.msrb.mxu0 %v3530_v51  ;;  %v1865_v43 = vpop.f32.mrf.mxu0  ;;  %v3195_v51 = vld [vmem:[%s4699_s29 + $0x178] sm:$0xf0]  ;;  %v3310_v31 = vor.u32 %v4364_v63, %v3307_v0  ;;  %v4296_v7 = vld [vmem:[%s4699_s29 + $0x2c] sm:$0xf] }
  0xd9   : > { %2084 = vmatpush.bf16.msrb.mxu1 %v3658_v27  ;;  %v1866_v49 = vadd.f32 %v1865_v43, %v5130_v53  ;;  %v1878_v23 = vpop.f32.mrf.mxu1  ;;  %v3198_v53 = vor.u32 %v4336_v48, %v3195_v51  ;;  %v3435_v3 = vld [vmem:[%s4699_s29 + $0x358] sm:$0xf0]  ;;  %v4328_v9 = vld [vmem:[%s4699_s29 + $0x12c] sm:$0xf] }
  0xda   : > { %2097 = vmatpush.bf16.msrb.mxu2 %v3786_v55  ;;  %v3070_v55 = vor.u32 %v4304_v46, %v3067_v47  ;;  %v3163_v36 = vld [vmem:[%s4699_s29 + $0x138] sm:$0xf0]  ;;  %v4360_v11 = vld [vmem:[%s4699_s29 + $0x22c] sm:$0xf] }
  0xdb   : > { %2110 = vmatpush.bf16.msrb.mxu3 %v3914_v59  ;;  %2072 = vmatmul.bf16.vlgmr.msrb.gmra.mxu0 %v5151_v17  ;;  %v5179_v27 = vadd.f32 %v1878_v23, %v1866_v49  ;;  %v4332_v59 = vld [vmem:[%s4699_s29 + $0x14c] sm:$0xf]  ;;  %v3291_v12 = vld [vmem:[%s4699_s29 + $0x238] sm:$0xf0]  ;;  %v3166_v20 = vor.u32 %v4328_v9, %v3163_v36 }
  0xdc   : > { %2116 = vmatpush.bf16.msra.mxu0 %v3134_v60  ;;  %2085 = vmatmul.bf16.vlgmr.msrb.gmra.mxu1 %v5159_v22  ;;  %v3419_v14 = vld [vmem:[%s4699_s29 + $0x338] sm:$0xf0]  ;;  %v4292_v16 = vld [vmem:[%s4699_s29 + $0xc] sm:$0xf] }
  0xdd   : > { %2129 = vmatpush.bf16.msra.mxu1 %v3262_v61  ;;  %2098 = vmatmul.bf16.vlgmr.msrb.gmra.mxu2 %v5145_v40  ;;  %v3454_v61 = vor.u32 %v4400_v26, %v3451_v54  ;;  %v3019_v19 = vld [vmem:[%s4699_s29 + $0x18] sm:$0xf0]  ;;  %v4356_v29 = vld [vmem:[%s4699_s29 + $0x20c] sm:$0xf] }
  0xde   : > { %2142 = vmatpush.bf16.msra.mxu2 %v3390_v62  ;;  %2111 = vmatmul.bf16.vlgmr.msrb.gmra.mxu3 %v5154_v18  ;;  %v3179_v62 = vld [vmem:[%s4699_s29 + $0x158] sm:$0xf0]  ;;  %v4388_v34 = vld [vmem:[%s4699_s29 + $0x30c] sm:$0xf]  ;;  %v3022_v43 = vor.u32 %v4292_v16, %v3019_v19 }
  0xdf   : > { %2155 = vmatpush.bf16.msra.mxu3 %v3518_v2  ;;  %v4396_v2 = vld [vmem:[%s4699_s29 + $0x34c] sm:$0xf]  ;;  %v3182_v6 = vor.u32 %v4332_v59, %v3179_v62  ;;  %v3403_v37 = vld [vmem:[%s4699_s29 + $0x318] sm:$0xf0] }
  0xe0   : > { %2117 = vmatpush.bf16.msra.mxu0 %v3118_v8  ;;  %v5184_v60 = vpop.f32.mrf.mxu2  ;;  %v1867_v5 = vpop.f32.mrf.mxu0  ;;  %v3035_v8 = vld [vmem:[%s4699_s29 + $0x38] sm:$0xf0]  ;;  %v4448_v39 = vld [vmem:[%s4699_s29 + $0x4ec] sm:$0xf] }
  0xe1   : > { %2130 = vmatpush.bf16.msra.mxu1 %v3246_v35  ;;  %v5189_v1 = vpop.f32.mrf.mxu3  ;;  %v1880_v35 = vpop.f32.mrf.mxu1  ;;  %v3038_v15 = vor.u32 %v4296_v7, %v3035_v8  ;;  %v3643_v41 = vld [vmem:[%s4699_s29 + $0x4f8] sm:$0xf0]  ;;  %v4544_v49 = vld [vmem:[%s4699_s29 + $0x7ec] sm:$0xf] }
  0xe2   : > { %2143 = vmatpush.bf16.msra.mxu2 %v3374_v10  ;;  %v3438_v10 = vor.u32 %v4396_v2, %v3435_v3  ;;  %v3899_v46 = vld [vmem:[%s4699_s29 + $0x6f8] sm:$0xf0]  ;;  %v3646_v51 = vor.u32 %v4448_v39, %v3643_v41  ;;  %v4444_v26 = vld [vmem:[%s4699_s29 + $0x4cc] sm:$0xf] }
  0xe3   : > { %2156 = vmatpush.bf16.msra.mxu3 %v3502_v13  ;;  %v4392_v13 = vld [vmem:[%s4699_s29 + $0x32c] sm:$0xf]  ;;  %v4027_v23 = vld [vmem:[%s4699_s29 + $0x7f8] sm:$0xf0] }
  0xe4   : > { %2118 = vmatpush.bf16.msra.mxu0 %v3102_v21  ;;  %v3294_v21 = vor.u32 %v4360_v11, %v3291_v12  ;;  %v3422_v32 = vor.u32 %v4392_v13, %v3419_v14  ;;  %v3627_v54 = vld [vmem:[%s4699_s29 + $0x4d8] sm:$0xf0]  ;;  %v4508_v57 = vld [vmem:[%s4699_s29 + $0x6cc] sm:$0xf] }
  0xe5   : > { %2131 = vmatpush.bf16.msra.mxu1 %v3230_v25  ;;  %v4324_v25 = vld [vmem:[%s4699_s29 + $0x10c] sm:$0xf]  ;;  %v3883_v58 = vld [vmem:[%s4699_s29 + $0x6d8] sm:$0xf0]  ;;  %v3630_v62 = vor.u32 %v4444_v26, %v3627_v54 }
  0xe6   : > { %2144 = vmatpush.bf16.msra.mxu2 %v3358_v28  ;;  %v3147_v28 = vld [vmem:[%s4699_s29 + $0x118] sm:$0xf0]  ;;  %v4540_v59 = vld [vmem:[%s4699_s29 + $0x7cc] sm:$0xf]  ;;  %v3886_v0 = vor.u32 %v4508_v57, %v3883_v58 }
  0xe7   : > { %2157 = vmatpush.bf16.msra.mxu3 %v3486_v33  ;;  %v3275_v33 = vld [vmem:[%s4699_s29 + $0x218] sm:$0xf0]  ;;  %v3150_v47 = vor.u32 %v4324_v25, %v3147_v28  ;;  %v4440_v2 = vld [vmem:[%s4699_s29 + $0x4ac] sm:$0xf] }
  0xe8   : > { %2119 = vmatpush.bf16.msra.mxu0 %v3086_v42  ;;  %v1893_v30 = vpop.f32.mrf.mxu2  ;;  %v4480_v42 = vld [vmem:[%s4699_s29 + $0x5ec] sm:$0xf]  ;;  %v3278_v48 = vor.u32 %v4356_v29, %v3275_v33  ;;  %v3611_v3 = vld [vmem:[%s4699_s29 + $0x4b8] sm:$0xf0] }
  0xe9   : > { %2132 = vmatpush.bf16.msra.mxu1 %v3214_v44  ;;  %v1906_v38 = vpop.f32.mrf.mxu3  ;;  %v3771_v44 = vld [vmem:[%s4699_s29 + $0x5f8] sm:$0xf0]  ;;  %v4504_v7 = vld [vmem:[%s4699_s29 + $0x6ac] sm:$0xf]  ;;  %v3614_v11 = vor.u32 %v4440_v2, %v3611_v3 }
  0xea   : > { %2145 = vmatpush.bf16.msra.mxu2 %v3342_v45  ;;  %v4512_v45 = vld [vmem:[%s4699_s29 + $0x6ec] sm:$0xf]  ;;  %v3774_v24 = vor.u32 %v4480_v42, %v3771_v44  ;;  %v3867_v8 = vld [vmem:[%s4699_s29 + $0x6b8] sm:$0xf0] }
  0xeb   : > { %2158 = vmatpush.bf16.msra.mxu3 %v3470_v50  ;;  %v3406_v50 = vor.u32 %v4388_v34, %v3403_v37  ;;  %v3902_v52 = vor.u32 %v4512_v45, %v3899_v46  ;;  %v4536_v9 = vld [vmem:[%s4699_s29 + $0x7ac] sm:$0xf]  ;;  %v3995_v35 = vld [vmem:[%s4699_s29 + $0x7b8] sm:$0xf0]  ;;  %v3870_v14 = vor.u32 %v4504_v7, %v3867_v8 }
  0xec   : > { %2120 = vmatpush.bf16.msra.mxu0 %v3070_v55  ;;  %v4476_v55 = vld [vmem:[%s4699_s29 + $0x5cc] sm:$0xf]  ;;  %v4626_v36 = vld.sshfl [vmem:[#allocation1 + $0x18] sm:$0xff pattern:$0x73625140] }
  0xed   : > { %2133 = vmatpush.bf16.msra.mxu1 %v3198_v53  ;;  %v4030_v53 = vor.u32 %v4544_v49, %v4027_v23  ;;  %v4627_v12 = vld.sshfl [vmem:[#allocation1 + $0x8] sm:$0xff pattern:$0x73625140]  ;;  %v3595_v16 = vld [vmem:[%s4699_s29 + $0x498] sm:$0xf0] }
  0xee   : > { %2146 = vmatpush.bf16.msra.mxu2 %v3326_v56  ;;  %v3755_v56 = vld [vmem:[%s4699_s29 + $0x5d8] sm:$0xf0]  ;;  %v4468_v19 = vld [vmem:[%s4699_s29 + $0x58c] sm:$0xf] }
  0xef   : > { %2159 = vmatpush.bf16.msra.mxu3 %v3454_v61  ;;  %v4011_v61 = vld [vmem:[%s4699_s29 + $0x7d8] sm:$0xf0]  ;;  %v3758_v63 = vor.u32 %v4476_v55, %v3755_v56  ;;  %v4500_v25 = vld [vmem:[%s4699_s29 + $0x68c] sm:$0xf] }
  0xf0   : > { %2121 = vmatpush.bf16.msra.mxu0 %v3054_v4  ;;  %v4472_v4 = vld [vmem:[%s4699_s29 + $0x5ac] sm:$0xf]  ;;  %v4014_v5 = vor.u32 %v4540_v59, %v4011_v61  ;;  %v3851_v28 = vld [vmem:[%s4699_s29 + $0x698] sm:$0xf0] }
  0xf1   : > { %2134 = vmatpush.bf16.msra.mxu1 %v3182_v6  ;;  %v4624_v6 = vld.sshfl [vmem:[#allocation1 + $0x10] sm:$0xff pattern:$0x73625140]  ;;  %v4532_v29 = vld [vmem:[%s4699_s29 + $0x78c] sm:$0xf]  ;;  %v3854_v37 = vor.u32 %v4500_v25, %v3851_v28 }
  0xf2   : > { %2147 = vmatpush.bf16.msra.mxu2 %v3310_v31  ;;  %v3739_v31 = vld [vmem:[%s4699_s29 + $0x5b8] sm:$0xf0]  ;;  %v4432_v38 = vld [vmem:[%s4699_s29 + $0x46c] sm:$0xf] }
  0xf3   : > { %2160 = vmatpush.bf16.msra.mxu3 %v3438_v10  ;;  %v4625_v10 = vld.sshfl [vmem:[#allocation1] sm:$0xff pattern:$0x73625140]  ;;  %v3742_v13 = vor.u32 %v4472_v4, %v3739_v31  ;;  %v3979_v30 = vld [vmem:[%s4699_s29 + $0x798] sm:$0xf0] }
  0xf4   : > { %2122 = vmatpush.bf16.msra.mxu0 %v3038_v15  ;;  %v4436_v15 = vld [vmem:[%s4699_s29 + $0x48c] sm:$0xf]  ;;  %v3579_v39 = vld [vmem:[%s4699_s29 + $0x478] sm:$0xf0] }
  0xf5   : > { %2135 = vmatpush.bf16.msra.mxu1 %v3166_v20  ;;  %v3998_v20 = vor.u32 %v4536_v9, %v3995_v35  ;;  %v4464_v41 = vld [vmem:[%s4699_s29 + $0x56c] sm:$0xf]  ;;  %v3707_v44 = vld [vmem:[%s4699_s29 + $0x578] sm:$0xf0]  ;;  %v3582_v49 = vor.u32 %v4432_v38, %v3579_v39 }
  0xf6   : > { %2148 = vmatpush.bf16.msra.mxu2 %v3294_v21  ;;  %v3723_v21 = vld [vmem:[%s4699_s29 + $0x598] sm:$0xf0]  ;;  %v4496_v45 = vld [vmem:[%s4699_s29 + $0x66c] sm:$0xf]  ;;  %v3710_v23 = vor.u32 %v4464_v41, %v3707_v44 }
  0xf7   : > { %2161 = vmatpush.bf16.msra.mxu3 %v3422_v32  ;;  %v3598_v32 = vor.u32 %v4436_v15, %v3595_v16  ;;  %v3726_v34 = vor.u32 %v4468_v19, %v3723_v21  ;;  %v3835_v46 = vld [vmem:[%s4699_s29 + $0x678] sm:$0xf0]  ;;  %v4524_v58 = vld [vmem:[%s4699_s29 + $0x74c] sm:$0xf] }
  0xf8   : > { %2123 = vmatpush.bf16.msra.mxu0 %v3022_v43  ;;  %v5241_v33 = vpop.f32.mrf.mxu0  ;;  %v3982_v43 = vor.u32 %v4532_v29, %v3979_v30  ;;  %v3691_v55 = vld [vmem:[%s4699_s29 + $0x558] sm:$0xf0]  ;;  %v4424_v2 = vld [vmem:[%s4699_s29 + $0x42c] sm:$0xf] }
  0xf9   : > { %2136 = vmatpush.bf16.msra.mxu1 %v3150_v47  ;;  %v5246_v42 = vpop.f32.mrf.mxu1  ;;  %v4528_v47 = vld [vmem:[%s4699_s29 + $0x76c] sm:$0xf]  ;;  %v3819_v56 = vld [vmem:[%s4699_s29 + $0x658] sm:$0xf0] }
  0xfa   : > { %2149 = vmatpush.bf16.msra.mxu2 %v3278_v48  ;;  %v3963_v48 = vld [vmem:[%s4699_s29 + $0x778] sm:$0xf0]  ;;  %v4456_v4 = vld [vmem:[%s4699_s29 + $0x52c] sm:$0xf]  ;;  %v1931_v38 = vadd.f32 %v5246_v42, %v5241_v33  ;;  %v1892_v33 = vadd.f32 %v5184_v60, %v5179_v27 }
  0xfb   : > { %2162 = vmatpush.bf16.msra.mxu3 %v3406_v50  ;;  %2124 = vmatmul.bf16.vlgmr.msra.gmra.mxu0 %v4625_v10  ;;  %v3838_v50 = vor.u32 %v4496_v45, %v3835_v46  ;;  %v3966_v54 = vor.u32 %v4528_v47, %v3963_v48  ;;  %v3947_v59 = vld [vmem:[%s4699_s29 + $0x758] sm:$0xf0]  ;;  %v4488_v7 = vld [vmem:[%s4699_s29 + $0x62c] sm:$0xf] }
  0xfc   : > { %2168 = vmatpush.bf16.msrb.mxu0 %v3646_v51  ;;  %2137 = vmatmul.bf16.vlgmr.msra.gmra.mxu1 %v4627_v12  ;;  %v4428_v51 = vld [vmem:[%s4699_s29 + $0x44c] sm:$0xf]  ;;  %v3547_v3 = vld [vmem:[%s4699_s29 + $0x438] sm:$0xf0] }
  0xfd   : > { %2181 = vmatpush.bf16.msrb.mxu1 %v3774_v24  ;;  %2150 = vmatmul.bf16.vlgmr.msra.gmra.mxu2 %v4624_v6  ;;  %v3563_v24 = vld [vmem:[%s4699_s29 + $0x458] sm:$0xf0]  ;;  %v3950_v6 = vor.u32 %v4524_v58, %v3947_v59  ;;  %v4520_v9 = vld [vmem:[%s4699_s29 + $0x72c] sm:$0xf]  ;;  %v3550_v10 = vor.u32 %v4424_v2, %v3547_v3 }
  0xfe   : > { %2194 = vmatpush.bf16.msrb.mxu2 %v3902_v52  ;;  %2163 = vmatmul.bf16.vlgmr.msra.gmra.mxu3 %v4626_v36  ;;  %v4460_v52 = vld [vmem:[%s4699_s29 + $0x54c] sm:$0xf]  ;;  %v3566_v61 = vor.u32 %v4428_v51, %v3563_v24  ;;  %v3675_v31 = vld [vmem:[%s4699_s29 + $0x538] sm:$0xf0] }
  0xff   : > { %2207 = vmatpush.bf16.msrb.mxu3 %v4030_v53  ;;  %v4492_v53 = vld [vmem:[%s4699_s29 + $0x64c] sm:$0xf]  ;;  %v3803_v8 = vld [vmem:[%s4699_s29 + $0x638] sm:$0xf0]  ;;  %v3678_v36 = vor.u32 %v4456_v4, %v3675_v31 }
 0x100   : > { %2169 = vmatpush.bf16.msrb.mxu0 %v3630_v62  ;;  %v1943_v26 = vpop.f32.mrf.mxu2  ;;  %v1919_v62 = vpop.f32.mrf.mxu0  ;;  %v3931_v35 = vld [vmem:[%s4699_s29 + $0x738] sm:$0xf0]  ;;  %v4420_v12 = vld [vmem:[%s4699_s29 + $0x40c] sm:$0xf] }
 0x101   : > { %2182 = vmatpush.bf16.msrb.mxu1 %v3758_v63  ;;  %v1956_v57 = vpop.f32.mrf.mxu3  ;;  %v3694_v63 = vor.u32 %v4460_v52, %v3691_v55  ;;  %v3934_v16 = vor.u32 %v4520_v9, %v3931_v35  ;;  %v3659_v19 = vld [vmem:[%s4699_s29 + $0x518] sm:$0xf0]  ;;  %v4516_v28 = vld [vmem:[%s4699_s29 + $0x70c] sm:$0xf]  ;;  %v1944_v39 = vadd.f32 %v1943_v26, %v1931_v38 }
 0x102   : > { %2195 = vmatpush.bf16.msrb.mxu2 %v3886_v0  ;;  %v3822_v0 = vor.u32 %v4492_v53, %v3819_v56  ;;  %v3787_v21 = vld [vmem:[%s4699_s29 + $0x618] sm:$0xf0] }
 0x103   : > { %2208 = vmatpush.bf16.msrb.mxu3 %v4014_v5  ;;  %v1932_v5 = vpop.f32.mrf.mxu1  ;;  %v3915_v29 = vld [vmem:[%s4699_s29 + $0x718] sm:$0xf0]  ;;  %v1957_v41 = vadd.f32 %v1956_v57, %v1944_v39  ;;  %v244_v39 = vld [vmem:[#allocation2 + $0x8] sm:$0xff] }
 0x104   : > { %2170 = vmatpush.bf16.msrb.mxu0 %v3614_v11  ;;  %v3806_v11 = vor.u32 %v4488_v7, %v3803_v8 }
 0x105   : > { %2183 = vmatpush.bf16.msrb.mxu1 %v3742_v13  ;;  %v3531_v13 = vld [vmem:[%s4699_s29 + $0x418] sm:$0xf0] }
 0x106   : > { %2196 = vmatpush.bf16.msrb.mxu2 %v3870_v14  ;;  %v4452_v14 = vld [vmem:[%s4699_s29 + $0x50c] sm:$0xf]  ;;  %v3534_v30 = vor.u32 %v4420_v12, %v3531_v13 }
 0x107   : > { %2209 = vmatpush.bf16.msrb.mxu3 %v3998_v20  ;;  %v4484_v20 = vld [vmem:[%s4699_s29 + $0x60c] sm:$0xf] }
 0x108   : > { %2171 = vmatpush.bf16.msrb.mxu0 %v3598_v32  ;;  %v1945_v15 = vpop.f32.mrf.mxu2  ;;  %v3662_v32 = vor.u32 %v4452_v14, %v3659_v19 }
 0x109   : > { %2184 = vmatpush.bf16.msrb.mxu1 %v3726_v34  ;;  %v1958_v25 = vpop.f32.mrf.mxu3  ;;  %v3790_v34 = vor.u32 %v4484_v20, %v3787_v21 }
 0x10a   : > { %2197 = vmatpush.bf16.msrb.mxu2 %v3854_v37  ;;  %v3918_v37 = vor.u32 %v4516_v28, %v3915_v29 }
 0x10b   : > { %2210 = vmatpush.bf16.msrb.mxu3 %v3982_v43 }
 0x10c   : > { %2172 = vmatpush.bf16.msrb.mxu0 %v3582_v49 }
 0x10d   : > { %2185 = vmatpush.bf16.msrb.mxu1 %v3710_v23 }
 0x10e   : > { %2198 = vmatpush.bf16.msrb.mxu2 %v3838_v50 }
 0x10f   : > { %2211 = vmatpush.bf16.msrb.mxu3 %v3966_v54 }
 0x110   : > { %2173 = vmatpush.bf16.msrb.mxu0 %v3566_v61 }
 0x111   : > { %2186 = vmatpush.bf16.msrb.mxu1 %v3694_v63 }
 0x112   : > { %2199 = vmatpush.bf16.msrb.mxu2 %v3822_v0 }
 0x113   : > { %2212 = vmatpush.bf16.msrb.mxu3 %v3950_v6 }
 0x114   : > { %2174 = vmatpush.bf16.msrb.mxu0 %v3550_v10 }
 0x115   : > { %2187 = vmatpush.bf16.msrb.mxu1 %v3678_v36 }
 0x116   : > { %2200 = vmatpush.bf16.msrb.mxu2 %v3806_v11 }
 0x117   : > { %2213 = vmatpush.bf16.msrb.mxu3 %v3934_v16 }
 0x118   : > { %2175 = vmatpush.bf16.msrb.mxu0 %v3534_v30  ;;  %v1969_v43 = vpop.f32.mrf.mxu0 }
 0x119   : > { %2188 = vmatpush.bf16.msrb.mxu1 %v3662_v32  ;;  %v1970_v44 = vadd.f32 %v1969_v43, %v1957_v41  ;;  %v1982_v45 = vpop.f32.mrf.mxu1 }
 0x11a   : > { %2201 = vmatpush.bf16.msrb.mxu2 %v3790_v34 }
 0x11b   : > { %2214 = vmatpush.bf16.msrb.mxu3 %v3918_v37  ;;  %2176 = vmatmul.bf16.vlgmr.msrb.gmra.mxu0 %v5151_v17  ;;  %v1983_v46 = vadd.f32 %v1982_v45, %v1970_v44 }
 0x11c   : > { %2189 = vmatmul.bf16.vlgmr.msrb.gmra.mxu1 %v5159_v22  ;;  %v1905_v22 = vadd.f32 %v5189_v1, %v1892_v33 }
 0x11d   : > { %2202 = vmatmul.bf16.vlgmr.msrb.gmra.mxu2 %v5145_v40  ;;  %v243_v40 = vld [vmem:[#allocation2] sm:$0xff] }
 0x11e   : > { %2215 = vmatmul.bf16.vlgmr.msrb.gmra.mxu3 %v5154_v18 }
 0x120   : > { %v1995_v47 = vpop.f32.mrf.mxu2  ;;  %v1971_v23 = vpop.f32.mrf.mxu0 }
 0x121   : > { %v1996_v42 = vadd.f32 %v1995_v47, %v1983_v46  ;;  %v2008_v48 = vpop.f32.mrf.mxu3  ;;  %v1984_v17 = vpop.f32.mrf.mxu1 }
 0x123   : > { %v2009_v49 = vadd.f32 %v2008_v48, %v1996_v42 }
 0x125   : > { %v2224_v50 = vrot.slane %v2009_v49, 4 }
 0x127   : > { %v2227_v18 = vsel %vm2226_vm0, %v1905_v22, %v2224_v50 }
 0x128   : > { %v2231_v51 = vadd.f32 %v2227_v18, %v243_v40  ;;  %v1997_v24 = vpop.f32.mrf.mxu2 }
 0x129   : > { %v2010_v52 = vpop.f32.mrf.mxu3 }
 0x12a   : > { %2233 = vst [vmem:[#allocation2] sm:$0xff] %v2231_v51 }
 0x138   : > { %v2021_v26 = vpop.f32.mrf.mxu0 }
 0x139   : > { %v2034_v54 = vpop.f32.mrf.mxu1 }
 0x13a   : > { %v2035_v55 = vadd.f32 %v2034_v54, %v2021_v26 }
 0x140   : > { %v2047_v27 = vpop.f32.mrf.mxu2  ;;  %v2023_v57 = vpop.f32.mrf.mxu0 }
 0x141   : > { %v2048_v60 = vadd.f32 %v2047_v27, %v2035_v55  ;;  %v2060_v53 = vpop.f32.mrf.mxu3  ;;  %v2036_v58 = vpop.f32.mrf.mxu1 }
 0x143   : > { %v2061_v56 = vadd.f32 %v2060_v53, %v2048_v60 }
 0x148   : > { %v2049_v59 = vpop.f32.mrf.mxu2 }
 0x149   : > { %v2062_v61 = vpop.f32.mrf.mxu3 }
 0x158   : > { %v2073_v1 = vpop.f32.mrf.mxu0 }
 0x159   : > { %v2074_v62 = vadd.f32 %v2073_v1, %v2061_v56  ;;  %v2086_v63 = vpop.f32.mrf.mxu1 }
 0x15b   : > { %v2087_v0 = vadd.f32 %v2086_v63, %v2074_v62 }
 0x160   : > { %v2099_v2 = vpop.f32.mrf.mxu2  ;;  %v2075_v4 = vpop.f32.mrf.mxu0 }
 0x161   : > { %v2112_v3 = vpop.f32.mrf.mxu3  ;;  %v2088_v5 = vpop.f32.mrf.mxu1  ;;  %v2100_v28 = vadd.f32 %v2099_v2, %v2087_v0 }
 0x163   : > { %v2113_v38 = vadd.f32 %v2112_v3, %v2100_v28 }
 0x168   : > { %v2101_v6 = vpop.f32.mrf.mxu2 }
 0x169   : > { %v2114_v31 = vpop.f32.mrf.mxu3 }
 0x178   : > { %v2125_v7 = vpop.f32.mrf.mxu0 }
 0x179   : > { %v2138_v8 = vpop.f32.mrf.mxu1 }
 0x17a   : > { %v2139_v13 = vadd.f32 %v2138_v8, %v2125_v7 }
 0x180   : > { %v2151_v9 = vpop.f32.mrf.mxu2  ;;  %v2127_v10 = vpop.f32.mrf.mxu0 }
 0x181   : > { %v2164_v35 = vpop.f32.mrf.mxu3  ;;  %v2140_v36 = vpop.f32.mrf.mxu1  ;;  %v2152_v14 = vadd.f32 %v2151_v9, %v2139_v13 }
 0x183   : > { %v2165_v15 = vadd.f32 %v2164_v35, %v2152_v14 }
 0x188   : > { %v2153_v11 = vpop.f32.mrf.mxu2 }
 0x189   : > { %v2166_v12 = vpop.f32.mrf.mxu3 }
 0x198   : > { %v2177_v16 = vpop.f32.mrf.mxu0 }
 0x199   : > { %v2190_v19 = vpop.f32.mrf.mxu1  ;;  %v2178_v20 = vadd.f32 %v2177_v16, %v2165_v15 }
 0x19b   : > { %v2191_v21 = vadd.f32 %v2190_v19, %v2178_v20 }
 0x1a0   : > { %v2203_v25 = vpop.f32.mrf.mxu2  ;;  %v2179_v32 = vpop.f32.mrf.mxu0 }
 0x1a1   : > { %v2204_v29 = vadd.f32 %v2203_v25, %v2191_v21  ;;  %v2216_v30 = vpop.f32.mrf.mxu3  ;;  %v2192_v34 = vpop.f32.mrf.mxu1 }
 0x1a3   : > { %v2217_v37 = vadd.f32 %v2216_v30, %v2204_v29 }
 0x1a5   : > { %v2225_v41 = vrot.slane %v2217_v37, 4 }
 0x1a6   : > { %2238 = sbr.rel (%p4031_p6) target bundleno = 742 (0x2e6), region = 48 }
 0x1a7   : > { %v2228_v43 = vsel %vm2226_vm0, %v2113_v38, %v2225_v41 }
 0x1a8   : > { %v2232_v44 = vadd.f32 %v2228_v43, %v244_v39  ;;  %v2205_v45 = vpop.f32.mrf.mxu2 }
 0x1a9   : > { %v2218_v46 = vpop.f32.mrf.mxu3 }
 0x1aa   : > { %2234 = vst [vmem:[#allocation2 + $0x8] sm:$0xff] %v2232_v44 }
 0x1ab   : > { %v4090_v47 = vld [vmem:[%s5775_s4 + $0x70] sm:$0xf]  ;;  %v4562_v33 = vld [vmem:[%s5775_s4 + $0x74] sm:$0xf0]  ;;  %v4082_v51 = vld [vmem:[%s5775_s4 + $0x60] sm:$0xf] }
 0x1ac   : > { %v4154_v42 = vld [vmem:[%s5775_s4 + $0xf0] sm:$0xf]  ;;  %v4091_v48 = vor.u32 %v4562_v33, %v4090_v47  ;;  %v4578_v49 = vld [vmem:[%s5775_s4 + $0xf4] sm:$0xf0]  ;;  %v4560_v52 = vld [vmem:[%s5775_s4 + $0x64] sm:$0xf0] }
 0x1ad   : > { %v4218_v23 = vld [vmem:[%s5775_s4 + $0x170] sm:$0xf]  ;;  %v4594_v17 = vld [vmem:[%s5775_s4 + $0x174] sm:$0xf0]  ;;  %v4155_v22 = vor.u32 %v4578_v49, %v4154_v42  ;;  %v4146_v26 = vld [vmem:[%s5775_s4 + $0xe0] sm:$0xf]  ;;  %v4083_v55 = vor.u32 %v4560_v52, %v4082_v51 }
 0x1ae   : > { %v4219_v40 = vor.u32 %v4594_v17, %v4218_v23  ;;  %v4282_v50 = vld [vmem:[%s5775_s4 + $0x1f0] sm:$0xf]  ;;  %v4610_v18 = vld [vmem:[%s5775_s4 + $0x1f4] sm:$0xf0]  ;;  %2839 = vmatpush.bf16.msra.mxu0 %v4091_v48  ;;  %v4576_v54 = vld [vmem:[%s5775_s4 + $0xe4] sm:$0xf0] }
 0x1af   : > { %v4283_v24 = vor.u32 %v4610_v18, %v4282_v50  ;;  %2852 = vmatpush.bf16.msra.mxu1 %v4155_v22  ;;  %v4147_v27 = vor.u32 %v4576_v54, %v4146_v26  ;;  %v4210_v60 = vld [vmem:[%s5775_s4 + $0x160] sm:$0xf]  ;;  %v4592_v53 = vld [vmem:[%s5775_s4 + $0x164] sm:$0xf0]  ;;  %v4074_v59 = vld [vmem:[%s5775_s4 + $0x50] sm:$0xf] }
 0x1b0   : > { %2865 = vmatpush.bf16.msra.mxu2 %v4219_v40  ;;  %v4274_v56 = vld [vmem:[%s5775_s4 + $0x1e0] sm:$0xf]  ;;  %v4211_v57 = vor.u32 %v4592_v53, %v4210_v60  ;;  %v4608_v58 = vld [vmem:[%s5775_s4 + $0x1e4] sm:$0xf0]  ;;  %v4558_v61 = vld [vmem:[%s5775_s4 + $0x54] sm:$0xf0] }
 0x1b1   : > { %2878 = vmatpush.bf16.msra.mxu3 %v4283_v24  ;;  %v4275_v1 = vor.u32 %v4608_v58, %v4274_v56  ;;  %v4138_v62 = vld [vmem:[%s5775_s4 + $0xd0] sm:$0xf]  ;;  %v4574_v63 = vld [vmem:[%s5775_s4 + $0xd4] sm:$0xf0]  ;;  %v4075_v2 = vor.u32 %v4558_v61, %v4074_v59  ;;  %v4066_v7 = vld [vmem:[%s5775_s4 + $0x40] sm:$0xf] }
 0x1b2   : > { %v4202_v0 = vld [vmem:[%s5775_s4 + $0x150] sm:$0xf]  ;;  %2840 = vmatpush.bf16.msra.mxu0 %v4083_v55  ;;  %v4590_v3 = vld [vmem:[%s5775_s4 + $0x154] sm:$0xf0]  ;;  %v4139_v6 = vor.u32 %v4574_v63, %v4138_v62  ;;  %v4556_v8 = vld [vmem:[%s5775_s4 + $0x44] sm:$0xf0] }
 0x1b3   : > { %v4266_v4 = vld [vmem:[%s5775_s4 + $0x1d0] sm:$0xf]  ;;  %v4606_v5 = vld [vmem:[%s5775_s4 + $0x1d4] sm:$0xf0]  ;;  %2853 = vmatpush.bf16.msra.mxu1 %v4147_v27  ;;  %v4203_v31 = vor.u32 %v4590_v3, %v4202_v0  ;;  %v4130_v9 = vld [vmem:[%s5775_s4 + $0xc0] sm:$0xf]  ;;  %v4067_v14 = vor.u32 %v4556_v8, %v4066_v7 }
 0x1b4   : > { %2866 = vmatpush.bf16.msra.mxu2 %v4211_v57  ;;  %v4267_v35 = vor.u32 %v4606_v5, %v4266_v4  ;;  %v4572_v10 = vld [vmem:[%s5775_s4 + $0xc4] sm:$0xf0]  ;;  %v4194_v36 = vld [vmem:[%s5775_s4 + $0x140] sm:$0xf]  ;;  %v4058_v19 = vld [vmem:[%s5775_s4 + $0x30] sm:$0xf] }
 0x1b5   : > { %2879 = vmatpush.bf16.msra.mxu3 %v4275_v1  ;;  %v4588_v11 = vld [vmem:[%s5775_s4 + $0x144] sm:$0xf0]  ;;  %v4258_v12 = vld [vmem:[%s5775_s4 + $0x1c0] sm:$0xf]  ;;  %v4131_v15 = vor.u32 %v4572_v10, %v4130_v9  ;;  %v4554_v20 = vld [vmem:[%s5775_s4 + $0x34] sm:$0xf0] }
 0x1b6   : > { %v4604_v13 = vld [vmem:[%s5775_s4 + $0x1c4] sm:$0xf0]  ;;  %2841 = vmatpush.bf16.msra.mxu0 %v4075_v2  ;;  %v4195_v16 = vor.u32 %v4588_v11, %v4194_v36  ;;  %v4122_v21 = vld [vmem:[%s5775_s4 + $0xb0] sm:$0xf]  ;;  %v4570_v28 = vld [vmem:[%s5775_s4 + $0xb4] sm:$0xf0]  ;;  %v4059_v37 = vor.u32 %v4554_v20, %v4058_v19 }
 0x1b7   : > { %2854 = vmatpush.bf16.msra.mxu1 %v4139_v6  ;;  %v4259_v25 = vor.u32 %v4604_v13, %v4258_v12  ;;  %v4186_v29 = vld [vmem:[%s5775_s4 + $0x130] sm:$0xf]  ;;  %v4586_v30 = vld [vmem:[%s5775_s4 + $0x134] sm:$0xf0]  ;;  %v4123_v38 = vor.u32 %v4570_v28, %v4122_v21  ;;  %v4050_v41 = vld [vmem:[%s5775_s4 + $0x20] sm:$0xf] }
 0x1b8   : > { %2867 = vmatpush.bf16.msra.mxu2 %v4203_v31  ;;  %v4250_v32 = vld [vmem:[%s5775_s4 + $0x1b0] sm:$0xf]  ;;  %v4602_v34 = vld [vmem:[%s5775_s4 + $0x1b4] sm:$0xf0]  ;;  %v4187_v39 = vor.u32 %v4586_v30, %v4186_v29  ;;  %v4552_v43 = vld [vmem:[%s5775_s4 + $0x24] sm:$0xf0] }
 0x1b9   : > { %2880 = vmatpush.bf16.msra.mxu3 %v4267_v35  ;;  %v4114_v44 = vld [vmem:[%s5775_s4 + $0xa0] sm:$0xf]  ;;  %v4251_v45 = vor.u32 %v4602_v34, %v4250_v32  ;;  %v4568_v46 = vld [vmem:[%s5775_s4 + $0xa4] sm:$0xf0]  ;;  %v4051_v49 = vor.u32 %v4552_v43, %v4050_v41  ;;  %v4042_v22 = vld [vmem:[%s5775_s4 + $0x10] sm:$0xf] }
 0x1ba   : > { %2842 = vmatpush.bf16.msra.mxu0 %v4067_v14  ;;  %v4178_v47 = vld [vmem:[%s5775_s4 + $0x120] sm:$0xf]  ;;  %v4584_v33 = vld [vmem:[%s5775_s4 + $0x124] sm:$0xf0]  ;;  %v4115_v23 = vor.u32 %v4568_v46, %v4114_v44  ;;  %v4550_v40 = vld [vmem:[%s5775_s4 + $0x14] sm:$0xf0] }
 0x1bb   : > { %2855 = vmatpush.bf16.msra.mxu1 %v4131_v15  ;;  %v4242_v42 = vld [vmem:[%s5775_s4 + $0x1a0] sm:$0xf]  ;;  %v4600_v48 = vld [vmem:[%s5775_s4 + $0x1a4] sm:$0xf0]  ;;  %v4179_v17 = vor.u32 %v4584_v33, %v4178_v47  ;;  %v4106_v50 = vld [vmem:[%s5775_s4 + $0x90] sm:$0xf]  ;;  %v4043_v55 = vor.u32 %v4550_v40, %v4042_v22 }
 0x1bc   : > { %2868 = vmatpush.bf16.msra.mxu2 %v4195_v16  ;;  %v4243_v18 = vor.u32 %v4600_v48, %v4242_v42  ;;  %v4566_v51 = vld [vmem:[%s5775_s4 + $0x94] sm:$0xf0]  ;;  %v4170_v24 = vld [vmem:[%s5775_s4 + $0x110] sm:$0xf]  ;;  %v4034_v27 = vld [vmem:[%s5775_s4] sm:$0xf] }
 0x1bd   : > { %2881 = vmatpush.bf16.msra.mxu3 %v4259_v25  ;;  %v4582_v52 = vld [vmem:[%s5775_s4 + $0x114] sm:$0xf0]  ;;  %v4234_v26 = vld [vmem:[%s5775_s4 + $0x190] sm:$0xf]  ;;  %v4548_v60 = vld [vmem:[%s5775_s4 + $0x4] sm:$0xf0]  ;;  %v4107_v53 = vor.u32 %v4566_v51, %v4106_v50 }
 0x1be   : > { %2843 = vmatpush.bf16.msra.mxu0 %v4059_v37  ;;  %v4598_v54 = vld [vmem:[%s5775_s4 + $0x194] sm:$0xf0]  ;;  %v4171_v56 = vor.u32 %v4582_v52, %v4170_v24  ;;  %v4098_v57 = vld [vmem:[%s5775_s4 + $0x80] sm:$0xf]  ;;  %v4564_v58 = vld [vmem:[%s5775_s4 + $0x84] sm:$0xf0]  ;;  %v4035_v4 = vor.u32 %v4548_v60, %v4034_v27 }
 0x1bf   : > { %2856 = vmatpush.bf16.msra.mxu1 %v4123_v38  ;;  %v4162_v59 = vld [vmem:[%s5775_s4 + $0x100] sm:$0xf]  ;;  %v4235_v61 = vor.u32 %v4598_v54, %v4234_v26  ;;  %v4580_v1 = vld [vmem:[%s5775_s4 + $0x104] sm:$0xf0]  ;;  %v4561_v0 = vld [vmem:[%s5775_s4 + $0x74] sm:$0xf]  ;;  %v4099_v7 = vor.u32 %v4564_v58, %v4098_v57 }
 0x1c0   : > { %2869 = vmatpush.bf16.msra.mxu2 %v4187_v39  ;;  %v4226_v62 = vld [vmem:[%s5775_s4 + $0x180] sm:$0xf]  ;;  %v4596_v63 = vld [vmem:[%s5775_s4 + $0x184] sm:$0xf0]  ;;  %v4092_v2 = vld [vmem:[%s5775_s4 + $0x78] sm:$0xf0]  ;;  %v4163_v8 = vor.u32 %v4580_v1, %v4162_v59 }
 0x1c1   : > { %2882 = vmatpush.bf16.msra.mxu3 %v4251_v45  ;;  %v4577_v3 = vld [vmem:[%s5775_s4 + $0xf4] sm:$0xf]  ;;  %v4156_v5 = vld [vmem:[%s5775_s4 + $0xf8] sm:$0xf0]  ;;  %v4227_v10 = vor.u32 %v4596_v63, %v4226_v62  ;;  %v4095_v36 = vor.u32 %v4561_v0, %v4092_v2  ;;  %v4559_v11 = vld [vmem:[%s5775_s4 + $0x64] sm:$0xf] }
 0x1c2   : > { %2844 = vmatpush.bf16.msra.mxu0 %v4051_v49  ;;  %v4593_v6 = vld [vmem:[%s5775_s4 + $0x174] sm:$0xf]  ;;  %v4220_v31 = vld [vmem:[%s5775_s4 + $0x178] sm:$0xf0]  ;;  %v4159_v12 = vor.u32 %v4577_v3, %v4156_v5  ;;  %v4084_v14 = vld [vmem:[%s5775_s4 + $0x68] sm:$0xf0] }
 0x1c3   : > { %2857 = vmatpush.bf16.msra.mxu1 %v4115_v23  ;;  %v4609_v9 = vld [vmem:[%s5775_s4 + $0x1f4] sm:$0xf]  ;;  %v4284_v35 = vld [vmem:[%s5775_s4 + $0x1f8] sm:$0xf0]  ;;  %v4223_v13 = vor.u32 %v4593_v6, %v4220_v31  ;;  %v4575_v15 = vld [vmem:[%s5775_s4 + $0xe4] sm:$0xf]  ;;  %v4087_v32 = vor.u32 %v4559_v11, %v4084_v14 }
 0x1c4   : > { %2870 = vmatpush.bf16.msra.mxu2 %v4179_v17  ;;  %v4148_v16 = vld [vmem:[%s5775_s4 + $0xe8] sm:$0xf0]  ;;  %v4287_v19 = vor.u32 %v4609_v9, %v4284_v35  ;;  %v4591_v20 = vld [vmem:[%s5775_s4 + $0x164] sm:$0xf]  ;;  %v5531_v30 = vld [vmem:[#allocation2 + $0x8] sm:$0xff]  ;;  %vm2397_vm3 = vcmask 1040384  }
 0x1c5   : > { %2883 = vmatpush.bf16.msra.mxu3 %v4243_v18  ;;  %v4212_v21 = vld [vmem:[%s5775_s4 + $0x168] sm:$0xf0]  ;;  %v4607_v25 = vld [vmem:[%s5775_s4 + $0x1e4] sm:$0xf]  ;;  %v4557_v34 = vld [vmem:[%s5775_s4 + $0x54] sm:$0xf]  ;;  %v4151_v38 = vor.u32 %v4575_v15, %v4148_v16 }
 0x1c6   : > { %2845 = vmatpush.bf16.msra.mxu0 %v4043_v55  ;;  %v4276_v28 = vld [vmem:[%s5775_s4 + $0x1e8] sm:$0xf0]  ;;  %v4076_v37 = vld [vmem:[%s5775_s4 + $0x58] sm:$0xf0]  ;;  %v4215_v39 = vor.u32 %v4591_v20, %v4212_v21  ;;  %v4573_v41 = vld [vmem:[%s5775_s4 + $0xd4] sm:$0xf] }
 0x1c7   : > { %2858 = vmatpush.bf16.msra.mxu1 %v4107_v53  ;;  %v5529_v29 = vld [vmem:[#allocation2] sm:$0xff]  ;;  %v4140_v43 = vld [vmem:[%s5775_s4 + $0xd8] sm:$0xf0]  ;;  %2245 = vst [vmem:[#allocation1 + $0x10] ss:$2 sm:$0xff] %v5531_v30  ;;  %v4279_v44 = vor.u32 %v4607_v25, %v4276_v28  ;;  %v4079_v49 = vor.u32 %v4557_v34, %v4076_v37  ;;  %vm2399_vm12 = vcmask 1042434  }
 0x1c8   : > { %2871 = vmatpush.bf16.msra.mxu2 %v4171_v56  ;;  %2243 = vst [vmem:[#allocation1] ss:$2 sm:$0xff] %v5529_v29  ;;  %v4589_v45 = vld [vmem:[%s5775_s4 + $0x154] sm:$0xf]  ;;  %v4204_v46 = vld [vmem:[%s5775_s4 + $0x158] sm:$0xf0]  ;;  %v4143_v40 = vor.u32 %v4573_v41, %v4140_v43 }
 0x1c9   : > { %2884 = vmatpush.bf16.msra.mxu3 %v4235_v61  ;;  %v4605_v47 = vld [vmem:[%s5775_s4 + $0x1d4] sm:$0xf]  ;;  %v4268_v33 = vld [vmem:[%s5775_s4 + $0x1d8] sm:$0xf0]  ;;  %v4555_v42 = vld [vmem:[%s5775_s4 + $0x44] sm:$0xf]  ;;  %v4207_v50 = vor.u32 %v4589_v45, %v4204_v46 }
 0x1ca   : > { %2846 = vmatpush.bf16.msra.mxu0 %v4035_v4  ;;  %v4068_v48 = vld [vmem:[%s5775_s4 + $0x48] sm:$0xf0]  ;;  %v4571_v23 = vld [vmem:[%s5775_s4 + $0xc4] sm:$0xf]  ;;  %v4271_v52 = vor.u32 %v4605_v47, %v4268_v33  ;;  %vm2401_vm13 = vcmask 1041408  }
 0x1cb   : > { %2859 = vmatpush.bf16.msra.mxu1 %v4099_v7  ;;  %v4132_v17 = vld [vmem:[%s5775_s4 + $0xc8] sm:$0xf0]  ;;  %v4587_v22 = vld [vmem:[%s5775_s4 + $0x144] sm:$0xf]  ;;  %v4071_v55 = vor.u32 %v4555_v42, %v4068_v48 }
 0x1cc   : > { %2872 = vmatpush.bf16.msra.mxu2 %v4163_v8  ;;  %v4196_v18 = vld [vmem:[%s5775_s4 + $0x148] sm:$0xf0]  ;;  %v4603_v51 = vld [vmem:[%s5775_s4 + $0x1c4] sm:$0xf]  ;;  %v4135_v27 = vor.u32 %v4571_v23, %v4132_v17 }
 0x1cd   : > { %2885 = vmatpush.bf16.msra.mxu3 %v4227_v10  ;;  %v4260_v24 = vld [vmem:[%s5775_s4 + $0x1c8] sm:$0xf0]  ;;  %v4199_v60 = vor.u32 %v4587_v22, %v4196_v18 }
 0x1ce   : > { %2891 = vmatpush.bf16.msrb.mxu0 %v4095_v36  ;;  %v4263_v53 = vor.u32 %v4603_v51, %v4260_v24  ;;  %v2248_v56 = vld.sshfl [vmem:[#allocation1 + $0x10] sm:$0xff pattern:$0x75316420]  ;;  %v2249_v57 = vld.sshfl [vmem:[#allocation1 + $0x18] sm:$0xff pattern:$0x75316420] }
 0x1cf   : > { %2904 = vmatpush.bf16.msrb.mxu1 %v4159_v12  ;;  %v2246_v26 = vld.sshfl [vmem:[#allocation1] sm:$0xff pattern:$0x75316420]  ;;  %v2247_v54 = vld.sshfl [vmem:[#allocation1 + $0x8] sm:$0xff pattern:$0x75316420] }
 0x1d0   : > { %2917 = vmatpush.bf16.msrb.mxu2 %v4223_v13  ;;  %v2254_v58 = vsel %vm2226_vm0, %v2246_v26, 0.0  ;;  %v2261_v59 = vsel %vm2226_vm0, %v2247_v54, 0.0  ;;  %v2268_v61 = vsel %vm2226_vm0, %v2248_v56, 0.0  ;;  %v2275_v1 = vsel %vm2226_vm0, %v2249_v57, 0.0 }
 0x1d1   : > { %2930 = vmatpush.bf16.msrb.mxu3 %v4287_v19  ;;  %v2255_v62 = vrot.slane %v2254_v58, 4  ;;  %v2262_v63 = vrot.slane %v2261_v59, 4  ;;  %v2269_v0 = vrot.slane %v2268_v61, 4  ;;  %v2276_v2 = vrot.slane %v2275_v1, 4 }
 0x1d2   : > { %2892 = vmatpush.bf16.msrb.mxu0 %v4087_v32 }
 0x1d3   : > { %2905 = vmatpush.bf16.msrb.mxu1 %v4151_v38  ;;  %v2256_v3 = vadd.f32 %v2255_v62, %v2254_v58  ;;  %v2263_v4 = vadd.f32 %v2262_v63, %v2261_v59  ;;  %v2270_v5 = vadd.f32 %v2269_v0, %v2268_v61  ;;  %v2277_v6 = vadd.f32 %v2276_v2, %v2275_v1 }
 0x1d4   : > { %2918 = vmatpush.bf16.msrb.mxu2 %v4215_v39 }
 0x1d5   : > { %2931 = vmatpush.bf16.msrb.mxu3 %v4279_v44  ;;  %v2257_v31 = vrot.slane %v2256_v3, 2  ;;  %v2264_v7 = vrot.slane %v2263_v4, 2  ;;  %v2271_v8 = vrot.slane %v2270_v5, 2  ;;  %v2278_v9 = vrot.slane %v2277_v6, 2 }
 0x1d6   : > { %2893 = vmatpush.bf16.msrb.mxu0 %v4079_v49 }
 0x1d7   : > { %2906 = vmatpush.bf16.msrb.mxu1 %v4143_v40  ;;  %v2258_v35 = vadd.f32 %v2257_v31, %v2256_v3  ;;  %v2265_v10 = vadd.f32 %v2264_v7, %v2263_v4  ;;  %v2272_v36 = vadd.f32 %v2271_v8, %v2270_v5  ;;  %v2279_v11 = vadd.f32 %v2278_v9, %v2277_v6 }
 0x1d8   : > { %2919 = vmatpush.bf16.msrb.mxu2 %v4207_v50 }
 0x1d9   : > { %2932 = vmatpush.bf16.msrb.mxu3 %v4271_v52  ;;  %v2259_v12 = vrot.slane %v2258_v35, 1  ;;  %v2266_v13 = vrot.slane %v2265_v10, 1  ;;  %v2273_v14 = vrot.slane %v2272_v36, 1  ;;  %v2280_v15 = vrot.slane %v2279_v11, 1 }
 0x1da   : > { %2894 = vmatpush.bf16.msrb.mxu0 %v4071_v55 }
 0x1db   : > { %2907 = vmatpush.bf16.msrb.mxu1 %v4135_v27  ;;  %v2260_v16 = vadd.f32 %v2259_v12, %v2258_v35  ;;  %v2267_v19 = vadd.f32 %v2266_v13, %v2265_v10  ;;  %v2274_v20 = vadd.f32 %v2273_v14, %v2272_v36  ;;  %v2281_v21 = vadd.f32 %v2280_v15, %v2279_v11  ;;  %v5608_v10 = vld [vmem:[%s5774_s3] sm:$0xf] }
 0x1dc   : > { %2920 = vmatpush.bf16.msrb.mxu2 %v4199_v60 }
 0x1dd   : > { %2933 = vmatpush.bf16.msrb.mxu3 %v4263_v53  ;;  %v2282_v25 = vmul.f32 0.25, %v2260_v16  ;;  %v2283_v28 = vmul.f32 0.25, %v2267_v19  ;;  %v2284_v32 = vmul.f32 0.25, %v2274_v20  ;;  %v2285_v34 = vmul.f32 0.25, %v2281_v21 }
 0x1de   : > { %v2421_v19 = vperm.slane %v5608_v10, 1 }
 0x1df   : > { %v2290_v37 = vrot.slane %v2283_v28, 4  ;;  %v2291_v38 = vrot.slane %v2285_v34, 4 }
 0x1e1   : > { %v2292_v39 = vsel %vm2226_vm0, %v2282_v25, %v2290_v37  ;;  %v2293_v41 = vsel %vm2226_vm0, %v2284_v32, %v2291_v38  ;;  %v4597_v38 = vld [vmem:[%s5775_s4 + $0x194] sm:$0xf] }
 0x1e2   : > { %v5590_v43 = vsub.f32 %v5529_v29, %v2292_v39  ;;  %v5593_v44 = vsub.f32 %v5531_v30, %v2293_v41 }
 0x1e4   : > { %v2298_v45 = vmul.f32 %v5590_v43, %v5590_v43  ;;  %v2299_v46 = vmul.f32 %v5593_v44, %v5593_v44 }
 0x1e6   : > { %2302 = vst [vmem:[#allocation1] ss:$2 sm:$0xff] %v2298_v45  ;;  %v4236_v45 = vld [vmem:[%s5775_s4 + $0x198] sm:$0xf0] }
 0x1e7   : > { %2304 = vst [vmem:[#allocation1 + $0x10] ss:$2 sm:$0xff] %v2299_v46 }
 0x1ed   : > { %v2305_v47 = vld.sshfl [vmem:[#allocation1] sm:$0xff pattern:$0x75316420]  ;;  %v2306_v33 = vld.sshfl [vmem:[#allocation1 + $0x8] sm:$0xff pattern:$0x75316420] }
 0x1ee   : > { %v2307_v42 = vld.sshfl [vmem:[#allocation1 + $0x10] sm:$0xff pattern:$0x75316420]  ;;  %v2308_v48 = vld.sshfl [vmem:[#allocation1 + $0x18] sm:$0xff pattern:$0x75316420] }
 0x1ef   : > { %v2313_v49 = vsel %vm2226_vm0, %v2305_v47, 0.0  ;;  %v2320_v29 = vsel %vm2226_vm0, %v2306_v33, 0.0  ;;  %v2327_v23 = vsel %vm2226_vm0, %v2307_v42, 0.0  ;;  %v2334_v30 = vsel %vm2226_vm0, %v2308_v48, 0.0 }
 0x1f0   : > { %v2314_v17 = vrot.slane %v2313_v49, 4  ;;  %v2321_v22 = vrot.slane %v2320_v29, 4  ;;  %v2328_v40 = vrot.slane %v2327_v23, 4  ;;  %v2335_v50 = vrot.slane %v2334_v30, 4 }
 0x1f1   : > { %v2420_v48 = vperm.slane %v5608_v10, 0 }
 0x1f2   : > { %v2315_v18 = vadd.f32 %v2314_v17, %v2313_v49  ;;  %v2322_v51 = vadd.f32 %v2321_v22, %v2320_v29  ;;  %v2329_v24 = vadd.f32 %v2328_v40, %v2327_v23  ;;  %v2336_v52 = vadd.f32 %v2335_v50, %v2334_v30  ;;  %v4553_v22 = vld [vmem:[%s5775_s4 + $0x34] sm:$0xf]  ;;  %v4060_v40 = vld [vmem:[%s5775_s4 + $0x38] sm:$0xf0] }
 0x1f3   : > { %v2423_v49 = vperm.slane %v5608_v10, 3  ;;  %v5639_v17 = vrot.slane %v2421_v19, 4  ;;  %v4044_v19 = vld [vmem:[%s5775_s4 + $0x18] sm:$0xf0] }
 0x1f4   : > { %v2316_v26 = vrot.slane %v2315_v18, 2  ;;  %v2323_v54 = vrot.slane %v2322_v51, 2  ;;  %v2330_v55 = vrot.slane %v2329_v24, 2  ;;  %v2337_v27 = vrot.slane %v2336_v52, 2 }
 0x1f6   : > { %v2317_v60 = vadd.f32 %v2316_v26, %v2315_v18  ;;  %v2324_v53 = vadd.f32 %v2323_v54, %v2322_v51  ;;  %v2331_v56 = vadd.f32 %v2330_v55, %v2329_v24  ;;  %v2338_v57 = vadd.f32 %v2337_v27, %v2336_v52  ;;  %v4569_v51 = vld [vmem:[%s5775_s4 + $0xb4] sm:$0xf]  ;;  %v4124_v24 = vld [vmem:[%s5775_s4 + $0xb8] sm:$0xf0] }
 0x1f7   : > { %v4063_v18 = vor.u32 %v4553_v22, %v4060_v40  ;;  %v4585_v52 = vld [vmem:[%s5775_s4 + $0x134] sm:$0xf]  ;;  %v4127_v27 = vor.u32 %v4569_v51, %v4124_v24  ;;  %v4595_v24 = vld [vmem:[%s5775_s4 + $0x184] sm:$0xf] }
 0x1f8   : > { %v2318_v58 = vrot.slane %v2317_v60, 1  ;;  %v2325_v59 = vrot.slane %v2324_v53, 1  ;;  %v2332_v61 = vrot.slane %v2331_v56, 1  ;;  %v2339_v1 = vrot.slane %v2338_v57, 1 }
 0x1f9   : > { %2895 = vmatpush.bf16.msrb.mxu0 %v4063_v18  ;;  %2908 = vmatpush.bf16.msrb.mxu1 %v4127_v27  ;;  %v4164_v18 = vld [vmem:[%s5775_s4 + $0x108] sm:$0xf0] }
 0x1fa   : > { %v2319_v62 = vadd.f32 %v2318_v58, %v2317_v60  ;;  %v2326_v63 = vadd.f32 %v2325_v59, %v2324_v53  ;;  %v2333_v0 = vadd.f32 %v2332_v61, %v2331_v56  ;;  %v2340_v2 = vadd.f32 %v2339_v1, %v2338_v57  ;;  %v4188_v60 = vld [vmem:[%s5775_s4 + $0x138] sm:$0xf0]  ;;  %v4601_v53 = vld [vmem:[%s5775_s4 + $0x1b4] sm:$0xf]  ;;  %v4551_v1 = vld [vmem:[%s5775_s4 + $0x24] sm:$0xf] }
 0x1fb   : > { %v4252_v56 = vld [vmem:[%s5775_s4 + $0x1b8] sm:$0xf0]  ;;  %v4191_v59 = vor.u32 %v4585_v52, %v4188_v60  ;;  %v4228_v52 = vld [vmem:[%s5775_s4 + $0x188] sm:$0xf0] }
 0x1fc   : > { %v2341_v3 = vmul.f32 0.25, %v2319_v62  ;;  %v2342_v4 = vmul.f32 0.25, %v2326_v63  ;;  %v2343_v5 = vmul.f32 0.25, %v2333_v0  ;;  %v2344_v6 = vmul.f32 0.25, %v2340_v2  ;;  %v4052_v62 = vld [vmem:[%s5775_s4 + $0x28] sm:$0xf0] }
 0x1fd   : > { %v4255_v61 = vor.u32 %v4601_v53, %v4252_v56  ;;  %v2345_v63 = vld [vmem:[%s5773_s2] sm:$0xf]  ;;  %2921 = vmatpush.bf16.msrb.mxu2 %v4191_v59  ;;  %v4231_v27 = vor.u32 %v4595_v24, %v4228_v52  ;;  %v2426_v53 = vsel %vm2226_vm0, %v2420_v48, %v5639_v17 }
 0x1fe   : > { %v2346_v31 = vadd.f32 1e-05, %v2341_v3  ;;  %v2347_v7 = vadd.f32 1e-05, %v2342_v4  ;;  %v2348_v8 = vadd.f32 1e-05, %v2343_v5  ;;  %v4055_v4 = vor.u32 %v4551_v1, %v4052_v62 }
 0x1ff   : > { %v2349_v9 = vadd.f32 1e-05, %v2344_v6  ;;  %v2422_v3 = vperm.slane %v5608_v10, 2  ;;  %v4567_v5 = vld [vmem:[%s5775_s4 + $0xa4] sm:$0xf]  ;;  %2934 = vmatpush.bf16.msrb.mxu3 %v4255_v61 }
 0x200   : > { %4628 = vrsqrt.f32 %v2346_v31  ;;  %vm2356_vm1 = vweird.f32 %v2346_v31  ;;  %vm2366_vm4 = vweird.f32 %v2347_v7  ;;  %vm2376_vm6 = vweird.f32 %v2348_v8  ;;  %v4116_v6 = vld [vmem:[%s5775_s4 + $0xa8] sm:$0xf0]  ;;  %2896 = vmatpush.bf16.msrb.mxu0 %v4055_v4 }
 0x201   : > { %4630 = vrsqrt.f32 %v2347_v7  ;;  %vm2386_vm9 = vweird.f32 %v2349_v9 }
 0x202   : > { %4632 = vrsqrt.f32 %v2348_v8 }
 0x203   : > { %4634 = vrsqrt.f32 %v2349_v9 }
 0x206   : > { %v5603_v35 = vpop.eup %4628 }
 0x207   : > { %v4631_v36 = vpop.eup %4630  ;;  %v2351_v11 = vmul.f32 %v5603_v35, %v2346_v31  ;;  %vm2357_vm2 = vweird.f32 %v5603_v35 }
 0x208   : > { %v4633_v12 = vpop.eup %4632  ;;  %v2361_v13 = vmul.f32 %v4631_v36, %v2347_v7  ;;  %vm2367_vm5 = vweird.f32 %v4631_v36  ;;  %vm5618_vm8 = vmor %vm2356_vm1, %vm2357_vm2 }
 0x209   : > { %v5611_v14 = vpop.eup %4634  ;;  %v2352_v15 = vmul.f32 %v5603_v35, %v2351_v11  ;;  %v2371_v16 = vmul.f32 %v4633_v12, %v2348_v8  ;;  %vm2377_vm7 = vweird.f32 %v4633_v12  ;;  %vm5623_vm11 = vmor %vm2366_vm4, %vm2367_vm5  ;;  %v2425_v8 = vrot.slane %v2423_v49, 4  ;;  %v4563_v49 = vld [vmem:[%s5775_s4 + $0x84] sm:$0xf] }
 0x20a   : > { %v2362_v20 = vmul.f32 %v4631_v36, %v2361_v13  ;;  %v2381_v21 = vmul.f32 %v5611_v14, %v2349_v9  ;;  %vm2387_vm10 = vweird.f32 %v5611_v14  ;;  %vm5629_vm14 = vmor %vm2376_vm6, %vm2377_vm7  ;;  %v4119_v9 = vor.u32 %v4567_v5, %v4116_v6  ;;  %v4244_v13 = vld [vmem:[%s5775_s4 + $0x1a8] sm:$0xf0] }
 0x20b   : > { %v2353_v25 = vmul.f32 0.5, %v2352_v15  ;;  %v2372_v28 = vmul.f32 %v4633_v12, %v2371_v16  ;;  %vm5635_vm15 = vmor %vm2386_vm9, %vm2387_vm10 }
 0x20c   : > { %v2363_v32 = vmul.f32 0.5, %v2362_v20  ;;  %v2382_v34 = vmul.f32 %v5611_v14, %v2381_v21  ;;  %v4565_v20 = vld [vmem:[%s5775_s4 + $0x94] sm:$0xf]  ;;  %v4108_v21 = vld [vmem:[%s5775_s4 + $0x98] sm:$0xf0]  ;;  %2909 = vmatpush.bf16.msrb.mxu1 %v4119_v9 }
 0x20d   : > { %v2354_v37 = vsub.f32 1.5, %v2353_v25  ;;  %v2373_v39 = vmul.f32 0.5, %v2372_v28 }
 0x20e   : > { %v2364_v41 = vsub.f32 1.5, %v2363_v32  ;;  %v2383_v46 = vmul.f32 0.5, %v2382_v34  ;;  %v4111_v32 = vor.u32 %v4565_v20, %v4108_v21  ;;  %v4581_v34 = vld [vmem:[%s5775_s4 + $0x114] sm:$0xf] }
 0x20f   : > { %v2355_v47 = vmul.f32 %v5603_v35, %v2354_v37  ;;  %v2374_v33 = vsub.f32 1.5, %v2373_v39  ;;  %v4172_v37 = vld [vmem:[%s5775_s4 + $0x118] sm:$0xf0] }
 0x210   : > { %v2365_v29 = vmul.f32 %v4631_v36, %v2364_v41  ;;  %v2384_v23 = vsub.f32 1.5, %v2383_v46  ;;  %v4175_v41 = vor.u32 %v4581_v34, %v4172_v37  ;;  %v4547_v46 = vld [vmem:[%s5775_s4 + $0x4] sm:$0xf]  ;;  %2910 = vmatpush.bf16.msrb.mxu1 %v4111_v32 }
 0x211   : > { %v2375_v50 = vmul.f32 %v4633_v12, %v2374_v33  ;;  %v2359_v26 = vsel %vm5618_vm8, %v5603_v35, %v2355_v47  ;;  %v4583_v35 = vld [vmem:[%s5775_s4 + $0x124] sm:$0xf]  ;;  %v4036_v47 = vld [vmem:[%s5775_s4 + $0x8] sm:$0xf0]  ;;  %v4239_v33 = vor.u32 %v4597_v38, %v4236_v45 }
 0x212   : > { %v2369_v54 = vsel %vm5623_vm11, %v4631_v36, %v2365_v29  ;;  %v2385_v55 = vmul.f32 %v5611_v14, %v2384_v23  ;;  %v4180_v36 = vld [vmem:[%s5775_s4 + $0x128] sm:$0xf0]  ;;  %v4039_v42 = vor.u32 %v4547_v46, %v4036_v47  ;;  %v4579_v23 = vld [vmem:[%s5775_s4 + $0x104] sm:$0xf] }
 0x213   : > { %v2379_v57 = vsel %vm5629_vm14, %v4633_v12, %v2375_v50  ;;  %v2394_v58 = vrot.slane %v2369_v54, 7  ;;  %v4183_v11 = vor.u32 %v4583_v35, %v4180_v36  ;;  %v4599_v12 = vld [vmem:[%s5775_s4 + $0x1a4] sm:$0xf]  ;;  %v4100_v29 = vld [vmem:[%s5775_s4 + $0x88] sm:$0xf0] }
 0x214   : > { %v2389_v0 = vsel %vm5635_vm15, %v5611_v14, %v2385_v55  ;;  %v2395_v2 = vrot.slane %v2379_v57, 6  ;;  %v4549_v14 = vld [vmem:[%s5775_s4 + $0x14] sm:$0xf]  ;;  %v4247_v16 = vor.u32 %v4599_v12, %v4244_v13  ;;  %v4103_v51 = vor.u32 %v4563_v49, %v4100_v29 }
 0x215   : > { %v2396_v31 = vrot.slane %v2389_v0, 5  ;;  %v2398_v7 = vsel %vm2397_vm3, %v2359_v26, %v2394_v58  ;;  %v4047_v28 = vor.u32 %v4549_v14, %v4044_v19  ;;  %2922 = vmatpush.bf16.msrb.mxu2 %v4183_v11  ;;  %v4167_v55 = vor.u32 %v4579_v23, %v4164_v18 }
 0x216   : > { %2935 = vmatpush.bf16.msrb.mxu3 %v4247_v16  ;;  %v2427_v57 = vsel %vm2226_vm0, %v2422_v3, %v2425_v8  ;;  %2911 = vmatpush.bf16.msrb.mxu1 %v4103_v51 }
 0x217   : > { %v2400_v15 = vsel %vm2399_vm12, %v2395_v2, %v2396_v31  ;;  %2897 = vmatpush.bf16.msrb.mxu0 %v4047_v28 }
 0x218   : > { %v2402_v25 = vsel %vm2401_vm13, %v2398_v7, %v2400_v15 }
 0x219   : > { %v2404_v39 = vmul.f32 %v2402_v25, %v2345_v63  ;;  %2923 = vmatpush.bf16.msrb.mxu2 %v4175_v41 }
 0x21a   : > { %2936 = vmatpush.bf16.msrb.mxu3 %v4239_v33 }
 0x21b   : > { %v2406_v30 = vperm.slane %v2404_v39, 0  ;;  %v2407_v22 = vperm.slane %v2404_v39, 1  ;;  %v2408_v40 = vperm.slane %v2404_v39, 2  ;;  %v2409_v50 = vperm.slane %v2404_v39, 3  ;;  %2898 = vmatpush.bf16.msrb.mxu0 %v4039_v42 }
 0x21d   : > { %v2410_v26 = vrot.slane %v2407_v22, 4  ;;  %v2411_v54 = vrot.slane %v2409_v50, 4  ;;  %2924 = vmatpush.bf16.msrb.mxu2 %v4167_v55 }
 0x21e   : > { %2937 = vmatpush.bf16.msrb.mxu3 %v4231_v27 }
 0x21f   : > { %v2412_v60 = vsel %vm2226_vm0, %v2406_v30, %v2410_v26  ;;  %v2413_v56 = vsel %vm2226_vm0, %v2408_v40, %v2411_v54 }
 0x220   : > { %v2416_v58 = vmul.f32 %v2412_v60, %v5590_v43  ;;  %v2417_v59 = vmul.f32 %v2413_v56, %v5593_v44 }
 0x222   : > { %v2430_v61 = vadd.f32 %v2426_v53, %v2416_v58  ;;  %v2431_v1 = vadd.f32 %v2427_v57, %v2417_v59 }
 0x224   : > { %vm2432_vm1 = vcmp.ge.f32.partialorder %v2430_v61, 0.0  ;;  %v2434_v62 = vmul.f32 0.2, %v2430_v61  ;;  %vm2433_vm2 = vcmp.ge.f32.partialorder %v2431_v1, 0.0  ;;  %v2435_v10 = vmul.f32 0.2, %v2431_v1 }
 0x226   : > { %v2436_v63 = vsel %vm2432_vm1, %v2430_v61, %v2434_v62  ;;  %v2437_v48 = vsel %vm2433_vm2, %v2431_v1, %v2435_v10 }
 0x227   : > { %2440 = vst [vmem:[#allocation1] ss:$2 sm:$0xff] %v2436_v63 }
 0x228   : > { %2442 = vst [vmem:[#allocation1 + $0x10] ss:$2 sm:$0xff] %v2437_v48 }
 0x22e   : > { %v2443_v17 = vld.sshfl [vmem:[#allocation1] sm:$0xff pattern:$0x75316420]  ;;  %v2444_v0 = vld.sshfl [vmem:[#allocation1 + $0x8] sm:$0xff pattern:$0x75316420] }
 0x22f   : > { %v2451_v2 = vpack.c.bf16 %v2443_v17, %v2443_v17  ;;  %v2452_v3 = vpack.c.bf16 %v2444_v0, %v2444_v0  ;;  %v2445_v43 = vld.sshfl [vmem:[#allocation1 + $0x10] sm:$0xff pattern:$0x75316420]  ;;  %v2446_v4 = vld.sshfl [vmem:[#allocation1 + $0x18] sm:$0xff pattern:$0x75316420] }
 0x230   : > { %v2453_v44 = vpack.c.bf16 %v2445_v43, %v2445_v43  ;;  %v2454_v5 = vpack.c.bf16 %v2446_v4, %v2446_v4 }
 0x231   : > { %2847 = vmatmul.bf16.vlgmr.msra.gmra.mxu0 %v2451_v2  ;;  %2860 = vmatmul.bf16.vlgmr.msra.gmra.mxu1 %v2452_v3 }
 0x232   : > { %2873 = vmatmul.bf16.vlgmr.msra.gmra.mxu2 %v2453_v44  ;;  %2886 = vmatmul.bf16.vlgmr.msra.gmra.mxu3 %v2454_v5 }
 0x241   : > { %2899 = vmatmul.bf16.vlgmr.msrb.gmra.mxu0 %v2451_v2  ;;  %2912 = vmatmul.bf16.vlgmr.msrb.gmra.mxu1 %v2452_v3 }
 0x242   : > { %2925 = vmatmul.bf16.vlgmr.msrb.gmra.mxu2 %v2453_v44  ;;  %2938 = vmatmul.bf16.vlgmr.msrb.gmra.mxu3 %v2454_v5 }
 0x2ae   : > { %v2848_v6 = vpop.f32.mrf.mxu0  ;;  %v2861_v31 = vpop.f32.mrf.mxu1 }
 0x2af   : > { %v2862_v14 = vadd.f32 %v2861_v31, %v2848_v6 }
 0x2b5   : > { %v2874_v7 = vpop.f32.mrf.mxu2  ;;  %v2887_v8 = vpop.f32.mrf.mxu3 }
 0x2b6   : > { %v2850_v9 = vpop.f32.mrf.mxu0  ;;  %v2863_v35 = vpop.f32.mrf.mxu1  ;;  %v2875_v20 = vadd.f32 %v2874_v7, %v2862_v14 }
 0x2b8   : > { %v2888_v34 = vadd.f32 %v2887_v8, %v2875_v20 }
 0x2bd   : > { %v2876_v36 = vpop.f32.mrf.mxu2  ;;  %v2889_v11 = vpop.f32.mrf.mxu3 }
 0x2be   : > { %v2900_v12 = vpop.f32.mrf.mxu0  ;;  %v2913_v13 = vpop.f32.mrf.mxu1 }
 0x2bf   : > { %v2914_v15 = vadd.f32 %v2913_v13, %v2900_v12 }
 0x2c5   : > { %v2926_v16 = vpop.f32.mrf.mxu2  ;;  %v2939_v19 = vpop.f32.mrf.mxu3 }
 0x2c6   : > { %v2927_v21 = vadd.f32 %v2926_v16, %v2914_v15  ;;  %v2902_v25 = vpop.f32.mrf.mxu0  ;;  %v2915_v28 = vpop.f32.mrf.mxu1 }
 0x2c8   : > { %v2940_v32 = vadd.f32 %v2939_v19, %v2927_v21 }
 0x2ca   : > { %v2944_v37 = vrot.slane %v2940_v32, 1 }
 0x2cc   : > { %v2946_v38 = vadd.f32 %v2944_v37, %v2888_v34 }
 0x2cd   : > { %v2928_v39 = vpop.f32.mrf.mxu2  ;;  %v2941_v41 = vpop.f32.mrf.mxu3 }
 0x2ce   : > { %v2948_v45 = vrot.slane %v2946_v38, 1 }
 0x2d0   : > { %v2950_v46 = vsel %vm2397_vm3, %v2946_v38, %v2948_v45 }
 0x2d1   : > { %v2951_v47 = vsub.f32 0.0, %v2950_v46 }
 0x2d3   : > { %v2952_v33 = vmul.f32 1.442695, %v2951_v47 }
 0x2d5   : > { %4636 = vpow2.f32 %v2952_v33 }
 0x2db   : > { %v4637_v42 = vpop.eup %4636 }
 0x2dc   : > { %v2954_v49 = vadd.f32 1.0, %v4637_v42 }
 0x2de   : > { %4638 = vrcp.f32 %v2954_v49 }
 0x2e4   : > { %v4639_v29 = vpop.eup %4638 }
 0x2e5   : > { %2956 = vst [vmem:[%s5776_s5] sm:$0x3] %v4639_v29 }
 0x2e6 PF: > { %s15_s18 = sadd.s32 1, %s4646_s18  }
 0x2e7   : > { %p12_p7 = scmp.ge.s32.totalorder %s15_s18, 6  }
 0x2e9   :  { %14 = sbr.rel (!%p12_p7) target bundleno = 1 (0x1), region = 81 }

</bundles_post_ra>
